<compile_context>
chip_gen: v7x
topology: tpu7x:2x2x1
jax: 0.10.0
libtpu: 0.0.40
codegen_flags: <defaults>
</compile_context>

<pallas_src>
import jax
import jax.numpy as jnp
import numpy as np
from jax import lax
from jax.experimental import pallas as pl
from jax.experimental.pallas import tpu as pltpu

BN_EPS = 1e-5
LANE = 128


def _pad_to(n, m):
    return ((n + m - 1) // m) * m


def _largest_divisor_leq(n, cap):
    cap = max(1, min(n, cap))
    for d in range(cap, 0, -1):
        if n % d == 0:
            return d
    return 1


def _tpu_vmem_capacity():
    """Generation-aware VMEM capacity (bytes), with a conservative fallback."""
    try:
        return int(pltpu.get_tpu_info().vmem_capacity_bytes)
    except Exception:
        return 64 * 1024 * 1024   # v7x-sized fallback; safe on v5e/v6e too


# ----------------------------- Pallas kernels ------------------------------ #

def _make_conv_stats_kernel(W, Cin, TM, HALO):
    """3x3 conv (pad=1, stride=1) over TM flattened padded-image rows.

    The 9 taps are static shifted slices of the halo-padded input, concatenated
    along lanes into a (TM, 9*Cin) LHS for a single MXU GEMM.  BN batch sums are
    computed as masked MXU mat-vecs so the pad-row garbage is excluded and the
    reductions stay off the VPU."""
    W2 = W + 2
    taps = [(dy, dx) for dy in (-1, 0, 1) for dx in (-1, 0, 1)]

    def kernel(x_ref, w_ref, mask_ref, out_ref, psum_ref, pssq_ref):
        # x_ref   : (1, TM + 2*HALO, Cin) bf16   flattened (H+2, W+2) padded images
        # w_ref   : (9*Cin, C)            bf16
        # mask_ref: (1, TM)               f32    1.0 on real pixels, 0.0 on pad rows
        # out_ref : (TM, C)               bf16
        # psum/pssq: (1, 1, C)            f32    per-grid-step partial BN stats
        pieces = []
        for dy, dx in taps:
            start = HALO + dy * W2 + dx            # static shift, always in-bounds
            pieces.append(x_ref[0, pl.ds(start, TM), :])
        lhs = jnp.concatenate(pieces, axis=-1)      # (TM, 9*Cin) bf16
        acc = jnp.dot(lhs, w_ref[...], preferred_element_type=jnp.float32)

        out_ref[...] = acc.astype(out_ref.dtype)    # bf16 intermediate to HBM

        m = mask_ref[...]                           # (1, TM) f32
        psum_ref[...] = jnp.dot(m, acc,
                                preferred_element_type=jnp.float32).reshape(1, 1, -1)
        pssq_ref[...] = jnp.dot(m, acc * acc,
                                preferred_element_type=jnp.float32).reshape(1, 1, -1)

    return kernel


def _make_bn_relu_pool_kernel(C, Wo):
    """Fused BatchNorm (precomputed scale/shift) + ReLU + 2x2 max-pool.
    Input layout (TB2, 2, Wo+1, 2*C): axis 1 = row pair, lane halves = column pair;
    the last column pair (right padding) is dropped by a static slice."""
    def kernel(x_ref, scale_ref, shift_ref, o_ref):
        a = x_ref[...].astype(jnp.float32) * scale_ref[...] + shift_ref[...]
        a = jnp.maximum(a, 0.0)
        m = jnp.maximum(a[:, 0], a[:, 1])              # pool over the row pair
        m = jnp.maximum(m[:, :, :C], m[:, :, C:])      # pool over the column pair
        o_ref[...] = m[:, :Wo, :]                      # drop right-pad column pair
    return kernel


# ------------------------------ pallas_call wrappers ------------------------ #

def _conv3x3_bn_stats(xg, w9, mask, *, TM, HALO, Cin, C, G, W, vmem_limit):
    L = TM + 2 * HALO
    kernel = _make_conv_stats_kernel(W, Cin, TM, HALO)
    return pl.pallas_call(
        kernel,
        out_shape=(jax.ShapeDtypeStruct((G * TM, C), jnp.bfloat16),
                   jax.ShapeDtypeStruct((G, 1, C), jnp.float32),
                   jax.ShapeDtypeStruct((G, 1, C), jnp.float32)),
        grid_spec=pltpu.PrefetchScalarGridSpec(
            num_scalar_prefetch=0,
            grid=(G,),
            in_specs=[pl.BlockSpec((1, L, Cin), lambda g: (g, 0, 0)),
                      pl.BlockSpec((9 * Cin, C), lambda g: (0, 0)),
                      pl.BlockSpec((1, TM), lambda g: (0, 0))],
            out_specs=(pl.BlockSpec((TM, C), lambda g: (g, 0)),
                       pl.BlockSpec((1, 1, C), lambda g: (g, 0, 0)),
                       pl.BlockSpec((1, 1, C), lambda g: (g, 0, 0)))),
        compiler_params=pltpu.CompilerParams(
            dimension_semantics=("parallel",),       # partial stats -> fully parallel
            vmem_limit_bytes=vmem_limit),
    )(xg, w9, mask)


def _bn_relu_pool(conv4, scale2, shift2, *, C, Wo, TB2, vmem_limit):
    R = conv4.shape[0]
    return pl.pallas_call(
        _make_bn_relu_pool_kernel(C, Wo),
        out_shape=jax.ShapeDtypeStruct((R, Wo, C), jnp.float32),
        grid_spec=pltpu.PrefetchScalarGridSpec(
            num_scalar_prefetch=0,
            grid=(R // TB2,),
            in_specs=[pl.BlockSpec((TB2, 2, Wo + 1, 2 * C), lambda i: (i, 0, 0, 0)),
                      pl.BlockSpec((1, 2 * C), lambda i: (0, 0)),
                      pl.BlockSpec((1, 2 * C), lambda i: (0, 0))],
            out_specs=pl.BlockSpec((TB2, Wo, C), lambda i: (i, 0, 0))),
        compiler_params=pltpu.CompilerParams(
            dimension_semantics=("parallel",),
            vmem_limit_bytes=vmem_limit),
    )(conv4, scale2, shift2)


# ------------------------------- DownSkip forward --------------------------- #

def down_skip(x_nchw, params, fac=2):
    """DownSkip.forward: ConvBlock(3x3, pad=1) -> MaxPool2d(fac).  NCHW in/out."""
    assert fac == 2, "kernel implements the default MaxPool2d(2)"
    w_hwio, gamma, beta = params
    N, Cin, H, W = x_nchw.shape
    Cout = w_hwio.shape[-1]
    assert H % 2 == 0 and W % 2 == 0
    Ho, Wo = H // fac, W // fac
    W2, H2 = W + 2, H + 2
    Lp = H2 * W2                  # flattened padded-image length (rows)
    HALO = W + 3                  # max |flat tap shift| = (W+2) + 1
    C = Cout                      # intermediate channel width (no 128-lane padding)

    vmem_cap = _tpu_vmem_capacity()
    vmem_limit = int(min(vmem_cap * 3 // 4, 96 * 1024 * 1024))
    conv_budget = max(1 << 20, vmem_cap // 16)
    pool_budget = max(1 << 20, vmem_cap // 16)

    # ---- layout prep (cheap XLA glue; only a bottom/right zero pad) ----
    x = jnp.transpose(x_nchw, (0, 2, 3, 1)).astype(jnp.bfloat16)     # NCHW -> NHWC
    # Pad 2 rows (bottom) and 2 cols (right): every 3x3 tap of a valid pixel then
    # reads real data or zeros (no in-kernel edge masks), and 2x2 pool windows stay
    # aligned to even (row, col) pairs so pooling is a free row-major reshape.
    x_pad = jnp.pad(x, ((0, 0), (0, 2), (0, 2), (0, 0)))             # (N, H+2, W+2, Cin)

    # images per conv grid step, under a generation-aware VMEM budget (approximate
    # per-image VMEM counting 128-lane padding of narrow arrays; x/out double-buffered)
    per_img = Lp * (2 * _pad_to(Cin, LANE) * 2 + _pad_to(9 * Cin, LANE) * 2
                    + _pad_to(C, LANE) * 4 + 2 * _pad_to(C, LANE) * 2)
    cap_imgs = max(1, conv_budget // max(per_img, 1))
    TB = None
    for d in range(min(N, cap_imgs), 0, -1):
        # multi-block bf16 output tiles need a sublane-friendly row count
        if N % d == 0 and (d == N or (d * Lp) % 16 == 0):
            TB = d
            break
    if TB is None:
        TB = N        # single block: block shape == array shape, no tiling constraint
    G = N // TB
    TM = TB * Lp

    # each group carries its own HALO of zero rows (the true neighbours at those
    # positions are either zero padding or only feed masked/dropped garbage rows)
    xg = jnp.pad(x_pad.reshape(G, TM, Cin), ((0, 0), (HALO, HALO), (0, 0)))

    w9 = w_hwio.reshape(9 * Cin, Cout).astype(jnp.bfloat16)

    # valid-pixel mask (per group, identical across groups): excludes pad rows/cols
    pos = np.arange(TM) % Lp
    valid = ((pos // W2) < H) & ((pos % W2) < W)
    mask = jnp.asarray(valid.astype(np.float32).reshape(1, TM))

    conv_out, psum, pssq = _conv3x3_bn_stats(
        xg, w9, mask, TM=TM, HALO=HALO, Cin=Cin, C=C, G=G, W=W,
        vmem_limit=vmem_limit)

    # ---- BatchNorm scale/shift from training-mode batch statistics (f32) ----
    cnt = float(N * H * W)
    s = jnp.sum(psum, axis=0)                       # (1, C)
    ss = jnp.sum(pssq, axis=0)                      # (1, C)
    mean = s / cnt
    var = ss / cnt - mean * mean                    # biased variance (PyTorch BN fwd)
    scale = gamma.reshape(1, C) * lax.rsqrt(var + BN_EPS)
    shift = beta.reshape(1, C) - mean * scale
    scale2 = jnp.concatenate([scale, scale], axis=-1)   # per lane-half copies
    shift2 = jnp.concatenate([shift, shift], axis=-1)

    # free row-major reshape: (N*(H+2)*(W+2), C) -> (N*(Ho+1), 2, Wo+1, 2*C);
    # 2x2 window = (row-pair axis, lane-half axis); the (+1) row/col pairs are pad.
    conv4 = conv_out.reshape(N * (Ho + 1), 2, Wo + 1, 2 * C)
    rows = N * (Ho + 1)
    per_row = (2 * 2 * (Wo + 1) * _pad_to(2 * C, LANE) * 2
               + 2 * Wo * _pad_to(C, LANE) * 4)
    TB2 = _largest_divisor_leq(rows, max(1, pool_budget // max(per_row, 1)))
    pooled = _bn_relu_pool(conv4, scale2, shift2, C=C, Wo=Wo, TB2=TB2,
                           vmem_limit=vmem_limit)

    out = pooled.reshape(N, Ho + 1, Wo, C)[:, :Ho]      # drop bottom-pad row pair
    return jnp.transpose(out, (0, 3, 1, 2))             # NHWC -> NCHW


def init_down_skip_params(key, d_in, d_out):
    std = (2.0 / (d_in * 9)) ** 0.5                      # kaiming_normal, relu gain
    w = std * jax.random.normal(key, (3, 3, d_in, d_out), jnp.float32)   # HWIO
    gamma = jnp.ones((d_out,), jnp.float32)
    beta = jnp.zeros((d_out,), jnp.float32)
    return (w, gamma, beta)


# ----------------------------- pure-JAX reference --------------------------- #

def down_skip_ref(x_nchw, params, fac=2):
    w_hwio, gamma, beta = params
    x = jnp.transpose(x_nchw, (0, 2, 3, 1)).astype(jnp.float32)
    # mirror the kernel's numerics: bf16 inputs/weights on the MXU, f32 accumulation,
    # f32 batch statistics, bf16 storage of the conv intermediate before BN/ReLU/pool.
    xb = x.astype(jnp.bfloat16).astype(jnp.float32)
    wb = w_hwio.astype(jnp.bfloat16).astype(jnp.float32)
    y = lax.conv_general_dilated(
        xb, wb, (1, 1), ((1, 1), (1, 1)),
        dimension_numbers=("NHWC", "HWIO", "NHWC"),
        precision=lax.Precision.HIGHEST)
    mean = jnp.mean(y, axis=(0, 1, 2))
    var = jnp.var(y, axis=(0, 1, 2))
    yb = y.astype(jnp.bfloat16).astype(jnp.float32)
    z = jnp.maximum((yb - mean) * lax.rsqrt(var + BN_EPS) * gamma + beta, 0.0)
    z = lax.reduce_window(z, -jnp.inf, lax.max,
                          (1, fac, fac, 1), (1, fac, fac, 1), "VALID")
    return jnp.transpose(z, (0, 3, 1, 2))


# ----------------------------------- main ------------------------------------ #

if __name__ == "__main__":
    key = jax.random.PRNGKey(0)
    k_x, k_w = jax.random.split(key)

    N, d_in, H, W = 2, 4, 16, 16
    d_out = 32
    x = jax.random.normal(k_x, (N, d_in, H, W), jnp.float32)
    params = init_down_skip_params(k_w, d_in, d_out)

    out = jax.block_until_ready(down_skip(x, params))
    ref = down_skip_ref(x, params)

    assert out.shape == (N, d_out, H // 2, W // 2)
    np.testing.assert_allclose(np.asarray(out), np.asarray(ref),
                               atol=2e-2, rtol=2e-2)
    print("KERNEL_OK")
</pallas_src>

<mosaic_0001>
module attributes {stable_mosaic.version = 11 : i64} {
  func.func @kernel(%arg0: i32, %arg1: memref<1x686x4xbf16, #tpu.memory_space<vmem>>, %arg2: memref<36x32xbf16, #tpu.memory_space<vmem>>, %arg3: memref<1x648xf32, #tpu.memory_space<vmem>>, %arg4: memref<648x32xbf16, #tpu.memory_space<vmem>>, %arg5: memref<1x1x32xf32, #tpu.memory_space<vmem>>, %arg6: memref<1x1x32xf32, #tpu.memory_space<vmem>>) attributes {dimension_semantics = [#tpu.dimension_semantics<parallel>], iteration_bounds = array<i64: 1>, scalar_prefetch = 0 : i64, scratch_operands = 0 : i64, tpu.core_type = #tpu.core_type<tc>, window_params = [{transform_indices = @transform_0, window_bounds = array<i64: 1, 686, 4>}, {pipeline_mode = #tpu.pipeline_mode<synchronous>, transform_indices = @transform_1, window_bounds = array<i64: 36, 32>}, {pipeline_mode = #tpu.pipeline_mode<synchronous>, transform_indices = @transform_2, window_bounds = array<i64: 1, 648>}, {transform_indices = @transform_3, window_bounds = array<i64: 648, 32>}, {transform_indices = @transform_4, window_bounds = array<i64: 1, 1, 32>}, {transform_indices = @transform_5, window_bounds = array<i64: 1, 1, 32>}]} {
    %c0 = arith.constant 0 : index
    %c0_0 = arith.constant 0 : index
    %c0_1 = arith.constant 0 : index
    %0 = vector.load %arg1[%c0, %c0_0, %c0_1] : memref<1x686x4xbf16, #tpu.memory_space<vmem>>, vector<1x648x4xbf16>
    %1 = vector.shape_cast %0 : vector<1x648x4xbf16> to vector<648x4xbf16>
    %c0_2 = arith.constant 0 : index
    %c1 = arith.constant 1 : index
    %c0_3 = arith.constant 0 : index
    %2 = vector.load %arg1[%c0_2, %c1, %c0_3] : memref<1x686x4xbf16, #tpu.memory_space<vmem>>, vector<1x648x4xbf16>
    %3 = vector.shape_cast %2 : vector<1x648x4xbf16> to vector<648x4xbf16>
    %c0_4 = arith.constant 0 : index
    %c2 = arith.constant 2 : index
    %c0_5 = arith.constant 0 : index
    %4 = vector.load %arg1[%c0_4, %c2, %c0_5] : memref<1x686x4xbf16, #tpu.memory_space<vmem>>, vector<1x648x4xbf16>
    %5 = vector.shape_cast %4 : vector<1x648x4xbf16> to vector<648x4xbf16>
    %c0_6 = arith.constant 0 : index
    %c18 = arith.constant 18 : index
    %c0_7 = arith.constant 0 : index
    %6 = vector.load %arg1[%c0_6, %c18, %c0_7] : memref<1x686x4xbf16, #tpu.memory_space<vmem>>, vector<1x648x4xbf16>
    %7 = vector.shape_cast %6 : vector<1x648x4xbf16> to vector<648x4xbf16>
    %c0_8 = arith.constant 0 : index
    %c19 = arith.constant 19 : index
    %c0_9 = arith.constant 0 : index
    %8 = vector.load %arg1[%c0_8, %c19, %c0_9] : memref<1x686x4xbf16, #tpu.memory_space<vmem>>, vector<1x648x4xbf16>
    %9 = vector.shape_cast %8 : vector<1x648x4xbf16> to vector<648x4xbf16>
    %c0_10 = arith.constant 0 : index
    %c20 = arith.constant 20 : index
    %c0_11 = arith.constant 0 : index
    %10 = vector.load %arg1[%c0_10, %c20, %c0_11] : memref<1x686x4xbf16, #tpu.memory_space<vmem>>, vector<1x648x4xbf16>
    %11 = vector.shape_cast %10 : vector<1x648x4xbf16> to vector<648x4xbf16>
    %c0_12 = arith.constant 0 : index
    %c36 = arith.constant 36 : index
    %c0_13 = arith.constant 0 : index
    %12 = vector.load %arg1[%c0_12, %c36, %c0_13] : memref<1x686x4xbf16, #tpu.memory_space<vmem>>, vector<1x648x4xbf16>
    %13 = vector.shape_cast %12 : vector<1x648x4xbf16> to vector<648x4xbf16>
    %c0_14 = arith.constant 0 : index
    %c37 = arith.constant 37 : index
    %c0_15 = arith.constant 0 : index
    %14 = vector.load %arg1[%c0_14, %c37, %c0_15] : memref<1x686x4xbf16, #tpu.memory_space<vmem>>, vector<1x648x4xbf16>
    %15 = vector.shape_cast %14 : vector<1x648x4xbf16> to vector<648x4xbf16>
    %c0_16 = arith.constant 0 : index
    %c38 = arith.constant 38 : index
    %c0_17 = arith.constant 0 : index
    %16 = vector.load %arg1[%c0_16, %c38, %c0_17] : memref<1x686x4xbf16, #tpu.memory_space<vmem>>, vector<1x648x4xbf16>
    %17 = vector.shape_cast %16 : vector<1x648x4xbf16> to vector<648x4xbf16>
    %18 = tpu.concatenate %1, %3, %5, %7, %9, %11, %13, %15, %17 in 1 : vector<648x4xbf16>, vector<648x4xbf16>, vector<648x4xbf16>, vector<648x4xbf16>, vector<648x4xbf16>, vector<648x4xbf16>, vector<648x4xbf16>, vector<648x4xbf16>, vector<648x4xbf16> -> vector<648x36xbf16>
    %c0_18 = arith.constant 0 : index
    %c0_19 = arith.constant 0 : index
    %19 = vector.load %arg2[%c0_18, %c0_19] : memref<36x32xbf16, #tpu.memory_space<vmem>>, vector<36x32xbf16>
    %cst = arith.constant dense<0.000000e+00> : vector<648x32xf32>
    %20 = tpu.matmul %18, %19, %cst {dimension_numbers = #tpu.dot_dimension_numbers<[1], [0], [0], [1], [0, 0, 1, 1], [], []>} : vector<648x36xbf16>, vector<36x32xbf16>, vector<648x32xf32> -> vector<648x32xf32>
    %21 = arith.truncf %20 : vector<648x32xf32> to vector<648x32xbf16>
    %c0_20 = arith.constant 0 : index
    %c0_21 = arith.constant 0 : index
    %22 = vector.load %arg4[%c0_20, %c0_21] : memref<648x32xbf16, #tpu.memory_space<vmem>>, vector<648x32xbf16>
    tpu.vector_store %arg4[%c0_20, %c0_21], %21 {strides = array<i32>} : memref<648x32xbf16, #tpu.memory_space<vmem>>, vector<648x32xbf16>,
    %c0_22 = arith.constant 0 : index
    %c0_23 = arith.constant 0 : index
    %23 = vector.load %arg3[%c0_22, %c0_23] : memref<1x648xf32, #tpu.memory_space<vmem>>, vector<1x648xf32>
    %cst_24 = arith.constant dense<0.000000e+00> : vector<1x32xf32>
    %24 = tpu.matmul %23, %20, %cst_24 {dimension_numbers = #tpu.dot_dimension_numbers<[1], [0], [0], [1], [0, 0, 1, 1], [], []>} : vector<1x648xf32>, vector<648x32xf32>, vector<1x32xf32> -> vector<1x32xf32>
    %25 = vector.shape_cast %24 : vector<1x32xf32> to vector<1x1x32xf32>
    %c0_25 = arith.constant 0 : index
    %c0_26 = arith.constant 0 : index
    %c0_27 = arith.constant 0 : index
    %26 = vector.load %arg5[%c0_25, %c0_26, %c0_27] : memref<1x1x32xf32, #tpu.memory_space<vmem>>, vector<1x1x32xf32>
    tpu.vector_store %arg5[%c0_25, %c0_26, %c0_27], %25 {strides = array<i32>} : memref<1x1x32xf32, #tpu.memory_space<vmem>>, vector<1x1x32xf32>,
    %27 = arith.mulf %20, %20 : vector<648x32xf32>
    %cst_28 = arith.constant dense<0.000000e+00> : vector<1x32xf32>
    %28 = tpu.matmul %23, %27, %cst_28 {dimension_numbers = #tpu.dot_dimension_numbers<[1], [0], [0], [1], [0, 0, 1, 1], [], []>} : vector<1x648xf32>, vector<648x32xf32>, vector<1x32xf32> -> vector<1x32xf32>
    %29 = vector.shape_cast %28 : vector<1x32xf32> to vector<1x1x32xf32>
    %c0_29 = arith.constant 0 : index
    %c0_30 = arith.constant 0 : index
    %c0_31 = arith.constant 0 : index
    %30 = vector.load %arg6[%c0_29, %c0_30, %c0_31] : memref<1x1x32xf32, #tpu.memory_space<vmem>>, vector<1x1x32xf32>
    tpu.vector_store %arg6[%c0_29, %c0_30, %c0_31], %29 {strides = array<i32>} : memref<1x1x32xf32, #tpu.memory_space<vmem>>, vector<1x1x32xf32>,
    return
  }
  func.func @transform_0(%arg0: i32) -> (i32, i32, i32) {
    %c0_i32 = arith.constant 0 : i32
    %c0_i32_0 = arith.constant 0 : i32
    %c0_i32_1 = arith.constant 0 : i32
    return %arg0, %c0_i32, %c0_i32_0 : i32, i32, i32
  }
  func.func @transform_1(%arg0: i32) -> (i32, i32) {
    %c0_i32 = arith.constant 0 : i32
    %c0_i32_0 = arith.constant 0 : i32
    %c0_i32_1 = arith.constant 0 : i32
    return %c0_i32, %c0_i32_0 : i32, i32
  }
  func.func @transform_2(%arg0: i32) -> (i32, i32) {
    %c0_i32 = arith.constant 0 : i32
    %c0_i32_0 = arith.constant 0 : i32
    %c0_i32_1 = arith.constant 0 : i32
    return %c0_i32, %c0_i32_0 : i32, i32
  }
  func.func @transform_3(%arg0: i32) -> (i32, i32) {
    %c0_i32 = arith.constant 0 : i32
    %c0_i32_0 = arith.constant 0 : i32
    return %arg0, %c0_i32 : i32, i32
  }
  func.func @transform_4(%arg0: i32) -> (i32, i32, i32) {
    %c0_i32 = arith.constant 0 : i32
    %c0_i32_0 = arith.constant 0 : i32
    %c0_i32_1 = arith.constant 0 : i32
    return %arg0, %c0_i32, %c0_i32_0 : i32, i32, i32
  }
  func.func @transform_5(%arg0: i32) -> (i32, i32, i32) {
    %c0_i32 = arith.constant 0 : i32
    %c0_i32_0 = arith.constant 0 : i32
    %c0_i32_1 = arith.constant 0 : i32
    return %arg0, %c0_i32, %c0_i32_0 : i32, i32, i32
  }
}

</mosaic_0001>

<bundles_post_ra>
// kernel: tpu_custom_call.1
= control target key start
LH: loop header
LB: loop body
LE: loop exit
PB: predicated region body
PF: predicated region fallthrough
CT: control target
= control target key end

     0   :  { %11 = vsyncpa [#allocation3], 0  ;;  %vm8926_vm0 = vcmask 1046528   ;;  %vm1264_vm1 = vcmask 1045504   ;;  %s4999_s15 = smov 12   ;;  %s5000_s16 = smov 8   ;;  %s8920_s0 = inlined_call_operand.vmem [shape: bf16[1,686,4], index: 0, kind: input, shape index: {}]   ;;  %s8921_s1 = inlined_call_operand.vmem [shape: bf16[36,32], index: 1, kind: input, shape index: {}]   ;;  %s8922_s2 = inlined_call_operand.vmem [shape: f32[1,648], index: 2, kind: input, shape index: {}]   ;;  %s8923_s3 = inlined_call_operand.vmem [shape: bf16[648,32], index: 3, kind: output, shape index: {0}]   ;;  %s8924_s4 = inlined_call_operand.hbm [shape: f32[1,1,32], index: 4, kind: output, shape index: {1}]   ;;  %s8925_s5 = inlined_call_operand.hbm [shape: f32[1,1,32], index: 5, kind: output, shape index: {2}]  }
   0x1   :  { %v23_v0 = vld [vmem:[%s8920_s0 + $0xc] sm:$0xf]  ;;  %v24_v1 = vld [vmem:[%s8920_s0 + $0x10] sm:$0xf]  ;;  %v25_v2 = vld [vmem:[%s8920_s0 + $0x14] sm:$0xf] }
   0x2   :  { %v103_v3 = vld [vmem:[%s8920_s0 + $0x8] sm:$0xe]  ;;  %v5054_v4 = vcombine.low %v24_v1, %v25_v2  ;;  %v21_v5 = vld [vmem:[%s8920_s0 + $0x4] sm:$0xf]  ;;  %v102_v8 = vld [vmem:[%s8920_s0] sm:$0xe] }
   0x3   :  { %v4109_v6 = vcombine.low %v103_v3, %v23_v0  ;;  %v22_v7 = vld [vmem:[%s8920_s0 + $0x8] sm:$0xf]  ;;  %v5068_v9 = vld [vmem:[%s8920_s0 + $0x18] sm:$0xff]   ;;  %v4108_v12 = vcombine.low %v102_v8, %v21_v5  ;;  %v20_v13 = vld [vmem:[%s8920_s0] sm:$0xf]  ;;  %s5001_s19 = smov 24  }
   0x4   :  { %v5071_v10 = vrot.slane %v5054_v4, 1  ;;  %v5073_v11 = vcombine.low %v22_v7, %v23_v0  ;;  %v5078_v15 = vcombine.low %v20_v13, %v21_v5  ;;  %v109_v16 = vld [vmem:[%s8920_s0 + $0x10] sm:$0xc]  ;;  %v5084_v17 = vrot.slane %v5068_v9, 2  ;;  %v108_v21 = vld [vmem:[%s8920_s0 + $0x8] sm:$0xc] }
   0x5   :  { %v909_v14 = vrot.slane %v4109_v6, 1  ;;  %v735_v18 = vrot.slane %v4108_v12, 1  ;;  %v4114_v20 = vcombine.low %v109_v16, %v25_v2  ;;  %v1266_v22 = vrot.slane %v5054_v4, 2  ;;  %v114_v34 = vld [vmem:[%s8920_s0 + $0x10] sm:$0x8]  ;;  %s5002_s20 = smov 20  }
   0x6   :  { %v736_v19 = vrot.slane %v5073_v11, 1  ;;  %v4113_v24 = vcombine.low %v108_v21, %v23_v0  ;;  %v338_v25 = vshll.u32 %v5054_v4, 16  ;;  %v342_v26 = vshrl.u32 %v5054_v4, 16  ;;  %s5003_s21 = smov 16   ;;  %s5004_s22 = smov 4   ;;  %v5135_v5 = vld [vmem:[%s8920_s0 + $0x20] sm:$0xff]  }
   0x7   :  { %v910_v23 = vsel %vm8926_vm0, %v909_v14, %v5071_v10  ;;  %v1439_v28 = vrot.slane %v4114_v20, 2  ;;  %v1002_v29 = vshrl.u32 %v4109_v6, 16  ;;  %v1005_v31 = vshll.u32 %v4109_v6, 16  ;;  %s5005_s25 = smov 32   ;;  %s5006_s26 = smov 28  }
   0x8   :  { %915 = vrot.lane.b32.xlu1 %v910_v23, %s4999_s15  ;;  %v737_v27 = vsel %vm8926_vm0, %v735_v18, %v736_v19  ;;  %v1265_v30 = vrot.slane %v4113_v24, 2  ;;  %v1009_v32 = vrot.slane %v342_v26, 1  ;;  %v1010_v33 = vrot.slane %v338_v25, 2 }
   0x9   :  { %816 = vrot.lane.b32.xlu0 %v737_v27, %s5000_s16  ;;  %v1440_v35 = vsel %vm1264_vm1, %v1439_v28, %v5084_v17  ;;  %vm1000_vm2 = vsmask.f32 6400  ;;  %v1004_v36 = vrot.slane %v1002_v29, 1  ;;  %v323_v37 = vshrl.u32 %v5078_v15, 16 }
   0xa   :  { %v1267_v38 = vsel %vm1264_vm1, %v1265_v30, %v1266_v22  ;;  %v1007_v39 = vrot.slane %v1005_v31, 2  ;;  %v1011_v40 = vor.u32 %v1010_v33, %v1009_v32  ;;  %v325_v41 = vshll.u32 %v5078_v15, 16 }
   0xb   :  { %vm321_vm3 = vsmask.f32 7424  ;;  %v330_v42 = vshll.u32 %v5073_v11, 16  ;;  %v4118_v43 = vcombine.low %v114_v34, %v25_v2  ;;  %v1796_v44 = vrot.slane %v5068_v9, 3 }
   0xc   :  { %1445 = vrot.lane.b32.xlu1 %v1440_v35, %s5001_s19  ;;  %v1008_v45 = vor.u32 %v1007_v39, %v1004_v36  ;;  %v327_v46 = vrot.slane %v325_v41, 1  ;;  %v5117_v47 = vshll.u32 %v5068_v9, 16  ;;  %v5120_v48 = vshrl.u32 %v5068_v9, 16 }
   0xd   :  { %1346 = vrot.lane.b32.xlu0 %v1267_v38, %s5002_s20  ;;  %v332_v49 = vrot.slane %v330_v42, 1  ;;  %vm1794_vm4 = vcmask 1044480   ;;  %v1795_v50 = vrot.slane %v4118_v43, 3  ;;  %v1532_v51 = vshrl.u32 %v4114_v20, 16  ;;  %v4891_v43 = vld [vmem:[%s8921_s1] sm:$0xff]  }
   0xe   :  { %v1012_v52 = vsel %vm1000_vm2, %v1008_v45, %v1011_v40  ;;  %v328_v53 = vor.u32 %v327_v46, %v323_v37  ;;  %v1535_v54 = vshll.u32 %v4114_v20, 16  ;;  %v1539_v55 = vrot.slane %v5120_v48, 2 }
   0xf   :  { %v1534_v56 = vrot.slane %v1532_v51, 2  ;;  %v1540_v57 = vrot.slane %v5117_v47, 3  ;;  %v1797_v59 = vsel %vm1794_vm4, %v1795_v50, %v1796_v44  ;;  %v334_v61 = vshrl.u32 %v5073_v11, 16  ;;  %v4893_v51 = vld [vmem:[%s8921_s1 + $0x8] sm:$0xff]  }
  0x10   :  { %1179 = vrot.lane.b32.xlu1 %v1012_v52, %s5003_s21  ;;  %v333_v58 = vsel %vm321_vm3, %v328_v53, %v332_v49  ;;  %v1537_v60 = vrot.slane %v1535_v54, 3  ;;  %vm1530_vm5 = vsmask.f32 5376  ;;  %v1013_v63 = vrot.slane %v5120_v48, 1 }
  0x11   :  { %649 = vrot.lane.b32.xlu0 %v333_v58, %s5004_s22  ;;  %v1541_v62 = vor.u32 %v1540_v57, %v1539_v55  ;;  %v1014_v0 = vrot.slane %v5117_v47, 2  ;;  %v336_v2 = vor.u32 %v334_v61, %v332_v49  ;;  %v340_v3 = vrot.slane %v338_v25, 1  ;;  %v5214_v49 = vld [vmem:[%s8920_s0 + $0x30] sm:$0xff]  }
  0x12   :  { %v1538_v1 = vor.u32 %v1537_v60, %v1534_v56  ;;  %v739_v7 = vsel %vm8926_vm0, %v736_v19, %v5071_v10  ;;  %v740_v13 = vrot.slane %v5068_v9, 1  ;;  %v5147_v14 = vshll.u32 %v5135_v5, 16  ;;  %v4894_v55 = vld [vmem:[%s8921_s1 + $0x10] ss:$0 sps:$4 sm:$0x33]  }
  0x13   :  { %v1015_v8 = vor.u32 %v1014_v0, %v1013_v63  ;;  %v341_v12 = vsel %vm321_vm3, %v336_v2, %v340_v3  ;;  %v5150_v16 = vshrl.u32 %v5135_v5, 16  ;;  %v1270_v19 = vrot.slane %v5135_v5, 2 }
  0x14   :  { %1876 = vrot.lane.b32.xlu1 %v1797_v59, %s5005_s25  ;;  %v1542_v6 = vsel %vm1530_vm5, %v1538_v1, %v1541_v62  ;;  %v741_v20 = vsel %vm8926_vm0, %v5071_v10, %v740_v13  ;;  %v1544_v9 = vrot.slane %v5147_v14, 3  ;;  %v1798_v24 = vrot.slane %v5135_v5, 3 }
  0x15   :  { %1709 = vrot.lane.b32.xlu0 %v1542_v6, %s5006_s26  ;;  %v1016_v18 = vsel %vm1000_vm2, %v1011_v40, %v1015_v8  ;;  %v1543_v21 = vrot.slane %v5150_v16, 2  ;;  %v1271_v23 = vsel %vm1264_vm1, %v5084_v17, %v1270_v19  ;;  %v1269_v25 = vsel %vm1264_vm1, %v1266_v22, %v5084_v17  ;;  %v5181_v17 = vld [vmem:[%s8920_s0 + $0x28] sm:$0xff]  }
  0x16   :  { %v1799_v10 = vsel %vm1794_vm4, %v1796_v44, %v1798_v24  ;;  %v1017_v28 = vrot.slane %v5150_v16, 1  ;;  %v1018_v29 = vrot.slane %v5147_v14, 2  ;;  %v344_v31 = vor.u32 %v342_v26, %v340_v3 }
  0x17   :  { %v1545_v27 = vor.u32 %v1544_v9, %v1543_v21  ;;  %v348_v32 = vrot.slane %v5117_v47, 1  ;;  %v742_v33 = vrot.slane %v5135_v5, 1  ;;  %v5188_v35 = vshll.u32 %v5181_v17, 16 }
  0x18   :  { %818 = vrot.lane.b32.xlu1 %v739_v7, %s5000_s16  ;;  %v1019_v22 = vor.u32 %v1018_v29, %v1017_v28  ;;  %v5191_v26 = vshrl.u32 %v5181_v17, 16  ;;  %v1272_v37 = vrot.slane %v5181_v17, 2  ;;  %v1800_v42 = vrot.slane %v5181_v17, 3 }
  0x19   :  { %651 = vrot.lane.b32.xlu0 %v341_v12, %s5004_s22  ;;  %v1546_v30 = vsel %vm1530_vm5, %v1541_v62, %v1545_v27  ;;  %v349_v34 = vsel %vm321_vm3, %v344_v31, %v348_v32  ;;  %v743_v38 = vsel %vm8926_vm0, %v740_v13, %v742_v33  ;;  %v1548_v40 = vrot.slane %v5188_v35, 3 }
  0x1a   :  { %v1020_v36 = vsel %vm1000_vm2, %v1015_v8, %v1019_v22  ;;  %v1547_v39 = vrot.slane %v5191_v26, 2  ;;  %v1273_v41 = vsel %vm1264_vm1, %v1270_v19, %v1272_v37  ;;  %v1801_v45 = vsel %vm1794_vm4, %v1798_v24, %v1800_v42 }
  0x1b   :  { %v1021_v46 = vrot.slane %v5191_v26, 1  ;;  %v1022_v47 = vrot.slane %v5188_v35, 2  ;;  %v8936_v50 = vmov 0.0   ;;  %v352_v53 = vor.u32 %v5120_v48, %v348_v32 }
  0x1c   :  { %1181 = vrot.lane.b32.xlu1 %v1016_v18, %s5003_s21  ;;  %v1549_v44 = vor.u32 %v1548_v40, %v1547_v39  ;;  %4511 = vmatprep.subr.bf16.mxu0 %v8936_v50  ;;  %v356_v54 = vrot.slane %v5147_v14, 1  ;;  %vm2726_vm6 = vcmask 1041408   ;;  %v744_v57 = vrot.slane %v5181_v17, 1 }
  0x1d   :  { %917 = vrot.lane.b32.xlu0 %v741_v20, %s4999_s15  ;;  %4857 = vmatprep.subr.bf16.mxu1 %v8936_v50  ;;  %v1023_v56 = vor.u32 %v1022_v47, %v1021_v46  ;;  %v5235_v58 = vshll.u32 %v5214_v49, 16  ;;  %v5238_v59 = vshrl.u32 %v5214_v49, 16  ;;  %v2728_v60 = vsel %vm2726_vm6, %v4894_v55, 0 }
  0x1e   :  { %4512 = vmatpush3.bf16.msra.mxu0 %v4891_v43  ;;  %v1550_v52 = vsel %vm1530_vm5, %v1545_v27, %v1549_v44  ;;  %4860 = vmatpush3.bf16.msra.mxu1 %v4891_v43  ;;  %v357_v48 = vsel %vm321_vm3, %v352_v53, %v356_v54  ;;  %vm5008_vm7 = vmmov 0   ;;  %v1274_v62 = vrot.slane %v5214_v49, 2 }
  0x1f   :  { %4513 = vmatprep.subr.bf16.mxu0 %v8936_v50  ;;  %4858 = vmatprep.subr.bf16.mxu1 %v8936_v50  ;;  %v1024_v61 = vsel %vm1000_vm2, %v1019_v22, %v1023_v56  ;;  %v745_v63 = vsel %vm8926_vm0, %v742_v33, %v744_v57  ;;  %v1551_v0 = vrot.slane %v5238_v59, 2  ;;  %v1552_v1 = vrot.slane %v5235_v58, 3 }
  0x20   :  { %1447 = vrot.lane.b32.xlu1 %v1271_v23, %s5001_s19  ;;  %4517 = vmatprep.mubr.msk.bf16.mxu0 %vm5008_vm7, %v8936_v50  ;;  %v1275_v2 = vsel %vm1264_vm1, %v1272_v37, %v1274_v62  ;;  %v1802_v3 = vrot.slane %v5214_v49, 3 }
  0x21   :  { %1348 = vrot.lane.b32.xlu0 %v1269_v25, %s5002_s20  ;;  %4641 = vmatprep.mubr.msk.bf16.mxu1 %vm5008_vm7, %v8936_v50 }
  0x22   :  { %4514 = vmatpush3.bf16.msra.mxu0 %v4893_v51  ;;  %4861 = vmatpush3.bf16.msra.mxu1 %v4893_v51 }
  0x23   :  { %4515 = vmatprep.subr.bf16.mxu0 %v8936_v50  ;;  %4859 = vmatprep.subr.bf16.mxu1 %v8936_v50 }
  0x24   :  { %1878 = vrot.lane.b32.xlu1 %v1799_v10, %s5005_s25 }
  0x25   :  { %1711 = vrot.lane.b32.xlu0 %v1546_v30, %s5006_s26 }
  0x26   :  { %4516 = vmatpush3.bf16.msra.mxu0 %v2728_v60  ;;  %4862 = vmatpush3.bf16.msra.mxu1 %v2728_v60 }
  0x28   :  { %820 = vrot.lane.b32.xlu1 %v741_v20, %s5000_s16 }
  0x29   :  { %653 = vrot.lane.b32.xlu0 %v349_v34, %s5004_s22 }
  0x2c   :  { %1183 = vrot.lane.b32.xlu1 %v1020_v36, %s5003_s21 }
  0x2d   :  { %919 = vrot.lane.b32.xlu0 %v743_v38, %s4999_s15 }
  0x30   :  { %1449 = vrot.lane.b32.xlu1 %v1273_v41, %s5001_s19 }
  0x31   :  { %1350 = vrot.lane.b32.xlu0 %v1271_v23, %s5002_s20 }
  0x34   :  { %1880 = vrot.lane.b32.xlu1 %v1801_v45, %s5005_s25 }
  0x35   :  { %1713 = vrot.lane.b32.xlu0 %v1550_v52, %s5006_s26 }
  0x38   :  { %822 = vrot.lane.b32.xlu1 %v743_v38, %s5000_s16 }
  0x39   :  { %655 = vrot.lane.b32.xlu0 %v357_v48, %s5004_s22 }
  0x3c   :  { %1185 = vrot.lane.b32.xlu1 %v1024_v61, %s5003_s21 }
  0x3d   :  { %921 = vrot.lane.b32.xlu0 %v745_v63, %s4999_s15 }
  0x3e   :  { %12 = vsyncpa [#allocation5], 0  ;;  %v1553_v6 = vor.u32 %v1552_v1, %v1551_v0  ;;  %v1803_v7 = vsel %vm1794_vm4, %v1800_v42, %v1802_v3  ;;  %v1025_v8 = vrot.slane %v5238_v59, 1  ;;  %v1026_v12 = vrot.slane %v5235_v58, 2  ;;  %v5268_v19 = vld [vmem:[%s8920_s0 + $0x38] sm:$0xff]   ;;  %v5302_v37 = vld [vmem:[%s8920_s0 + $0x40] sm:$0xff]  }
  0x3f   :  { %v360_v14 = vor.u32 %v5150_v16, %v356_v54  ;;  %v364_v18 = vrot.slane %v5188_v35, 1  ;;  %v746_v9 = vrot.slane %v5214_v49, 1  ;;  %v5275_v23 = vshll.u32 %v5268_v19, 16 }
  0x40   :  { %1451 = vrot.lane.b32.xlu1 %v1275_v2, %s5001_s19  ;;  %v1554_v13 = vsel %vm1530_vm5, %v1549_v44, %v1553_v6  ;;  %v1027_v20 = vor.u32 %v1026_v12, %v1025_v8  ;;  %v5278_v16 = vshrl.u32 %v5268_v19, 16  ;;  %v1276_v25 = vrot.slane %v5268_v19, 2 }
  0x41   :  { %1352 = vrot.lane.b32.xlu0 %v1273_v41, %s5002_s20  ;;  %v365_v21 = vsel %vm321_vm3, %v360_v14, %v364_v18  ;;  %v747_v27 = vsel %vm8926_vm0, %v744_v57, %v746_v9  ;;  %v1556_v28 = vrot.slane %v5275_v23, 3  ;;  %v1804_v30 = vrot.slane %v5268_v19, 3 }
  0x42   :  { %v1028_v24 = vsel %vm1000_vm2, %v1023_v56, %v1027_v20  ;;  %v1555_v10 = vrot.slane %v5278_v16, 2  ;;  %v1277_v29 = vsel %vm1264_vm1, %v1274_v62, %v1276_v25  ;;  %v1029_v22 = vrot.slane %v5278_v16, 1 }
  0x43   :  { %v1805_v32 = vsel %vm1794_vm4, %v1802_v3, %v1804_v30  ;;  %v1030_v33 = vrot.slane %v5275_v23, 2  ;;  %v368_v35 = vor.u32 %v5191_v26, %v364_v18  ;;  %v372_v36 = vrot.slane %v5235_v58, 1  ;;  %v5336_v58 = vld [vmem:[%s8920_s0 + $0x48] sm:$0xff]  }
  0x44   :  { %1882 = vrot.lane.b32.xlu1 %v1803_v7, %s5005_s25  ;;  %v1557_v31 = vor.u32 %v1556_v28, %v1555_v10  ;;  %v748_v40 = vrot.slane %v5268_v19, 1  ;;  %v5309_v41 = vshll.u32 %v5302_v37, 16  ;;  %v5312_v26 = vshrl.u32 %v5302_v37, 16 }
  0x45   :  { %1715 = vrot.lane.b32.xlu0 %v1554_v13, %s5006_s26  ;;  %v1031_v38 = vor.u32 %v1030_v33, %v1029_v22  ;;  %v373_v39 = vsel %vm321_vm3, %v368_v35, %v372_v36  ;;  %v1278_v43 = vrot.slane %v5302_v37, 2  ;;  %v1806_v51 = vrot.slane %v5302_v37, 3 }
  0x46   :  { %v1558_v34 = vsel %vm1530_vm5, %v1553_v6, %v1557_v31  ;;  %v749_v44 = vsel %vm8926_vm0, %v746_v9, %v748_v40  ;;  %v1559_v45 = vrot.slane %v5312_v26, 2  ;;  %v1560_v46 = vrot.slane %v5309_v41, 3 }
  0x47   :  { %v1032_v42 = vsel %vm1000_vm2, %v1027_v20, %v1031_v38  ;;  %v1279_v47 = vsel %vm1264_vm1, %v1276_v25, %v1278_v43  ;;  %v1807_v53 = vsel %vm1794_vm4, %v1804_v30, %v1806_v51  ;;  %v1033_v54 = vrot.slane %v5312_v26, 1 }
  0x48   :  { %824 = vrot.lane.b32.xlu1 %v745_v63, %s5000_s16  ;;  %v1561_v52 = vor.u32 %v1560_v46, %v1559_v45  ;;  %v1034_v55 = vrot.slane %v5309_v41, 2  ;;  %v376_v57 = vor.u32 %v5238_v59, %v372_v36  ;;  %v380_v48 = vrot.slane %v5275_v23, 1  ;;  %v5370_v23 = vld [vmem:[%s8920_s0 + $0x50] sm:$0xff]  }
  0x49   :  { %657 = vrot.lane.b32.xlu0 %v365_v21, %s5004_s22  ;;  %v750_v62 = vrot.slane %v5302_v37, 1  ;;  %v5343_v63 = vshll.u32 %v5336_v58, 16  ;;  %v5346_v59 = vshrl.u32 %v5336_v58, 16  ;;  %v1280_v1 = vrot.slane %v5336_v58, 2 }
  0x4a   :  { %v1562_v56 = vsel %vm1530_vm5, %v1557_v31, %v1561_v52  ;;  %v1035_v60 = vor.u32 %v1034_v55, %v1033_v54  ;;  %v381_v61 = vsel %vm321_vm3, %v376_v57, %v380_v48  ;;  %v1808_v8 = vrot.slane %v5336_v58, 3 }
  0x4b   :  { %v1563_v3 = vrot.slane %v5346_v59, 2  ;;  %v1564_v6 = vrot.slane %v5343_v63, 3  ;;  %v1281_v7 = vsel %vm1264_vm1, %v1278_v43, %v1280_v1  ;;  %v1037_v14 = vrot.slane %v5346_v59, 1 }
  0x4c   :  { %1187 = vrot.lane.b32.xlu1 %v1028_v24, %s5003_s21  ;;  %v1036_v0 = vsel %vm1000_vm2, %v1031_v38, %v1035_v60  ;;  %v1809_v13 = vsel %vm1794_vm4, %v1806_v51, %v1808_v8  ;;  %v1038_v18 = vrot.slane %v5343_v63, 2  ;;  %v384_v21 = vor.u32 %v5278_v16, %v380_v48 }
  0x4d   :  { %923 = vrot.lane.b32.xlu0 %v747_v27, %s4999_s15  ;;  %v1565_v12 = vor.u32 %v1564_v6, %v1563_v3  ;;  %v388_v9 = vrot.slane %v5309_v41, 1  ;;  %v5377_v10 = vshll.u32 %v5370_v23, 16  ;;  %v5380_v16 = vshrl.u32 %v5370_v23, 16 }
  0x4e   :  { %v1039_v24 = vor.u32 %v1038_v18, %v1037_v14  ;;  %v1810_v35 = vrot.slane %v5370_v23, 3  ;;  %vm1958_vm8 = vcmask 31744   ;;  %v396_v45 = vrot.slane %v5343_v63, 1 }
  0x4f   :  { %v1566_v20 = vsel %vm1530_vm5, %v1561_v52, %v1565_v12  ;;  %v389_v25 = vsel %vm321_vm3, %v384_v21, %v388_v9  ;;  %v1567_v22 = vrot.slane %v5380_v16, 2  ;;  %v1568_v33 = vrot.slane %v5377_v10, 3 }
  0x50   :  { %1453 = vrot.lane.b32.xlu1 %v1277_v29, %s5001_s19  ;;  %v1040_v28 = vsel %vm1000_vm2, %v1035_v60, %v1039_v24  ;;  %v1041_v41 = vrot.slane %v5380_v16, 1  ;;  %vm2042_vm9 = vcmask 64512   ;;  %vm2125_vm10 = vcmask 97280  }
  0x51   :  { %1354 = vrot.lane.b32.xlu0 %v1275_v2, %s5002_s20  ;;  %v751_v2 = vsel %vm8926_vm0, %v748_v40, %v750_v62  ;;  %v1811_v40 = vsel %vm1794_vm4, %v1808_v8, %v1810_v35  ;;  %vm2208_vm11 = vcmask 130048   ;;  %vm2291_vm12 = vcmask 162816  }
  0x52   :  { %vm8927_vm13 = vcmask 195584   ;;  %v754_v57 = vrot.slane %v5370_v23, 1  ;;  %vm2457_vm14 = vcmask 228352   ;;  %vm2540_vm15 = vcmask 261120  }
  0x53   :  { %vm2643_vm6 = vcmask 293888  }
  0x54   :  { %1884 = vrot.lane.b32.xlu1 %v1805_v32, %s5005_s25 }
  0x55   :  { %1717 = vrot.lane.b32.xlu0 %v1558_v34, %s5006_s26 }
  0x58   :  { %826 = vrot.lane.b32.xlu1 %v747_v27, %s5000_s16  ;;  %v752_v27 = vrot.slane %v5336_v58, 1 }
  0x59   :  { %659 = vrot.lane.b32.xlu0 %v373_v39, %s5004_s22  ;;  %v5397_v39 = vor.u32 %v1568_v33, %v1567_v22  ;;  %v404_v22 = vrot.slane %v5377_v10, 1  ;;  %v5475_v33 = vld [vmem:[%s8920_s0 + $0x60] sm:$0xff]  }
  0x5a   :  { %v753_v32 = vsel %vm8926_vm0, %v750_v62, %v752_v27  ;;  %v755_v6 = vsel %vm8926_vm0, %v752_v27, %v754_v57 }
  0x5b   :  { %v1570_v46 = vsel %vm1530_vm5, %v1565_v12, %v5397_v39 }
  0x5c   :  { %1189 = vrot.lane.b32.xlu1 %v1032_v42, %s5003_s21  ;;  %v1042_v42 = vrot.slane %v5377_v10, 2 }
  0x5d   :  { %925 = vrot.lane.b32.xlu0 %v749_v44, %s4999_s15 }
  0x60   :  { %1455 = vrot.lane.b32.xlu1 %v1279_v47, %s5001_s19 }
  0x61   :  { %1356 = vrot.lane.b32.xlu0 %v1277_v29, %s5002_s20  ;;  %v1282_v29 = vrot.slane %v5370_v23, 2 }
  0x63   :  { %v5393_v34 = vsel %vm1264_vm1, %v1280_v1, %v1282_v29 }
  0x64   :  { %1886 = vrot.lane.b32.xlu1 %v1807_v53, %s5005_s25 }
  0x65   :  { %1719 = vrot.lane.b32.xlu0 %v1562_v56, %s5006_s26 }
  0x68   :  { %828 = vrot.lane.b32.xlu1 %v749_v44, %s5000_s16  ;;  %v392_v44 = vor.u32 %v5312_v26, %v388_v9  ;;  %v5419_v26 = vor.u32 %v1042_v42, %v1041_v41  ;;  %v5487_v41 = vshrl.u32 %v5475_v33, 16 }
  0x69   :  { %661 = vrot.lane.b32.xlu0 %v381_v61, %s5004_s22 }
  0x6a   :  { %v397_v55 = vsel %vm321_vm3, %v392_v44, %v396_v45  ;;  %v1044_v63 = vsel %vm1000_vm2, %v1039_v24, %v5419_v26 }
  0x6c   :  { %1191 = vrot.lane.b32.xlu1 %v1036_v0, %s5003_s21 }
  0x6d   :  { %927 = vrot.lane.b32.xlu0 %v751_v2, %s4999_s15 }
  0x70   :  { %1457 = vrot.lane.b32.xlu1 %v1281_v7, %s5001_s19 }
  0x71   :  { %1358 = vrot.lane.b32.xlu0 %v1279_v47, %s5002_s20  ;;  %v5414_v47 = vld [vmem:[%s8920_s0 + $0x58] sm:$0xff]  }
  0x72   :  { %v5427_v48 = vshll.u32 %v5414_v47, 16  ;;  %v1284_v0 = vrot.slane %v5414_v47, 2  ;;  %v756_v10 = vrot.slane %v5414_v47, 1 }
  0x74   :  { %1888 = vrot.lane.b32.xlu1 %v1809_v13, %s5005_s25  ;;  %v1572_v8 = vrot.slane %v5427_v48, 3  ;;  %v1285_v18 = vsel %vm1264_vm1, %v1282_v29, %v1284_v0  ;;  %v1046_v29 = vrot.slane %v5427_v48, 2 }
  0x75   :  { %1721 = vrot.lane.b32.xlu0 %v1566_v20, %s5006_s26  ;;  %v1812_v20 = vrot.slane %v5414_v47, 3 }
  0x77   :  { %v1813_v27 = vsel %vm1794_vm4, %v1810_v35, %v1812_v20 }
  0x78   :  { %830 = vrot.lane.b32.xlu1 %v751_v2, %s5000_s16 }
  0x79   :  { %663 = vrot.lane.b32.xlu0 %v389_v25, %s5004_s22 }
  0x7a   :  { %v916_v30 = vpop.permute.xlu1 %915 }
  0x7b   :  { %v817_v31 = vpop.permute.xlu0 %816 }
  0x7c   :  { %1193 = vrot.lane.b32.xlu1 %v1040_v28, %s5003_s21 }
  0x7d   :  { %929 = vrot.lane.b32.xlu0 %v753_v32, %s4999_s15 }
  0x7e   :  { %v1446_v36 = vpop.permute.xlu1 %1445 }
  0x7f   :  { %v1347_v38 = vpop.permute.xlu0 %1346 }
  0x80   :  { %1459 = vrot.lane.b32.xlu1 %v5393_v34, %s5001_s19 }
  0x81   :  { %1360 = vrot.lane.b32.xlu0 %v1281_v7, %s5002_s20 }
  0x82   :  { %v1180_v43 = vpop.permute.xlu1 %1179 }
  0x83   :  { %v650_v51 = vpop.permute.xlu0 %649 }
  0x84   :  { %1890 = vrot.lane.b32.xlu1 %v1811_v40, %s5005_s25  ;;  %v1960_v52 = vsel %vm1958_vm8, %v5078_v15, %v650_v51  ;;  %v5430_v15 = vshrl.u32 %v5414_v47, 16  ;;  %v5484_v40 = vshll.u32 %v5475_v33, 16 }
  0x85   :  { %v2044_v53 = vsel %vm2042_vm9, %v1960_v52, %v817_v31  ;;  %1723 = vrot.lane.b32.xlu0 %v1570_v46, %s5006_s26  ;;  %v1286_v46 = vrot.slane %v5475_v33, 2 }
  0x86   :  { %v1877_v54 = vpop.permute.xlu1 %1876  ;;  %v2127_v56 = vsel %vm2125_vm10, %v2044_v53, %v916_v30  ;;  %v1571_v7 = vrot.slane %v5430_v15, 2  ;;  %v1045_v28 = vrot.slane %v5430_v15, 1  ;;  %v757_v53 = vsel %vm8926_vm0, %v754_v57, %v756_v10 }
  0x87   :  { %v2210_v60 = vsel %vm2208_vm11, %v2127_v56, %v1180_v43  ;;  %v1710_v61 = vpop.permute.xlu0 %1709 }
  0x88   :  { %832 = vrot.lane.b32.xlu1 %v753_v32, %s5000_s16  ;;  %v2293_v62 = vsel %vm2291_vm12, %v2210_v60, %v1347_v38  ;;  %v1573_v9 = vor.u32 %v1572_v8, %v1571_v7  ;;  %v400_v32 = vor.u32 %v5346_v59, %v396_v45  ;;  %v1047_v38 = vor.u32 %v1046_v29, %v1045_v28 }
  0x89   :  { %v2376_v1 = vsel %vm8927_vm13, %v2293_v62, %v1446_v36  ;;  %665 = vrot.lane.b32.xlu0 %v397_v55, %s5004_s22  ;;  %v1576_v55 = vrot.slane %v5484_v40, 3  ;;  %v1287_v60 = vsel %vm1264_vm1, %v1284_v0, %v1286_v46  ;;  %v408_v8 = vor.u32 %v5380_v16, %v404_v22 }
  0x8a   :  { %v819_v2 = vpop.permute.xlu1 %818  ;;  %v2459_v3 = vsel %vm2457_vm14, %v2376_v1, %v1710_v61  ;;  %v1574_v31 = vsel %vm1530_vm5, %v5397_v39, %v1573_v9  ;;  %v405_v59 = vsel %vm321_vm3, %v400_v32, %v404_v22  ;;  %v1048_v45 = vsel %vm1000_vm2, %v5419_v26, %v1047_v38 }
  0x8b   :  { %v652_v12 = vpop.permute.xlu0 %651  ;;  %v2542_v13 = vsel %vm2540_vm15, %v2459_v3, %v1877_v54  ;;  %v1575_v54 = vrot.slane %v5487_v41, 2  ;;  %v1814_v61 = vrot.slane %v5475_v33, 3 }
  0x8c   :  { %1195 = vrot.lane.b32.xlu1 %v1044_v63, %s5003_s21  ;;  %v1962_v14 = vsel %vm1958_vm8, %v5073_v11, %v652_v12  ;;  %4518 = vmatmul.mubr.msk.bf16.vlgmr.msra.gmra.mrb[0].mxu0 %vm2643_vm6, %v2542_v13  ;;  %v412_v12 = vrot.slane %v5427_v48, 1  ;;  %v5524_v13 = vld [vmem:[%s8920_s0 + $0x68] sm:$0xff]   ;;  %v758_v48 = vrot.slane %v5475_v33, 1 }
  0x8d   :  { %931 = vrot.lane.b32.xlu0 %v755_v6, %s4999_s15  ;;  %4521 = vmatprep.mubr.msk.bf16.mxu0 %vm5008_vm7, %v8936_v50  ;;  %v2046_v24 = vsel %vm2042_vm9, %v1962_v14, %v819_v2  ;;  %v1577_v62 = vor.u32 %v1576_v55, %v1575_v54  ;;  %v1815_v3 = vsel %vm1794_vm4, %v1812_v20, %v1814_v61 }
  0x8e   :  { %v1182_v21 = vpop.permute.xlu1 %1181  ;;  %v413_v16 = vsel %vm321_vm3, %v408_v8, %v412_v12  ;;  %v759_v22 = vsel %vm8926_vm0, %v756_v10, %v758_v48  ;;  %v1816_v10 = vrot.slane %v5524_v13, 3 }
  0x8f   :  { %v918_v25 = vpop.permute.xlu0 %917  ;;  %v1578_v7 = vsel %vm1530_vm5, %v1573_v9, %v1577_v62 }
  0x90   :  { %1461 = vrot.lane.b32.xlu1 %v1285_v18, %s5001_s19  ;;  %v2129_v11 = vsel %vm2125_vm10, %v2046_v24, %v918_v25  ;;  %v5533_v24 = vshll.u32 %v5524_v13, 16  ;;  %v5536_v25 = vshrl.u32 %v5524_v13, 16 }
  0x91   :  { %1362 = vrot.lane.b32.xlu0 %v5393_v34, %s5002_s20  ;;  %v2212_v35 = vsel %vm2208_vm11, %v2129_v11, %v1182_v21 }
  0x92   :  { %v1448_v30 = vpop.permute.xlu1 %1447  ;;  %v1054_v54 = vrot.slane %v5533_v24, 2 }
  0x93   :  { %v1349_v36 = vpop.permute.xlu0 %1348 }
  0x94   :  { %1892 = vrot.lane.b32.xlu1 %v1813_v27, %s5005_s25  ;;  %v2295_v34 = vsel %vm2291_vm12, %v2212_v35, %v1349_v36  ;;  %v1579_v35 = vrot.slane %v5536_v25, 2  ;;  %v1580_v36 = vrot.slane %v5533_v24, 3 }
  0x95   :  { %1725 = vrot.lane.b32.xlu0 %v1574_v31, %s5006_s26  ;;  %v2378_v42 = vsel %vm8927_vm13, %v2295_v34, %v1448_v30  ;;  %v1288_v30 = vrot.slane %v5524_v13, 2 }
  0x96   :  { %v1879_v39 = vpop.permute.xlu1 %1878 }
  0x97   :  { %v1712_v43 = vpop.permute.xlu0 %1711 }
  0x98   :  { %834 = vrot.lane.b32.xlu1 %v755_v6, %s5000_s16  ;;  %v2461_v44 = vsel %vm2457_vm14, %v2378_v42, %v1712_v43  ;;  %v1049_v6 = vrot.slane %v5487_v41, 1  ;;  %v1581_v43 = vor.u32 %v1580_v36, %v1579_v35 }
  0x99   :  { %667 = vrot.lane.b32.xlu0 %v405_v59, %s5004_s22  ;;  %v2544_v51 = vsel %vm2540_vm15, %v2461_v44, %v1879_v39  ;;  %v1289_v59 = vsel %vm1264_vm1, %v1286_v46, %v1288_v30 }
  0x9a   :  { %v821_v52 = vpop.permute.xlu1 %820  ;;  %4522 = vmatmul.mubr.msk.bf16.gmra.mrb[4].mxu0 %vm2643_vm6, %v2544_v51  ;;  %v1582_v55 = vsel %vm1530_vm5, %v1577_v62, %v1581_v43 }
  0x9b   :  { %v654_v56 = vpop.permute.xlu0 %653  ;;  %4525 = vmatprep.mubr.msk.bf16.mxu0 %vm5008_vm7, %v8936_v50 }
  0x9c   :  { %1197 = vrot.lane.b32.xlu1 %v1048_v45, %s5003_s21  ;;  %v1964_v26 = vsel %vm1958_vm8, %v5054_v4, %v654_v56  ;;  %v1050_v4 = vrot.slane %v5484_v40, 2  ;;  %v416_v56 = vor.u32 %v5430_v15, %v412_v12 }
  0x9d   :  { %933 = vrot.lane.b32.xlu0 %v757_v53, %s4999_s15  ;;  %v2048_v63 = vsel %vm2042_vm9, %v1964_v26, %v821_v52  ;;  %v1817_v52 = vsel %vm1794_vm4, %v1814_v61, %v1816_v10  ;;  %v420_v26 = vrot.slane %v5484_v40, 1  ;;  %v760_v40 = vrot.slane %v5524_v13, 1 }
  0x9e   :  { %v1184_v57 = vpop.permute.xlu1 %1183 }
  0x9f   :  { %v920_v1 = vpop.permute.xlu0 %919  ;;  %v421_v15 = vsel %vm321_vm3, %v416_v56, %v420_v26 }
  0xa0   :  { %1463 = vrot.lane.b32.xlu1 %v1287_v60, %s5001_s19  ;;  %v2131_v2 = vsel %vm2125_vm10, %v2048_v63, %v920_v1 }
  0xa1   :  { %1364 = vrot.lane.b32.xlu0 %v1285_v18, %s5002_s20  ;;  %v2214_v14 = vsel %vm2208_vm11, %v2131_v2, %v1184_v57  ;;  %v1051_v18 = vor.u32 %v1050_v4, %v1049_v6  ;;  %v5572_v57 = vld [vmem:[%s8920_s0 + $0x70] sm:$0xff]  }
  0xa2   :  { %v1450_v0 = vpop.permute.xlu1 %1449  ;;  %v5581_v2 = vshll.u32 %v5572_v57, 16  ;;  %v1290_v8 = vrot.slane %v5572_v57, 2 }
  0xa3   :  { %v1351_v20 = vpop.permute.xlu0 %1350  ;;  %v1052_v29 = vsel %vm1000_vm2, %v1047_v38, %v1051_v18  ;;  %v4928_v38 = vld [vmem:[%s8920_s0 + $0x18] sm:$0xff]  }
  0xa4   :  { %1894 = vrot.lane.b32.xlu1 %v1815_v3, %s5005_s25  ;;  %v2297_v21 = vsel %vm2291_vm12, %v2214_v14, %v1351_v20  ;;  %v5584_v3 = vshrl.u32 %v5572_v57, 16  ;;  %v761_v20 = vsel %vm8926_vm0, %v758_v48, %v760_v40 }
  0xa5   :  { %1727 = vrot.lane.b32.xlu0 %v1578_v7, %s5006_s26  ;;  %v2380_v11 = vsel %vm8927_vm13, %v2297_v21, %v1450_v0 }
  0xa6   :  { %v1881_v9 = vpop.permute.xlu1 %1880  ;;  %v1583_v21 = vrot.slane %v5584_v3, 2  ;;  %v1057_v35 = vrot.slane %v5584_v3, 1 }
  0xa7   :  { %v1714_v27 = vpop.permute.xlu0 %1713 }
  0xa8   :  { %836 = vrot.lane.b32.xlu1 %v757_v53, %s5000_s16  ;;  %v2463_v28 = vsel %vm2457_vm14, %v2380_v11, %v1714_v27  ;;  %v1053_v53 = vrot.slane %v5536_v25, 1  ;;  %v1291_v11 = vsel %vm1264_vm1, %v1288_v30, %v1290_v8  ;;  %v1818_v27 = vrot.slane %v5572_v57, 3 }
  0xa9   :  { %669 = vrot.lane.b32.xlu0 %v413_v16, %s5004_s22  ;;  %v2546_v31 = vsel %vm2540_vm15, %v2463_v28, %v1881_v9  ;;  %v1584_v9 = vrot.slane %v5581_v2, 3 }
  0xaa   :  { %v823_v32 = vpop.permute.xlu1 %822  ;;  %4526 = vmatmul.mubr.msk.bf16.gmra.mrb[8].mxu0 %vm2643_vm6, %v2546_v31 }
  0xab   :  { %v656_v34 = vpop.permute.xlu0 %655  ;;  %4529 = vmatprep.mubr.msk.bf16.mxu0 %vm5008_vm7, %v8936_v50  ;;  %v1585_v28 = vor.u32 %v1584_v9, %v1583_v21 }
  0xac   :  { %1199 = vrot.lane.b32.xlu1 %v1052_v29, %s5003_s21  ;;  %v1966_v39 = vsel %vm1958_vm8, %v4928_v38, %v656_v34  ;;  %v424_v34 = vor.u32 %v5487_v41, %v420_v26  ;;  %v428_v38 = vrot.slane %v5533_v24, 1  ;;  %v762_v24 = vrot.slane %v5572_v57, 1 }
  0xad   :  { %935 = vrot.lane.b32.xlu0 %v759_v22, %s4999_s15  ;;  %v2050_v44 = vsel %vm2042_vm9, %v1966_v39, %v823_v32  ;;  %v1586_v36 = vsel %vm1530_vm5, %v1581_v43, %v1585_v28  ;;  %v5618_v39 = vld [vmem:[%s8920_s0 + $0x78] sm:$0xff]  }
  0xae   :  { %v1186_v42 = vpop.permute.xlu1 %1185  ;;  %v429_v41 = vsel %vm321_vm3, %v424_v34, %v428_v38  ;;  %v432_v9 = vor.u32 %v5536_v25, %v428_v38 }
  0xaf   :  { %v922_v45 = vpop.permute.xlu0 %921 }
  0xb0   :  { %1465 = vrot.lane.b32.xlu1 %v1289_v59, %s5001_s19  ;;  %v2133_v51 = vsel %vm2125_vm10, %v2050_v44, %v922_v45  ;;  %v5627_v45 = vshll.u32 %v5618_v39, 16 }
  0xb1   :  { %1366 = vrot.lane.b32.xlu0 %v1287_v60, %s5002_s20  ;;  %v2216_v61 = vsel %vm2208_vm11, %v2133_v51, %v1186_v42  ;;  %v1055_v60 = vor.u32 %v1054_v54, %v1053_v53  ;;  %v5630_v51 = vshrl.u32 %v5618_v39, 16 }
  0xb2   :  { %v1452_v46 = vpop.permute.xlu1 %1451 }
  0xb3   :  { %v1353_v63 = vpop.permute.xlu0 %1352  ;;  %v1056_v7 = vsel %vm1000_vm2, %v1051_v18, %v1055_v60 }
  0xb4   :  { %1896 = vrot.lane.b32.xlu1 %v1817_v52, %s5005_s25  ;;  %v2299_v1 = vsel %vm2291_vm12, %v2216_v61, %v1353_v63  ;;  %v763_v61 = vsel %vm8926_vm0, %v760_v40, %v762_v24  ;;  %v1587_v63 = vrot.slane %v5630_v51, 2 }
  0xb5   :  { %1729 = vrot.lane.b32.xlu0 %v1582_v55, %s5006_s26  ;;  %v2382_v6 = vsel %vm8927_vm13, %v2299_v1, %v1452_v46  ;;  %v1292_v55 = vrot.slane %v5618_v39, 2  ;;  %v1588_v1 = vrot.slane %v5627_v45, 3 }
  0xb6   :  { %v1883_v62 = vpop.permute.xlu1 %1882 }
  0xb7   :  { %v1716_v4 = vpop.permute.xlu0 %1715 }
  0xb8   :  { %838 = vrot.lane.b32.xlu1 %v759_v22, %s5000_s16  ;;  %v2465_v0 = vsel %vm2457_vm14, %v2382_v6, %v1716_v4  ;;  %v1819_v22 = vsel %vm1794_vm4, %v1816_v10, %v1818_v27  ;;  %v1820_v6 = vrot.slane %v5618_v39, 3  ;;  %v1589_v4 = vor.u32 %v1588_v1, %v1587_v63 }
  0xb9   :  { %671 = vrot.lane.b32.xlu0 %v421_v15, %s5004_s22  ;;  %v2548_v12 = vsel %vm2540_vm15, %v2465_v0, %v1883_v62  ;;  %v1293_v15 = vsel %vm1264_vm1, %v1290_v8, %v1292_v55 }
  0xba   :  { %v825_v14 = vpop.permute.xlu1 %824  ;;  %4530 = vmatmul.mubr.msk.bf16.gmra.mrb[12].mxu0 %vm2643_vm6, %v2548_v12  ;;  %v1590_v21 = vsel %vm1530_vm5, %v1585_v28, %v1589_v4 }
  0xbb   :  { %v658_v16 = vpop.permute.xlu0 %657  ;;  %4533 = vmatprep.mubr.msk.bf16.mxu0 %vm5008_vm7, %v8936_v50 }
  0xbc   :  { %1201 = vrot.lane.b32.xlu1 %v1056_v7, %s5003_s21  ;;  %v1968_v18 = vsel %vm1958_vm8, %v5135_v5, %v658_v16  ;;  %v1058_v5 = vrot.slane %v5581_v2, 2  ;;  %v436_v16 = vrot.slane %v5581_v2, 1  ;;  %v764_v2 = vrot.slane %v5618_v39, 1 }
  0xbd   :  { %937 = vrot.lane.b32.xlu0 %v761_v20, %s4999_s15  ;;  %v2052_v29 = vsel %vm2042_vm9, %v1968_v18, %v825_v14  ;;  %v1821_v14 = vsel %vm1794_vm4, %v1818_v27, %v1820_v6  ;;  %v5664_v18 = vld [vmem:[%s8920_s0 + $0x80] sm:$0xff]  }
  0xbe   :  { %v1188_v48 = vpop.permute.xlu1 %1187  ;;  %v437_v25 = vsel %vm321_vm3, %v432_v9, %v436_v16  ;;  %v440_v1 = vor.u32 %v5584_v3, %v436_v16 }
  0xbf   :  { %v924_v31 = vpop.permute.xlu0 %923 }
  0xc0   :  { %1467 = vrot.lane.b32.xlu1 %v1291_v11, %s5001_s19  ;;  %v2135_v32 = vsel %vm2125_vm10, %v2052_v29, %v924_v31  ;;  %v5673_v31 = vshll.u32 %v5664_v18, 16 }
  0xc1   :  { %1368 = vrot.lane.b32.xlu0 %v1289_v59, %s5002_s20  ;;  %v2218_v10 = vsel %vm2208_vm11, %v2135_v32, %v1188_v48  ;;  %v1059_v59 = vor.u32 %v1058_v5, %v1057_v35  ;;  %v5676_v32 = vshrl.u32 %v5664_v18, 16 }
  0xc2   :  { %v1454_v30 = vpop.permute.xlu1 %1453 }
  0xc3   :  { %v1355_v42 = vpop.permute.xlu0 %1354  ;;  %v1060_v46 = vsel %vm1000_vm2, %v1055_v60, %v1059_v59 }
  0xc4   :  { %1898 = vrot.lane.b32.xlu1 %v1819_v22, %s5005_s25  ;;  %v2301_v44 = vsel %vm2291_vm12, %v2218_v10, %v1355_v42  ;;  %v765_v10 = vsel %vm8926_vm0, %v762_v24, %v764_v2  ;;  %v1591_v42 = vrot.slane %v5676_v32, 2 }
  0xc5   :  { %1731 = vrot.lane.b32.xlu0 %v1586_v36, %s5006_s26  ;;  %v2384_v52 = vsel %vm8927_vm13, %v2301_v44, %v1454_v30  ;;  %v1294_v36 = vrot.slane %v5664_v18, 2  ;;  %v1592_v44 = vrot.slane %v5673_v31, 3 }
  0xc6   :  { %v1885_v43 = vpop.permute.xlu1 %1884 }
  0xc7   :  { %v1718_v53 = vpop.permute.xlu0 %1717 }
  0xc8   :  { %840 = vrot.lane.b32.xlu1 %v761_v20, %s5000_s16  ;;  %v2467_v54 = vsel %vm2457_vm14, %v2384_v52, %v1718_v53  ;;  %v1061_v20 = vrot.slane %v5630_v51, 1  ;;  %v1822_v52 = vrot.slane %v5664_v18, 3  ;;  %v1593_v53 = vor.u32 %v1592_v44, %v1591_v42 }
  0xc9   :  { %673 = vrot.lane.b32.xlu0 %v429_v41, %s5004_s22  ;;  %v2550_v56 = vsel %vm2540_vm15, %v2467_v54, %v1885_v43  ;;  %v1295_v41 = vsel %vm1264_vm1, %v1292_v55, %v1294_v36  ;;  %v452_v44 = vrot.slane %v5673_v31, 1 }
  0xca   :  { %v827_v26 = vpop.permute.xlu1 %826  ;;  %4534 = vmatmul.mubr.msk.bf16.gmra.mrb[16].mxu0 %vm2643_vm6, %v2550_v56  ;;  %v1594_v63 = vsel %vm1530_vm5, %v1589_v4, %v1593_v53 }
  0xcb   :  { %v660_v62 = vpop.permute.xlu0 %659  ;;  %4537 = vmatprep.mubr.msk.bf16.mxu0 %vm5008_vm7, %v8936_v50 }
  0xcc   :  { %1203 = vrot.lane.b32.xlu1 %v1060_v46, %s5003_s21  ;;  %v1970_v60 = vsel %vm1958_vm8, %v5181_v17, %v660_v62  ;;  %v1062_v17 = vrot.slane %v5627_v45, 2  ;;  %v444_v62 = vrot.slane %v5627_v45, 1  ;;  %v766_v45 = vrot.slane %v5664_v18, 1 }
  0xcd   :  { %939 = vrot.lane.b32.xlu0 %v763_v61, %s4999_s15  ;;  %v2054_v0 = vsel %vm2042_vm9, %v1970_v60, %v827_v26  ;;  %v1823_v26 = vsel %vm1794_vm4, %v1820_v6, %v1822_v52  ;;  %v5710_v60 = vld [vmem:[%s8920_s0 + $0x88] sm:$0xff]  }
  0xce   :  { %v1190_v40 = vpop.permute.xlu1 %1189  ;;  %v445_v3 = vsel %vm321_vm3, %v440_v1, %v444_v62  ;;  %v767_v18 = vsel %vm8926_vm0, %v764_v2, %v766_v45  ;;  %v448_v42 = vor.u32 %v5630_v51, %v444_v62 }
  0xcf   :  { %v926_v7 = vpop.permute.xlu0 %925 }
  0xd0   :  { %1469 = vrot.lane.b32.xlu1 %v1293_v15, %s5001_s19  ;;  %v2137_v12 = vsel %vm2125_vm10, %v2054_v0, %v926_v7  ;;  %v5719_v7 = vshll.u32 %v5710_v60, 16  ;;  %v453_v51 = vsel %vm321_vm3, %v448_v42, %v452_v44 }
  0xd1   :  { %1370 = vrot.lane.b32.xlu0 %v1291_v11, %s5002_s20  ;;  %v2220_v27 = vsel %vm2208_vm11, %v2137_v12, %v1190_v40  ;;  %v1063_v11 = vor.u32 %v1062_v17, %v1061_v20  ;;  %v5722_v12 = vshrl.u32 %v5710_v60, 16 }
  0xd2   :  { %v1456_v8 = vpop.permute.xlu1 %1455 }
  0xd3   :  { %v1357_v48 = vpop.permute.xlu0 %1356  ;;  %v1064_v30 = vsel %vm1000_vm2, %v1059_v59, %v1063_v11 }
  0xd4   :  { %1900 = vrot.lane.b32.xlu1 %v1821_v14, %s5005_s25  ;;  %v2303_v29 = vsel %vm2291_vm12, %v2220_v27, %v1357_v48  ;;  %v1595_v27 = vrot.slane %v5722_v12, 2  ;;  %v1596_v48 = vrot.slane %v5719_v7, 3 }
  0xd5   :  { %1733 = vrot.lane.b32.xlu0 %v1590_v21, %s5006_s26  ;;  %v2386_v22 = vsel %vm8927_vm13, %v2303_v29, %v1456_v8  ;;  %v1296_v21 = vrot.slane %v5710_v60, 2 }
  0xd6   :  { %v1887_v28 = vpop.permute.xlu1 %1886 }
  0xd7   :  { %v1720_v35 = vpop.permute.xlu0 %1719 }
  0xd8   :  { %842 = vrot.lane.b32.xlu1 %v763_v61, %s5000_s16  ;;  %v2469_v5 = vsel %vm2457_vm14, %v2386_v22, %v1720_v35  ;;  %v1065_v61 = vrot.slane %v5676_v32, 1  ;;  %v1597_v22 = vor.u32 %v1596_v48, %v1595_v27  ;;  %v460_v27 = vrot.slane %v5719_v7, 1  ;;  %v5802_v48 = vld [vmem:[%s8920_s0 + $0x98] sm:$0xff]  }
  0xd9   :  { %675 = vrot.lane.b32.xlu0 %v437_v25, %s5004_s22  ;;  %v2552_v34 = vsel %vm2540_vm15, %v2469_v5, %v1887_v28  ;;  %v1297_v28 = vsel %vm1264_vm1, %v1294_v36, %v1296_v21  ;;  %v1824_v25 = vrot.slane %v5710_v60, 3 }
  0xda   :  { %v829_v38 = vpop.permute.xlu1 %828  ;;  %4538 = vmatmul.mubr.msk.bf16.gmra.mrb[20].mxu0 %vm2643_vm6, %v2552_v34 }
  0xdb   :  { %v662_v43 = vpop.permute.xlu0 %661  ;;  %4541 = vmatprep.mubr.msk.bf16.mxu0 %vm5008_vm7, %v8936_v50  ;;  %v1825_v34 = vsel %vm1794_vm4, %v1822_v52, %v1824_v25 }
  0xdc   :  { %1205 = vrot.lane.b32.xlu1 %v1064_v30, %s5003_s21  ;;  %v1972_v59 = vsel %vm1958_vm8, %v5214_v49, %v662_v43  ;;  %v1066_v49 = vrot.slane %v5673_v31, 2  ;;  %v5756_v43 = vld [vmem:[%s8920_s0 + $0x90] sm:$0xff]   ;;  %v768_v31 = vrot.slane %v5710_v60, 1 }
  0xdd   :  { %941 = vrot.lane.b32.xlu0 %v765_v10, %s4999_s15  ;;  %v2056_v54 = vsel %vm2042_vm9, %v1972_v59, %v829_v38  ;;  %v1069_v38 = vrot.slane %v5722_v12, 1 }
  0xde   :  { %v1192_v24 = vpop.permute.xlu1 %1191  ;;  %v769_v62 = vsel %vm8926_vm0, %v766_v45, %v768_v31 }
  0xdf   :  { %v928_v46 = vpop.permute.xlu0 %927 }
  0xe0   :  { %1471 = vrot.lane.b32.xlu1 %v1295_v41, %s5001_s19  ;;  %v2139_v56 = vsel %vm2125_vm10, %v2056_v54, %v928_v46  ;;  %v5765_v54 = vshll.u32 %v5756_v43, 16  ;;  %v5768_v46 = vshrl.u32 %v5756_v43, 16 }
  0xe1   :  { %1372 = vrot.lane.b32.xlu0 %v1293_v15, %s5002_s20  ;;  %v2222_v6 = vsel %vm2208_vm11, %v2139_v56, %v1192_v24  ;;  %v1067_v15 = vor.u32 %v1066_v49, %v1065_v61 }
  0xe2   :  { %v1458_v55 = vpop.permute.xlu1 %1457  ;;  %v1599_v60 = vrot.slane %v5768_v46, 2 }
  0xe3   :  { %v1359_v40 = vpop.permute.xlu0 %1358  ;;  %v1068_v8 = vsel %vm1000_vm2, %v1063_v11, %v1067_v15 }
  0xe4   :  { %1902 = vrot.lane.b32.xlu1 %v1823_v26, %s5005_s25  ;;  %v2305_v0 = vsel %vm2291_vm12, %v2222_v6, %v1359_v40  ;;  %v1600_v6 = vrot.slane %v5765_v54, 3 }
  0xe5   :  { %1735 = vrot.lane.b32.xlu0 %v1594_v63, %s5006_s26  ;;  %v2388_v14 = vsel %vm8927_vm13, %v2305_v0, %v1458_v55  ;;  %v1298_v55 = vrot.slane %v5756_v43, 2 }
  0xe6   :  { %v1889_v4 = vpop.permute.xlu1 %1888  ;;  %v1601_v45 = vor.u32 %v1600_v6, %v1599_v60  ;;  %v5848_v60 = vld [vmem:[%s8920_s0 + $0xa0] sm:$0xff]  }
  0xe7   :  { %v1722_v20 = vpop.permute.xlu0 %1721 }
  0xe8   :  { %844 = vrot.lane.b32.xlu1 %v765_v10, %s5000_s16  ;;  %v2471_v17 = vsel %vm2457_vm14, %v2388_v14, %v1722_v20  ;;  %v1598_v10 = vsel %vm1530_vm5, %v1593_v53, %v1597_v22 }
  0xe9   :  { %677 = vrot.lane.b32.xlu0 %v445_v3, %s5004_s22  ;;  %v2554_v9 = vsel %vm2540_vm15, %v2471_v17, %v1889_v4  ;;  %v1826_v4 = vrot.slane %v5756_v43, 3 }
  0xea   :  { %v831_v16 = vpop.permute.xlu1 %830  ;;  %4542 = vmatmul.mubr.msk.bf16.gmra.mrb[24].mxu0 %vm2643_vm6, %v2554_v9  ;;  %v1073_v9 = vrot.slane %v5768_v46, 1 }
  0xeb   :  { %v664_v29 = vpop.permute.xlu0 %663  ;;  %4545 = vmatprep.mubr.msk.bf16.mxu0 %vm5008_vm7, %v8936_v50 }
  0xec   :  { %1207 = vrot.lane.b32.xlu1 %v1068_v8, %s5003_s21  ;;  %v1974_v11 = vsel %vm1958_vm8, %v5268_v19, %v664_v29  ;;  %v1070_v19 = vrot.slane %v5719_v7, 2  ;;  %v1827_v8 = vsel %vm1794_vm4, %v1824_v25, %v1826_v4  ;;  %v770_v7 = vrot.slane %v5756_v43, 1 }
  0xed   :  { %943 = vrot.lane.b32.xlu0 %v767_v18, %s4999_s15  ;;  %v2058_v35 = vsel %vm2042_vm9, %v1974_v11, %v831_v16  ;;  %v1602_v16 = vsel %vm1530_vm5, %v1597_v22, %v1601_v45  ;;  %v5811_v22 = vshll.u32 %v5802_v48, 16 }
  0xee   :  { %v1194_v2 = vpop.permute.xlu1 %1193  ;;  %v771_v42 = vsel %vm8926_vm0, %v768_v31, %v770_v7 }
  0xef   :  { %v930_v5 = vpop.permute.xlu0 %929  ;;  %v1604_v43 = vrot.slane %v5811_v22, 3 }
  0xf0   :  { %1473 = vrot.lane.b32.xlu1 %v1297_v28, %s5001_s19  ;;  %v2141_v30 = vsel %vm2125_vm10, %v2058_v35, %v930_v5  ;;  %v5814_v35 = vshrl.u32 %v5802_v48, 16 }
  0xf1   :  { %1374 = vrot.lane.b32.xlu0 %v1295_v41, %s5002_s20  ;;  %v2224_v59 = vsel %vm2208_vm11, %v2141_v30, %v1194_v2  ;;  %v1071_v41 = vor.u32 %v1070_v19, %v1069_v38  ;;  %v1300_v19 = vrot.slane %v5802_v48, 2 }
  0xf2   :  { %v1460_v36 = vpop.permute.xlu1 %1459 }
  0xf3   :  { %v1361_v52 = vpop.permute.xlu0 %1360  ;;  %v1072_v49 = vsel %vm1000_vm2, %v1067_v15, %v1071_v41  ;;  %v1299_v15 = vsel %vm1264_vm1, %v1296_v21, %v1298_v55 }
  0xf4   :  { %1904 = vrot.lane.b32.xlu1 %v1825_v34, %s5005_s25  ;;  %v2307_v24 = vsel %vm2291_vm12, %v2224_v59, %v1361_v52 }
  0xf5   :  { %1737 = vrot.lane.b32.xlu0 %v1598_v10, %s5006_s26  ;;  %v2390_v56 = vsel %vm8927_vm13, %v2307_v24, %v1460_v36  ;;  %v1301_v24 = vsel %vm1264_vm1, %v1298_v55, %v1300_v19 }
  0xf6   :  { %v1891_v53 = vpop.permute.xlu1 %1890 }
  0xf7   :  { %v1724_v26 = vpop.permute.xlu0 %1723 }
  0xf8   :  { %846 = vrot.lane.b32.xlu1 %v767_v18, %s5000_s16  ;;  %v2473_v61 = vsel %vm2457_vm14, %v2390_v56, %v1724_v26  ;;  %v456_v18 = vor.u32 %v5676_v32, %v452_v44  ;;  %v1603_v44 = vrot.slane %v5814_v35, 2 }
  0xf9   :  { %679 = vrot.lane.b32.xlu0 %v453_v51, %s5004_s22  ;;  %v2556_v63 = vsel %vm2540_vm15, %v2473_v61, %v1891_v53 }
  0xfa   :  { %v833_v1 = vpop.permute.xlu1 %832  ;;  %4546 = vmatmul.mubr.msk.bf16.gmra.mrb[28].mxu0 %vm2643_vm6, %v2556_v63  ;;  %v461_v32 = vsel %vm321_vm3, %v456_v18, %v460_v27  ;;  %v1605_v51 = vor.u32 %v1604_v43, %v1603_v44 }
  0xfb   :  { %v666_v40 = vpop.permute.xlu0 %665  ;;  %4549 = vmatprep.mubr.msk.bf16.mxu0 %vm5008_vm7, %v8936_v50 }
  0xfc   :  { %1209 = vrot.lane.b32.xlu1 %v1072_v49, %s5003_s21  ;;  %v1976_v0 = vsel %vm1958_vm8, %v5302_v37, %v666_v40  ;;  %v1074_v37 = vrot.slane %v5765_v54, 2  ;;  %v1077_v49 = vrot.slane %v5814_v35, 1  ;;  %v1606_v63 = vsel %vm1530_vm5, %v1601_v45, %v1605_v51 }
  0xfd   :  { %945 = vrot.lane.b32.xlu0 %v769_v62, %s4999_s15  ;;  %v2060_v14 = vsel %vm2042_vm9, %v1976_v0, %v833_v1  ;;  %v464_v1 = vor.u32 %v5722_v12, %v460_v27  ;;  %v5860_v45 = vshrl.u32 %v5848_v60, 16 }
  0xfe   :  { %v1196_v3 = vpop.permute.xlu1 %1195 }
  0xff   :  { %v932_v20 = vpop.permute.xlu0 %931  ;;  %v1607_v18 = vrot.slane %v5860_v45, 2 }
 0x100   :  { %1475 = vrot.lane.b32.xlu1 %v1299_v15, %s5001_s19  ;;  %v2143_v17 = vsel %vm2125_vm10, %v2060_v14, %v932_v20 }
 0x101   :  { %1376 = vrot.lane.b32.xlu0 %v1297_v28, %s5002_s20  ;;  %v2226_v29 = vsel %vm2208_vm11, %v2143_v17, %v1196_v3  ;;  %v1075_v28 = vor.u32 %v1074_v37, %v1073_v9  ;;  %v5857_v3 = vshll.u32 %v5848_v60, 16  ;;  %v1302_v9 = vrot.slane %v5848_v60, 2 }
 0x102   :  { %v1462_v21 = vpop.permute.xlu1 %1461 }
 0x103   :  { %v1363_v11 = vpop.permute.xlu0 %1362  ;;  %v1076_v38 = vsel %vm1000_vm2, %v1071_v41, %v1075_v28  ;;  %v1828_v41 = vrot.slane %v5802_v48, 3  ;;  %v1608_v27 = vrot.slane %v5857_v3, 3 }
 0x104   :  { %1906 = vrot.lane.b32.xlu1 %v1827_v8, %s5005_s25  ;;  %v2309_v25 = vsel %vm2291_vm12, %v2226_v29, %v1363_v11  ;;  %v1303_v11 = vsel %vm1264_vm1, %v1300_v19, %v1302_v9 }
 0x105   :  { %1739 = vrot.lane.b32.xlu0 %v1602_v16, %s5006_s26  ;;  %v2392_v5 = vsel %vm8927_vm13, %v2309_v25, %v1462_v21  ;;  %v1829_v61 = vsel %vm1794_vm4, %v1826_v4, %v1828_v41  ;;  %v1830_v25 = vrot.slane %v5848_v60, 3 }
 0x106   :  { %v1893_v2 = vpop.permute.xlu1 %1892 }
 0x107   :  { %v1726_v30 = vpop.permute.xlu0 %1725 }
 0x108   :  { %848 = vrot.lane.b32.xlu1 %v769_v62, %s5000_s16  ;;  %v2475_v34 = vsel %vm2457_vm14, %v2392_v5, %v1726_v30  ;;  %v468_v62 = vrot.slane %v5765_v54, 1  ;;  %v772_v54 = vrot.slane %v5802_v48, 1  ;;  %v1831_v30 = vsel %vm1794_vm4, %v1828_v41, %v1830_v25 }
 0x109   :  { %681 = vrot.lane.b32.xlu0 %v461_v32, %s5004_s22  ;;  %v2558_v36 = vsel %vm2540_vm15, %v2475_v34, %v1893_v2  ;;  %v1609_v2 = vor.u32 %v1608_v27, %v1607_v18  ;;  %v1081_v34 = vrot.slane %v5860_v45, 1 }
 0x10a   :  { %v835_v10 = vpop.permute.xlu1 %834  ;;  %4550 = vmatmul.mubr.msk.bf16.gmra.mrb[32].mxu0 %vm2643_vm6, %v2558_v36  ;;  %v469_v12 = vsel %vm321_vm3, %v464_v1, %v468_v62  ;;  %v773_v16 = vsel %vm8926_vm0, %v770_v7, %v772_v54  ;;  %v472_v36 = vor.u32 %v5768_v46, %v468_v62 }
 0x10b   :  { %v668_v59 = vpop.permute.xlu0 %667  ;;  %4553 = vmatprep.mubr.msk.bf16.mxu0 %vm5008_vm7, %v8936_v50  ;;  %v1610_v19 = vsel %vm1530_vm5, %v1605_v51, %v1609_v2 }
 0x10c   :  { %1211 = vrot.lane.b32.xlu1 %v1076_v38, %s5003_s21  ;;  %v1978_v52 = vsel %vm1958_vm8, %v5336_v58, %v668_v59  ;;  %v1078_v58 = vrot.slane %v5811_v22, 2 }
 0x10d   :  { %947 = vrot.lane.b32.xlu0 %v771_v42, %s4999_s15  ;;  %v2062_v31 = vsel %vm2042_vm9, %v1978_v52, %v835_v10  ;;  %v476_v10 = vrot.slane %v5811_v22, 1  ;;  %v774_v22 = vrot.slane %v5848_v60, 1 }
 0x10e   :  { %v1198_v53 = vpop.permute.xlu1 %1197 }
 0x10f   :  { %v934_v56 = vpop.permute.xlu0 %933  ;;  %v477_v46 = vsel %vm321_vm3, %v472_v36, %v476_v10 }
 0x110   :  { %1477 = vrot.lane.b32.xlu1 %v1301_v24, %s5001_s19  ;;  %v2145_v26 = vsel %vm2125_vm10, %v2062_v31, %v934_v56 }
 0x111   :  { %1378 = vrot.lane.b32.xlu0 %v1299_v15, %s5002_s20  ;;  %v2228_v6 = vsel %vm2208_vm11, %v2145_v26, %v1198_v53  ;;  %v1079_v15 = vor.u32 %v1078_v58, %v1077_v49 }
 0x112   :  { %v1464_v55 = vpop.permute.xlu1 %1463 }
 0x113   :  { %v1365_v40 = vpop.permute.xlu0 %1364  ;;  %v1080_v8 = vsel %vm1000_vm2, %v1075_v28, %v1079_v15 }
 0x114   :  { %1908 = vrot.lane.b32.xlu1 %v1829_v61, %s5005_s25  ;;  %v2311_v0 = vsel %vm2291_vm12, %v2228_v6, %v1365_v40 }
 0x115   :  { %1741 = vrot.lane.b32.xlu0 %v1606_v63, %s5006_s26  ;;  %v2394_v14 = vsel %vm8927_vm13, %v2311_v0, %v1464_v55  ;;  %v775_v55 = vsel %vm8926_vm0, %v772_v54, %v774_v22 }
 0x116   :  { %v1895_v4 = vpop.permute.xlu1 %1894 }
 0x117   :  { %v1728_v20 = vpop.permute.xlu0 %1727 }
 0x118   :  { %850 = vrot.lane.b32.xlu1 %v771_v42, %s5000_s16  ;;  %v2477_v17 = vsel %vm2457_vm14, %v2394_v14, %v1728_v20  ;;  %v5894_v42 = vld [vmem:[%s8920_s0 + $0xa8] sm:$0xff]  }
 0x119   :  { %683 = vrot.lane.b32.xlu0 %v469_v12, %s5004_s22  ;;  %v2560_v37 = vsel %vm2540_vm15, %v2477_v17, %v1895_v4  ;;  %v5903_v41 = vshll.u32 %v5894_v42, 16  ;;  %v5906_v53 = vshrl.u32 %v5894_v42, 16  ;;  %v1304_v61 = vrot.slane %v5894_v42, 2 }
 0x11a   :  { %v837_v21 = vpop.permute.xlu1 %836  ;;  %4554 = vmatmul.mubr.msk.bf16.gmra.mrb[36].mxu0 %vm2643_vm6, %v2560_v37  ;;  %v1832_v40 = vrot.slane %v5894_v42, 3  ;;  %v484_v37 = vrot.slane %v5857_v3, 1 }
 0x11b   :  { %v670_v48 = vpop.permute.xlu0 %669  ;;  %4557 = vmatprep.mubr.msk.bf16.mxu0 %vm5008_vm7, %v8936_v50  ;;  %v1611_v63 = vrot.slane %v5906_v53, 2  ;;  %v1612_v1 = vrot.slane %v5903_v41, 3  ;;  %v1305_v6 = vsel %vm1264_vm1, %v1302_v9, %v1304_v61  ;;  %v1085_v20 = vrot.slane %v5906_v53, 1 }
 0x11c   :  { %1213 = vrot.lane.b32.xlu1 %v1080_v8, %s5003_s21  ;;  %v1980_v29 = vsel %vm1958_vm8, %v5370_v23, %v670_v48  ;;  %v1082_v23 = vrot.slane %v5857_v3, 2  ;;  %v1833_v14 = vsel %vm1794_vm4, %v1830_v25, %v1832_v40  ;;  %v480_v9 = vor.u32 %v5814_v35, %v476_v10 }
 0x11d   :  { %949 = vrot.lane.b32.xlu0 %v773_v16, %s4999_s15  ;;  %v2064_v32 = vsel %vm2042_vm9, %v1980_v29, %v837_v21  ;;  %v5940_v21 = vld [vmem:[%s8920_s0 + $0xb0] sm:$0xff]   ;;  %v776_v3 = vrot.slane %v5894_v42, 1 }
 0x11e   :  { %v1200_v28 = vpop.permute.xlu1 %1199  ;;  %v1083_v52 = vor.u32 %v1082_v23, %v1081_v34  ;;  %v485_v35 = vsel %vm321_vm3, %v480_v9, %v484_v37  ;;  %v5952_v25 = vshrl.u32 %v5940_v21, 16 }
 0x11f   :  { %v936_v7 = vpop.permute.xlu0 %935  ;;  %v777_v23 = vsel %vm8926_vm0, %v774_v22, %v776_v3 }
 0x120   :  { %1479 = vrot.lane.b32.xlu1 %v1303_v11, %s5001_s19  ;;  %v2147_v5 = vsel %vm2125_vm10, %v2064_v32, %v936_v7  ;;  %v1084_v26 = vsel %vm1000_vm2, %v1079_v15, %v1083_v52  ;;  %v1613_v15 = vor.u32 %v1612_v1, %v1611_v63 }
 0x121   :  { %1380 = vrot.lane.b32.xlu0 %v1301_v24, %s5002_s20  ;;  %v2230_v44 = vsel %vm2208_vm11, %v2147_v5, %v1200_v28  ;;  %v1306_v5 = vrot.slane %v5940_v21, 2 }
 0x122   :  { %v1466_v38 = vpop.permute.xlu1 %1465  ;;  %v1614_v8 = vsel %vm1530_vm5, %v1609_v2, %v1613_v15 }
 0x123   :  { %v1367_v43 = vpop.permute.xlu0 %1366  ;;  %v1307_v42 = vsel %vm1264_vm1, %v1304_v61, %v1306_v5  ;;  %v492_v61 = vrot.slane %v5903_v41, 1 }
 0x124   :  { %1910 = vrot.lane.b32.xlu1 %v1831_v30, %s5005_s25  ;;  %v2313_v59 = vsel %vm2291_vm12, %v2230_v44, %v1367_v43  ;;  %v1834_v44 = vrot.slane %v5940_v21, 3 }
 0x125   :  { %1743 = vrot.lane.b32.xlu0 %v1610_v19, %s5006_s26  ;;  %v2396_v51 = vsel %vm8927_vm13, %v2313_v59, %v1466_v38  ;;  %v1615_v38 = vrot.slane %v5952_v25, 2 }
 0x126   :  { %v1897_v24 = vpop.permute.xlu1 %1896  ;;  %v1835_v22 = vsel %vm1794_vm4, %v1832_v40, %v1834_v44 }
 0x127   :  { %v1730_v31 = vpop.permute.xlu0 %1729 }
 0x128   :  { %852 = vrot.lane.b32.xlu1 %v773_v16, %s5000_s16  ;;  %v2479_v56 = vsel %vm2457_vm14, %v2396_v51, %v1730_v31  ;;  %v1089_v51 = vrot.slane %v5952_v25, 1 }
 0x129   :  { %685 = vrot.lane.b32.xlu0 %v477_v46, %s5004_s22  ;;  %v2562_v49 = vsel %vm2540_vm15, %v2479_v56, %v1897_v24 }
 0x12a   :  { %v839_v58 = vpop.permute.xlu1 %838  ;;  %4558 = vmatmul.mubr.msk.bf16.gmra.mrb[40].mxu0 %vm2643_vm6, %v2562_v49  ;;  %v5986_v49 = vld [vmem:[%s8920_s0 + $0xb8] sm:$0xff]  }
 0x12b   :  { %v672_v62 = vpop.permute.xlu0 %671  ;;  %4561 = vmatprep.mubr.msk.bf16.mxu0 %vm5008_vm7, %v8936_v50 }
 0x12c   :  { %1215 = vrot.lane.b32.xlu1 %v1084_v26, %s5003_s21  ;;  %v1982_v60 = vsel %vm1958_vm8, %v5414_v47, %v672_v62  ;;  %v1086_v47 = vrot.slane %v5903_v41, 2  ;;  %v488_v26 = vor.u32 %v5860_v45, %v484_v37  ;;  %v778_v41 = vrot.slane %v5940_v21, 1 }
 0x12d   :  { %951 = vrot.lane.b32.xlu0 %v775_v55, %s4999_s15  ;;  %v2066_v4 = vsel %vm2042_vm9, %v1982_v60, %v839_v58  ;;  %v5995_v60 = vshll.u32 %v5986_v49, 16 }
 0x12e   :  { %v1202_v0 = vpop.permute.xlu1 %1201  ;;  %v1087_v48 = vor.u32 %v1086_v47, %v1085_v20  ;;  %v493_v45 = vsel %vm321_vm3, %v488_v26, %v492_v61  ;;  %v779_v20 = vsel %vm8926_vm0, %v776_v3, %v778_v41 }
 0x12f   :  { %v938_v12 = vpop.permute.xlu0 %937 }
 0x130   :  { %1481 = vrot.lane.b32.xlu1 %v1305_v6, %s5001_s19  ;;  %v2149_v54 = vsel %vm2125_vm10, %v2066_v4, %v938_v12  ;;  %v1088_v7 = vsel %vm1000_vm2, %v1083_v52, %v1087_v48  ;;  %v1308_v12 = vrot.slane %v5986_v49, 2 }
 0x131   :  { %1382 = vrot.lane.b32.xlu0 %v1303_v11, %s5002_s20  ;;  %v2232_v16 = vsel %vm2208_vm11, %v2149_v54, %v1202_v0  ;;  %v5949_v11 = vshll.u32 %v5940_v21, 16  ;;  %v1836_v21 = vrot.slane %v5986_v49, 3 }
 0x132   :  { %v1468_v17 = vpop.permute.xlu1 %1467  ;;  %v1309_v37 = vsel %vm1264_vm1, %v1306_v5, %v1308_v12 }
 0x133   :  { %v1369_v18 = vpop.permute.xlu0 %1368  ;;  %v1616_v19 = vrot.slane %v5949_v11, 3  ;;  %v500_v5 = vrot.slane %v5949_v11, 1 }
 0x134   :  { %1912 = vrot.lane.b32.xlu1 %v1833_v14, %s5005_s25  ;;  %v2315_v27 = vsel %vm2291_vm12, %v2232_v16, %v1369_v18 }
 0x135   :  { %1745 = vrot.lane.b32.xlu0 %v1614_v8, %s5006_s26  ;;  %v2398_v28 = vsel %vm8927_vm13, %v2315_v27, %v1468_v17  ;;  %v1617_v59 = vor.u32 %v1616_v19, %v1615_v38  ;;  %v1620_v17 = vrot.slane %v5995_v60, 3 }
 0x136   :  { %v1899_v29 = vpop.permute.xlu1 %1898 }
 0x137   :  { %v1732_v2 = vpop.permute.xlu0 %1731  ;;  %v1618_v56 = vsel %vm1530_vm5, %v1613_v15, %v1617_v59 }
 0x138   :  { %854 = vrot.lane.b32.xlu1 %v775_v55, %s5000_s16  ;;  %v2481_v32 = vsel %vm2457_vm14, %v2398_v28, %v1732_v2  ;;  %v6029_v2 = vld [vmem:[%s8920_s0 + $0xc0] sm:$0xff]  }
 0x139   :  { %687 = vrot.lane.b32.xlu0 %v485_v35, %s5004_s22  ;;  %v2564_v30 = vsel %vm2540_vm15, %v2481_v32, %v1899_v29  ;;  %v1837_v35 = vsel %vm1794_vm4, %v1834_v44, %v1836_v21 }
 0x13a   :  { %v841_v34 = vpop.permute.xlu1 %840  ;;  %4562 = vmatmul.mubr.msk.bf16.gmra.mrb[44].mxu0 %vm2643_vm6, %v2564_v30 }
 0x13b   :  { %v674_v36 = vpop.permute.xlu0 %673  ;;  %4565 = vmatprep.mubr.msk.bf16.mxu0 %vm5008_vm7, %v8936_v50 }
 0x13c   :  { %1217 = vrot.lane.b32.xlu1 %v1088_v7, %s5003_s21  ;;  %v1984_v10 = vsel %vm1958_vm8, %v5475_v33, %v674_v36  ;;  %v1090_v33 = vrot.slane %v5949_v11, 2  ;;  %v496_v7 = vor.u32 %v5906_v53, %v492_v61  ;;  %v6041_v36 = vshll.u32 %v6029_v2, 16 }
 0x13d   :  { %953 = vrot.lane.b32.xlu0 %v777_v23, %s4999_s15  ;;  %v2068_v52 = vsel %vm2042_vm9, %v1984_v10, %v841_v34  ;;  %v6044_v10 = vshrl.u32 %v6029_v2, 16  ;;  %v780_v11 = vrot.slane %v5986_v49, 1 }
 0x13e   :  { %v1204_v43 = vpop.permute.xlu1 %1203  ;;  %v1091_v1 = vor.u32 %v1090_v33, %v1089_v51  ;;  %v501_v53 = vsel %vm321_vm3, %v496_v7, %v500_v5  ;;  %v1624_v51 = vrot.slane %v6041_v36, 3 }
 0x13f   :  { %v940_v24 = vpop.permute.xlu0 %939  ;;  %v781_v33 = vsel %vm8926_vm0, %v778_v41, %v780_v11  ;;  %vm3415_vm0 = vcmask 257024  }
 0x140   :  { %1483 = vrot.lane.b32.xlu1 %v1307_v42, %s5001_s19  ;;  %v2151_v46 = vsel %vm2125_vm10, %v2068_v52, %v940_v24  ;;  %v1092_v4 = vsel %vm1000_vm2, %v1087_v48, %v1091_v1  ;;  %v1310_v52 = vrot.slane %v6029_v2, 2 }
 0x141   :  { %1384 = vrot.lane.b32.xlu0 %v1305_v6, %s5002_s20  ;;  %v2234_v58 = vsel %vm2208_vm11, %v2151_v46, %v1204_v43  ;;  %v5998_v6 = vshrl.u32 %v5986_v49, 16 }
 0x142   :  { %v1470_v31 = vpop.permute.xlu1 %1469  ;;  %v6071_v61 = vsel %vm1264_vm1, %v1308_v12, %v1310_v52 }
 0x143   :  { %v1371_v55 = vpop.permute.xlu0 %1370  ;;  %v1619_v47 = vrot.slane %v5998_v6, 2  ;;  %v1093_v3 = vrot.slane %v5998_v6, 1 }
 0x144   :  { %1914 = vrot.lane.b32.xlu1 %v1835_v22, %s5005_s25  ;;  %v2317_v63 = vsel %vm2291_vm12, %v2234_v58, %v1371_v55  ;;  %v1623_v22 = vrot.slane %v6044_v10, 2 }
 0x145   :  { %1747 = vrot.lane.b32.xlu0 %v1618_v56, %s5006_s26  ;;  %v2400_v40 = vsel %vm8927_vm13, %v2317_v63, %v1470_v31  ;;  %v1621_v18 = vor.u32 %v1620_v17, %v1619_v47  ;;  %v1838_v56 = vrot.slane %v6029_v2, 3 }
 0x146   :  { %v1901_v62 = vpop.permute.xlu1 %1900  ;;  %v6074_v55 = vor.u32 %v1624_v51, %v1623_v22 }
 0x147   :  { %v1734_v0 = vpop.permute.xlu0 %1733  ;;  %v1622_v32 = vsel %vm1530_vm5, %v1617_v59, %v1621_v18 }
 0x148   :  { %856 = vrot.lane.b32.xlu1 %v777_v23, %s5000_s16  ;;  %v2483_v15 = vsel %vm2457_vm14, %v2400_v40, %v1734_v0  ;;  %v1097_v0 = vrot.slane %v6044_v10, 1 }
 0x149   :  { %689 = vrot.lane.b32.xlu0 %v493_v45, %s5004_s22  ;;  %v2566_v54 = vsel %vm2540_vm15, %v2483_v15, %v1901_v62  ;;  %v1098_v15 = vrot.slane %v6041_v36, 2 }
 0x14a   :  { %v843_v14 = vpop.permute.xlu1 %842  ;;  %4566 = vmatmul.mubr.msk.bf16.gmra.mrb[48].mxu0 %vm2643_vm6, %v2566_v54  ;;  %v1626_v54 = vsel %vm1530_vm5, %v1621_v18, %v6074_v55 }
 0x14b   :  { %v676_v8 = vpop.permute.xlu0 %675  ;;  %4569 = vmatprep.mubr.msk.bf16.mxu0 %vm5008_vm7, %v8936_v50 }
 0x14c   :  { %1219 = vrot.lane.b32.xlu1 %v1092_v4, %s5003_s21  ;;  %v1986_v9 = vsel %vm1958_vm8, %v5524_v13, %v676_v8  ;;  %v1094_v13 = vrot.slane %v5995_v60, 2 }
 0x14d   :  { %955 = vrot.lane.b32.xlu0 %v779_v20, %s4999_s15  ;;  %v2070_v27 = vsel %vm2042_vm9, %v1986_v9, %v843_v14  ;;  %v504_v14 = vor.u32 %v5952_v25, %v500_v5 }
 0x14e   :  { %v1206_v16 = vpop.permute.xlu1 %1205  ;;  %v6037_v38 = vor.u32 %v1094_v13, %v1093_v3  ;;  %v782_v3 = vrot.slane %v6029_v2, 1 }
 0x14f   :  { %v942_v48 = vpop.permute.xlu0 %941 }
 0x150   :  { %1485 = vrot.lane.b32.xlu1 %v1309_v37, %s5001_s19  ;;  %v2153_v29 = vsel %vm2125_vm10, %v2070_v27, %v942_v48  ;;  %v1096_v59 = vsel %vm1000_vm2, %v1091_v1, %v6037_v38  ;;  %v6126_v48 = vor.u32 %v1098_v15, %v1097_v0 }
 0x151   :  { %1386 = vrot.lane.b32.xlu0 %v1307_v42, %s5002_s20  ;;  %v2236_v30 = vsel %vm2208_vm11, %v2153_v29, %v1206_v16 }
 0x152   :  { %v1472_v28 = vpop.permute.xlu1 %1471 }
 0x153   :  { %v1373_v34 = vpop.permute.xlu0 %1372 }
 0x154   :  { %1916 = vrot.lane.b32.xlu1 %v1837_v35, %s5005_s25  ;;  %v2319_v23 = vsel %vm2291_vm12, %v2236_v30, %v1373_v34  ;;  %v1100_v30 = vsel %vm1000_vm2, %v6037_v38, %v6126_v48 }
 0x155   :  { %1749 = vrot.lane.b32.xlu0 %v1622_v32, %s5006_s26  ;;  %v2402_v42 = vsel %vm8927_vm13, %v2319_v23, %v1472_v28 }
 0x156   :  { %v1903_v19 = vpop.permute.xlu1 %1902 }
 0x157   :  { %v1736_v44 = vpop.permute.xlu0 %1735 }
 0x158   :  { %858 = vrot.lane.b32.xlu1 %v779_v20, %s5000_s16  ;;  %v2485_v43 = vsel %vm2457_vm14, %v2402_v42, %v1736_v44  ;;  %v508_v20 = vrot.slane %v5995_v60, 1 }
 0x159   :  { %691 = vrot.lane.b32.xlu0 %v501_v53, %s5004_s22  ;;  %v2568_v24 = vsel %vm2540_vm15, %v2485_v43, %v1903_v19 }
 0x15a   :  { %v845_v46 = vpop.permute.xlu1 %844  ;;  %4570 = vmatmul.mubr.msk.bf16.gmra.mrb[52].mxu0 %vm2643_vm6, %v2568_v24  ;;  %v509_v35 = vsel %vm321_vm3, %v504_v14, %v508_v20 }
 0x15b   :  { %v678_v31 = vpop.permute.xlu0 %677  ;;  %4573 = vmatprep.mubr.msk.bf16.mxu0 %vm5008_vm7, %v8936_v50 }
 0x15c   :  { %1221 = vrot.lane.b32.xlu1 %v1096_v59, %s5003_s21  ;;  %v1988_v26 = vsel %vm1958_vm8, %v5572_v57, %v678_v31  ;;  %v1839_v57 = vsel %vm1794_vm4, %v1836_v21, %v1838_v56 }
 0x15d   :  { %957 = vrot.lane.b32.xlu0 %v781_v33, %s4999_s15  ;;  %v2072_v1 = vsel %vm2042_vm9, %v1988_v26, %v845_v46 }
 0x15e   :  { %v1208_v58 = vpop.permute.xlu1 %1207 }
 0x15f   :  { %v6076_v63 = vpop.f32.mrb[0].mxu0  ;;  %v944_v62 = vpop.permute.xlu0 %943 }
 0x160   :  { %1487 = vrot.lane.b32.xlu1 %v6071_v61, %s5001_s19  ;;  %v4246_v45 = vpack.c.bf16 %v6076_v63, %v6076_v63  ;;  %v2155_v41 = vsel %vm2125_vm10, %v2072_v1, %v944_v62  ;;  %v4519_v40 = vpop.f32.mrb[1].mxu0  ;;  %v6102_v47 = vmul.f32 %v6076_v63, %v6076_v63 }
 0x161   :  { %v6089_v4 = vpop.f32.mrb[2].mxu0  ;;  %1388 = vrot.lane.b32.xlu0 %v1309_v37, %s5002_s20  ;;  %v6115_v37 = vld [vmem:[%s8920_s0 + $0xc8] sm:$0xff]   ;;  %v2238_v21 = vsel %vm2208_vm11, %v2155_v41, %v1208_v58 }
 0x162   :  { %v1474_v12 = vpop.permute.xlu1 %1473  ;;  %3416 = vst.msk [vmem:[%s8923_s3] sm:$0xf] %vm3415_vm0, %v4246_v45  ;;  %9001 = vst [vmem:[#allocation8_spill] sm:$0xff] %v6102_v47  ;;  %v4247_v17 = vpack.c.bf16 %v6089_v4, %v6089_v4  ;;  %v6110_v25 = vmul.f32 %v6089_v4, %v6089_v4  ;;  %v4520_v9 = vpop.f32.mrb[3].mxu0  ;;  %v6134_v13 = vshll.u32 %v6115_v37, 16  ;;  %v6137_v28 = vshrl.u32 %v6115_v37, 16 }
 0x163   :  { %v1375_v16 = vpop.permute.xlu0 %1374  ;;  %v1312_v34 = vrot.slane %v6115_v37, 2  ;;  %v1840_v42 = vrot.slane %v6115_v37, 3 }
 0x164   :  { %9002 = vst [vmem:[#allocation9_spill] sm:$0xff] %v6110_v25  ;;  %1918 = vrot.lane.b32.xlu1 %v1839_v57, %s5005_s25  ;;  %3417 = vst.msk [vmem:[%s8923_s3 + $0x4] sm:$0xf] %vm3415_vm0, %v4247_v17  ;;  %v2321_v27 = vsel %vm2291_vm12, %v2238_v21, %v1375_v16  ;;  %v1627_v44 = vrot.slane %v6137_v28, 2  ;;  %v1628_v38 = vrot.slane %v6134_v13, 3  ;;  %v1101_v58 = vrot.slane %v6137_v28, 1 }
 0x165   :  { %1751 = vrot.lane.b32.xlu0 %v1626_v54, %s5006_s26  ;;  %v2404_v32 = vsel %vm8927_vm13, %v2321_v27, %v1474_v12  ;;  %vm9003_vm13 = vcmask 1046528   ;;  %v6167_v49 = vsel %vm1264_vm1, %v1310_v52, %v1312_v34  ;;  %v1102_v1 = vrot.slane %v6134_v13, 2 }
 0x166   :  { %v1905_v29 = vpop.permute.xlu1 %1904  ;;  %v783_v53 = vsel %vm9003_vm13, %v780_v11, %v782_v3  ;;  %v6179_v51 = vor.u32 %v1628_v38, %v1627_v44  ;;  %v512_v12 = vor.u32 %v5998_v6, %v508_v20  ;;  %v516_v54 = vrot.slane %v6041_v36, 1  ;;  %v4929_v44 = vld [vmem:[%s8920_s0 + $0x80] sm:$0xff]  }
 0x167   :  { %v1738_v7 = vpop.permute.xlu0 %1737  ;;  %v6228_v21 = vor.u32 %v1102_v1, %v1101_v58  ;;  %v784_v36 = vrot.slane %v6115_v37, 1  ;;  %vm9006_vm13 = vcmask 195584  }
 0x168   :  { %860 = vrot.lane.b32.xlu1 %v781_v33, %s5000_s16  ;;  %v2487_v5 = vsel %vm2457_vm14, %v2404_v32, %v1738_v7  ;;  %v1630_v15 = vsel %vm1530_vm5, %v6074_v55, %v6179_v51  ;;  %v517_v6 = vsel %vm321_vm3, %v512_v12, %v516_v54 }
 0x169   :  { %693 = vrot.lane.b32.xlu0 %v509_v35, %s5004_s22  ;;  %v2570_v23 = vsel %vm2540_vm15, %v2487_v5, %v1905_v29  ;;  %v1104_v35 = vsel %vm1000_vm2, %v6126_v48, %v6228_v21 }
 0x16a   :  { %v847_v19 = vpop.permute.xlu1 %846  ;;  %4574 = vmatmul.mubr.msk.bf16.gmra.mrb[56].mxu0 %vm2643_vm6, %v2570_v23 }
 0x16b   :  { %v680_v43 = vpop.permute.xlu0 %679  ;;  %4577 = vmatprep.mubr.msk.bf16.mxu0 %vm5008_vm7, %v8936_v50 }
 0x16c   :  { %1223 = vrot.lane.b32.xlu1 %v1100_v30, %s5003_s21  ;;  %v1990_v59 = vsel %vm1958_vm8, %v5618_v39, %v680_v43  ;;  %v1841_v39 = vsel %vm1794_vm4, %v1838_v56, %v1840_v42 }
 0x16d   :  { %v6169_v11 = vpop.f32.mrb[4].mxu0  ;;  %959 = vrot.lane.b32.xlu0 %v783_v53, %s4999_s15  ;;  %v2074_v31 = vsel %vm2042_vm9, %v1990_v59, %v847_v19 }
 0x16e   :  { %v1210_v24 = vpop.permute.xlu1 %1209  ;;  %v4248_v46 = vpack.c.bf16 %v6169_v11, %v6169_v11  ;;  %v4523_v22 = vpop.f32.mrb[5].mxu0  ;;  %v6183_v52 = vmul.f32 %v6169_v11, %v6169_v11 }
 0x16f   :  { %v6185_v33 = vpop.f32.mrb[6].mxu0  ;;  %v946_v26 = vpop.permute.xlu0 %945 }
 0x170   :  { %9004 = vst [vmem:[#allocation10_spill] sm:$0xff] %v6183_v52  ;;  %1489 = vrot.lane.b32.xlu1 %v6167_v49, %s5001_s19  ;;  %3418 = vst.msk [vmem:[%s8923_s3 + $0x8] sm:$0xf] %vm3415_vm0, %v4248_v46  ;;  %v4249_v56 = vpack.c.bf16 %v6185_v33, %v6185_v33  ;;  %v6202_v57 = vmul.f32 %v6185_v33, %v6185_v33  ;;  %v2157_v45 = vsel %vm2125_vm10, %v2074_v31, %v946_v26  ;;  %v4524_v41 = vpop.f32.mrb[7].mxu0 }
 0x171   :  { %1390 = vrot.lane.b32.xlu0 %v6071_v61, %s5002_s20  ;;  %v6223_v61 = vld [vmem:[%s8920_s0 + $0xd0] sm:$0xff]   ;;  %v2240_v14 = vsel %vm2208_vm11, %v2157_v45, %v1210_v24 }
 0x172   :  { %9005 = vst [vmem:[#allocation11_spill] sm:$0xff] %v6202_v57  ;;  %v1476_v40 = vpop.permute.xlu1 %1475  ;;  %3419 = vst.msk [vmem:[%s8923_s3 + $0xc] sm:$0xf] %vm3415_vm0, %v4249_v56  ;;  %v6234_v55 = vshll.u32 %v6223_v61, 16  ;;  %v6237_v20 = vshrl.u32 %v6223_v61, 16  ;;  %v1314_v32 = vrot.slane %v6223_v61, 2 }
 0x173   :  { %v1377_v17 = vpop.permute.xlu0 %1376  ;;  %v1842_v23 = vrot.slane %v6223_v61, 3 }
 0x174   :  { %1920 = vrot.lane.b32.xlu1 %v1841_v39, %s5005_s25  ;;  %v2323_v9 = vsel %vm2291_vm12, %v2240_v14, %v1377_v17  ;;  %v1631_v19 = vrot.slane %v6237_v20, 2  ;;  %v1632_v48 = vrot.slane %v6234_v55, 3  ;;  %v1105_v58 = vrot.slane %v6237_v20, 1 }
 0x175   :  { %1753 = vrot.lane.b32.xlu0 %v1630_v15, %s5006_s26  ;;  %v2406_v16 = vsel %vm9006_vm13, %v2323_v9, %v1476_v40  ;;  %vm9007_vm13 = vcmask 1046528   ;;  %v1843_v46 = vsel %vm1794_vm4, %v1840_v42, %v1842_v23  ;;  %v1106_v1 = vrot.slane %v6234_v55, 2 }
 0x176   :  { %v1907_v60 = vpop.permute.xlu1 %1906  ;;  %v785_v30 = vsel %vm9007_vm13, %v782_v3, %v784_v36  ;;  %v6269_v3 = vsel %vm1264_vm1, %v1312_v34, %v1314_v32  ;;  %v6281_v22 = vor.u32 %v1632_v48, %v1631_v19  ;;  %v520_v17 = vor.u32 %v6044_v10, %v516_v54 }
 0x177   :  { %v1740_v27 = vpop.permute.xlu0 %1739  ;;  %v524_v9 = vrot.slane %v6134_v13, 1  ;;  %v786_v13 = vrot.slane %v6223_v61, 1  ;;  %vm9010_vm13 = vcmask 195584   ;;  %v4931_v61 = vld [vmem:[%s8920_s0 + $0x90] sm:$0xff]  }
 0x178   :  { %862 = vrot.lane.b32.xlu1 %v783_v53, %s5000_s16  ;;  %v2489_v29 = vsel %vm2457_vm14, %v2406_v16, %v1740_v27  ;;  %v1634_v14 = vsel %vm1530_vm5, %v6179_v51, %v6281_v22  ;;  %v6328_v27 = vor.u32 %v1106_v1, %v1105_v58 }
 0x179   :  { %695 = vrot.lane.b32.xlu0 %v517_v6, %s5004_s22  ;;  %v2572_v7 = vsel %vm2540_vm15, %v2489_v29, %v1907_v60  ;;  %v525_v10 = vsel %vm321_vm3, %v520_v17, %v524_v9 }
 0x17a   :  { %v849_v5 = vpop.permute.xlu1 %848  ;;  %4578 = vmatmul.mubr.msk.bf16.gmra.mrb[60].mxu0 %vm2643_vm6, %v2572_v7  ;;  %v1108_v19 = vsel %vm1000_vm2, %v6228_v21, %v6328_v27 }
 0x17b   :  { %v682_v53 = vpop.permute.xlu0 %681  ;;  %4581 = vmatprep.mubr.msk.bf16.mxu0 %vm5008_vm7, %v8936_v50 }
 0x17c   :  { %1225 = vrot.lane.b32.xlu1 %v1104_v35, %s5003_s21  ;;  %v1992_v2 = vsel %vm1958_vm8, %v4929_v44, %v682_v53 }
 0x17d   :  { %v6271_v38 = vpop.f32.mrb[8].mxu0  ;;  %961 = vrot.lane.b32.xlu0 %v785_v30, %s4999_s15  ;;  %v2076_v31 = vsel %vm2042_vm9, %v1992_v2, %v849_v5 }
 0x17e   :  { %v1212_v43 = vpop.permute.xlu1 %1211  ;;  %v4250_v59 = vpack.c.bf16 %v6271_v38, %v6271_v38  ;;  %v4527_v24 = vpop.f32.mrb[9].mxu0  ;;  %v6285_v34 = vmul.f32 %v6271_v38, %v6271_v38 }
 0x17f   :  { %v6287_v39 = vpop.f32.mrb[10].mxu0  ;;  %v948_v26 = vpop.permute.xlu0 %947  ;;  %v4930_v24 = vld [vmem:[%s8920_s0 + $0x88] sm:$0xff]  }
 0x180   :  { %9008 = vst [vmem:[#allocation12_spill] sm:$0xff] %v6285_v34  ;;  %1491 = vrot.lane.b32.xlu1 %v6269_v3, %s5001_s19  ;;  %3420 = vst.msk [vmem:[%s8923_s3 + $0x10] sm:$0xf] %vm3415_vm0, %v4250_v59  ;;  %v4251_v42 = vpack.c.bf16 %v6287_v39, %v6287_v39  ;;  %v6304_v45 = vmul.f32 %v6287_v39, %v6287_v39  ;;  %v2159_v41 = vsel %vm2125_vm10, %v2076_v31, %v948_v26  ;;  %v4528_v40 = vpop.f32.mrb[11].mxu0 }
 0x181   :  { %1392 = vrot.lane.b32.xlu0 %v6167_v49, %s5002_s20  ;;  %v6323_v49 = vld [vmem:[%s8920_s0 + $0xd8] sm:$0xff]   ;;  %v2242_v60 = vsel %vm2208_vm11, %v2159_v41, %v1212_v43 }
 0x182   :  { %9009 = vst [vmem:[#allocation13_spill] sm:$0xff] %v6304_v45  ;;  %v1478_v15 = vpop.permute.xlu1 %1477  ;;  %3421 = vst.msk [vmem:[%s8923_s3 + $0x14] sm:$0xf] %vm3415_vm0, %v4251_v42  ;;  %v6334_v54 = vshll.u32 %v6323_v49, 16  ;;  %v6337_v29 = vshrl.u32 %v6323_v49, 16  ;;  %v1316_v48 = vrot.slane %v6323_v49, 2 }
 0x183   :  { %v1379_v6 = vpop.permute.xlu0 %1378  ;;  %v1844_v2 = vrot.slane %v6323_v49, 3 }
 0x184   :  { %1922 = vrot.lane.b32.xlu1 %v1843_v46, %s5005_s25  ;;  %v2325_v16 = vsel %vm2291_vm12, %v2242_v60, %v1379_v6  ;;  %v1635_v43 = vrot.slane %v6337_v29, 2  ;;  %v1636_v21 = vrot.slane %v6334_v54, 3  ;;  %v1110_v17 = vrot.slane %v6334_v54, 2 }
 0x185   :  { %1755 = vrot.lane.b32.xlu0 %v1634_v14, %s5006_s26  ;;  %v2408_v35 = vsel %vm9010_vm13, %v2325_v16, %v1478_v15  ;;  %vm9011_vm13 = vcmask 1046528   ;;  %v1845_v1 = vsel %vm1794_vm4, %v1842_v23, %v1844_v2  ;;  %v1109_v14 = vrot.slane %v6337_v29, 1 }
 0x186   :  { %v1909_v51 = vpop.permute.xlu1 %1908  ;;  %v6381_v42 = vor.u32 %v1636_v21, %v1635_v43 }
 0x187   :  { %v1742_v7 = vpop.permute.xlu0 %1741  ;;  %v6428_v21 = vor.u32 %v1110_v17, %v1109_v14 }
 0x188   :  { %864 = vrot.lane.b32.xlu1 %v785_v30, %s5000_s16  ;;  %v2491_v5 = vsel %vm2457_vm14, %v2408_v35, %v1742_v7  ;;  %v787_v30 = vsel %vm9011_vm13, %v784_v36, %v786_v13  ;;  %v6369_v36 = vsel %vm1264_vm1, %v1314_v32, %v1316_v48  ;;  %v1638_v7 = vsel %vm1530_vm5, %v6281_v22, %v6381_v42 }
 0x189   :  { %697 = vrot.lane.b32.xlu0 %v525_v10, %s5004_s22  ;;  %v2574_v53 = vsel %vm2540_vm15, %v2491_v5, %v1909_v51  ;;  %v528_v5 = vor.u32 %v6137_v28, %v524_v9  ;;  %vm9014_vm13 = vcmask 195584  }
 0x18a   :  { %v851_v44 = vpop.permute.xlu1 %850  ;;  %4582 = vmatmul.mubr.msk.bf16.gmra.mrb[64].mxu0 %vm2643_vm6, %v2574_v53 }
 0x18b   :  { %v684_v59 = vpop.permute.xlu0 %683  ;;  %4585 = vmatprep.mubr.msk.bf16.mxu0 %vm5008_vm7, %v8936_v50 }
 0x18c   :  { %1227 = vrot.lane.b32.xlu1 %v1108_v19, %s5003_s21  ;;  %v1994_v37 = vsel %vm1958_vm8, %v4930_v24, %v684_v59  ;;  %v532_v19 = vrot.slane %v6234_v55, 1  ;;  %v788_v55 = vrot.slane %v6323_v49, 1  ;;  %v4932_v49 = vld [vmem:[%s8920_s0 + $0x98] sm:$0xff]  }
 0x18d   :  { %v6371_v46 = vpop.f32.mrb[12].mxu0  ;;  %963 = vrot.lane.b32.xlu0 %v787_v30, %s4999_s15  ;;  %v2078_v40 = vsel %vm2042_vm9, %v1994_v37, %v851_v44 }
 0x18e   :  { %v1214_v31 = vpop.permute.xlu1 %1213  ;;  %v4252_v26 = vpack.c.bf16 %v6371_v46, %v6371_v46  ;;  %v4531_v58 = vpop.f32.mrb[13].mxu0  ;;  %v6385_v32 = vmul.f32 %v6371_v46, %v6371_v46  ;;  %v533_v28 = vsel %vm321_vm3, %v528_v5, %v532_v19 }
 0x18f   :  { %v6387_v41 = vpop.f32.mrb[14].mxu0  ;;  %v950_v15 = vpop.permute.xlu0 %949 }
 0x190   :  { %9012 = vst [vmem:[#allocation14_spill] sm:$0xff] %v6385_v32  ;;  %1493 = vrot.lane.b32.xlu1 %v6369_v36, %s5001_s19  ;;  %3422 = vst.msk [vmem:[%s8923_s3 + $0x18] sm:$0xf] %vm3415_vm0, %v4252_v26  ;;  %v4253_v23 = vpack.c.bf16 %v6387_v41, %v6387_v41  ;;  %v6404_v6 = vmul.f32 %v6387_v41, %v6387_v41  ;;  %v2161_v16 = vsel %vm2125_vm10, %v2078_v40, %v950_v15  ;;  %v4532_v51 = vpop.f32.mrb[15].mxu0 }
 0x191   :  { %1394 = vrot.lane.b32.xlu0 %v6269_v3, %s5002_s20  ;;  %v6423_v3 = vld [vmem:[%s8920_s0 + $0xe0] sm:$0xff]   ;;  %v2244_v53 = vsel %vm2208_vm11, %v2161_v16, %v1214_v31  ;;  %v1112_v26 = vsel %vm1000_vm2, %v6328_v27, %v6428_v21 }
 0x192   :  { %9013 = vst [vmem:[#allocation15_spill] sm:$0xff] %v6404_v6  ;;  %v1480_v10 = vpop.permute.xlu1 %1479  ;;  %3423 = vst.msk [vmem:[%s8923_s3 + $0x1c] sm:$0xf] %vm3415_vm0, %v4253_v23  ;;  %v6434_v9 = vshll.u32 %v6423_v3, 16  ;;  %v6437_v59 = vshrl.u32 %v6423_v3, 16  ;;  %v1318_v58 = vrot.slane %v6423_v3, 2 }
 0x193   :  { %v1381_v44 = vpop.permute.xlu0 %1380  ;;  %v1846_v15 = vrot.slane %v6423_v3, 3  ;;  %v6463_v23 = vld [vmem:[%s8920_s0 + $0xf8] sm:$0xff]  }
 0x194   :  { %1924 = vrot.lane.b32.xlu1 %v1845_v1, %s5005_s25  ;;  %v2327_v43 = vsel %vm2291_vm12, %v2244_v53, %v1381_v44  ;;  %v1639_v14 = vrot.slane %v6437_v59, 2  ;;  %v1640_v27 = vrot.slane %v6434_v9, 3  ;;  %v6474_v16 = vsel %vm1264_vm1, %v1316_v48, %v1318_v58 }
 0x195   :  { %1757 = vrot.lane.b32.xlu0 %v1638_v7, %s5006_s26  ;;  %v2410_v24 = vsel %vm9014_vm13, %v2327_v43, %v1480_v10  ;;  %vm9015_vm13 = vcmask 1046528   ;;  %v1847_v53 = vsel %vm1794_vm4, %v1844_v2, %v1846_v15  ;;  %v1113_v48 = vrot.slane %v6437_v59, 1 }
 0x196   :  { %v1911_v22 = vpop.permute.xlu1 %1910  ;;  %v6486_v44 = vor.u32 %v1640_v27, %v1639_v14  ;;  %v6500_v2 = vshll.u32 %v6463_v23, 16  ;;  %v6518_v27 = vld [vmem:[%s8920_s0 + $0x100] sm:$0xff]  }
 0x197   :  { %v1744_v37 = vpop.permute.xlu0 %1743 }
 0x198   :  { %866 = vrot.lane.b32.xlu1 %v787_v30, %s5000_s16  ;;  %v2493_v31 = vsel %vm2457_vm14, %v2410_v24, %v1744_v37  ;;  %v789_v30 = vsel %vm9015_vm13, %v786_v13, %v788_v55  ;;  %v1114_v37 = vrot.slane %v6434_v9, 2  ;;  %vm9018_vm13 = vcmask 195584  }
 0x199   :  { %699 = vrot.lane.b32.xlu0 %v533_v28, %s5004_s22  ;;  %v2576_v1 = vsel %vm2540_vm15, %v2493_v31, %v1911_v22 }
 0x19a   :  { %v853_v40 = vpop.permute.xlu1 %852  ;;  %4586 = vmatmul.mubr.msk.bf16.gmra.mrb[68].mxu0 %vm2643_vm6, %v2576_v1 }
 0x19b   :  { %v686_v17 = vpop.permute.xlu0 %685  ;;  %4589 = vmatprep.mubr.msk.bf16.mxu0 %vm5008_vm7, %v8936_v50 }
 0x19c   :  { %1229 = vrot.lane.b32.xlu1 %v1112_v26, %s5003_s21  ;;  %v1996_v13 = vsel %vm1958_vm8, %v4931_v61, %v686_v17  ;;  %v6540_v61 = vshrl.u32 %v6463_v23, 16 }
 0x19d   :  { %v6476_v51 = vpop.f32.mrb[16].mxu0  ;;  %965 = vrot.lane.b32.xlu0 %v789_v30, %s4999_s15  ;;  %v2080_v28 = vsel %vm2042_vm9, %v1996_v13, %v853_v40  ;;  %v1642_v13 = vsel %vm1530_vm5, %v6381_v42, %v6486_v44  ;;  %v6543_v42 = vshll.u32 %v6518_v27, 16 }
 0x19e   :  { %v1216_v10 = vpop.permute.xlu1 %1215  ;;  %v4254_v7 = vpack.c.bf16 %v6476_v51, %v6476_v51  ;;  %v4535_v5 = vpop.f32.mrb[17].mxu0  ;;  %v6491_v43 = vmul.f32 %v6476_v51, %v6476_v51 }
 0x19f   :  { %v6493_v22 = vpop.f32.mrb[18].mxu0  ;;  %v952_v24 = vpop.permute.xlu0 %951  ;;  %v540_v5 = vrot.slane %v6334_v54, 1  ;;  %v9033_v6 = vrot.slane %v6543_v42, 1 }
 0x1a0   :  { %9016 = vst [vmem:[#allocation16_spill] sm:$0xff] %v6491_v43  ;;  %1495 = vrot.lane.b32.xlu1 %v6474_v16, %s5001_s19  ;;  %3424 = vst.msk [vmem:[%s8923_s3 + $0x20] sm:$0xf] %vm3415_vm0, %v4254_v7  ;;  %v4255_v31 = vpack.c.bf16 %v6493_v22, %v6493_v22  ;;  %v6512_v1 = vmul.f32 %v6493_v22, %v6493_v22  ;;  %v2163_v40 = vsel %vm2125_vm10, %v2080_v28, %v952_v24  ;;  %v4536_v14 = vpop.f32.mrb[19].mxu0 }
 0x1a1   :  { %1396 = vrot.lane.b32.xlu0 %v6369_v36, %s5002_s20  ;;  %v536_v7 = vor.u32 %v6237_v20, %v532_v19  ;;  %v2246_v28 = vsel %vm2208_vm11, %v2163_v40, %v1216_v10  ;;  %v6535_v24 = vor.u32 %v1114_v37, %v1113_v48  ;;  %v8928_v14 = vrot.slane %v6500_v2, 1  ;;  %v6549_v19 = vld [vmem:[%s8920_s0 + $0xe8] sm:$0xff]  }
 0x1a2   :  { %9017 = vst [vmem:[#allocation17_spill] sm:$0xff] %v6512_v1  ;;  %v1482_v17 = vpop.permute.xlu1 %1481  ;;  %3425 = vst.msk [vmem:[%s8923_s3 + $0x24] sm:$0xf] %vm3415_vm0, %v4255_v31  ;;  %v8931_v35 = vrot.slane %v6549_v19, 2 }
 0x1a3   :  { %v1383_v36 = vpop.permute.xlu0 %1382  ;;  %v541_v10 = vsel %vm321_vm3, %v536_v7, %v540_v5 }
 0x1a4   :  { %1926 = vrot.lane.b32.xlu1 %v1847_v53, %s5005_s25  ;;  %v2329_v31 = vsel %vm2291_vm12, %v2246_v28, %v1383_v36  ;;  %v8933_v53 = vrot.slane %v6423_v3, 1  ;;  %v576_v28 = vor.u32 %v6540_v61, %v8928_v14  ;;  %v8932_v36 = vrot.slane %v6543_v42, 1 }
 0x1a5   :  { %1759 = vrot.lane.b32.xlu0 %v1642_v13, %s5006_s26  ;;  %v2412_v48 = vsel %vm9018_vm13, %v2329_v31, %v1482_v17  ;;  %v1116_v13 = vsel %vm1000_vm2, %v6428_v21, %v6535_v24  ;;  %v6568_v31 = vshll.u32 %v6549_v19, 16  ;;  %vm9019_vm13 = vcmask 1046528  }
 0x1a6   :  { %v1913_v20 = vpop.permute.xlu1 %1912  ;;  %v6579_v21 = vsel %vm9019_vm13, %v788_v55, %v8933_v53 }
 0x1a7   :  { %v1746_v37 = vpop.permute.xlu0 %1745  ;;  %v1644_v0 = vrot.slane %v6568_v31, 3 }
 0x1a8   :  { %868 = vrot.lane.b32.xlu1 %v789_v30, %s5000_s16  ;;  %v2495_v40 = vsel %vm2457_vm14, %v2412_v48, %v1746_v37  ;;  %v6571_v30 = vshrl.u32 %v6549_v19, 16  ;;  %v6587_v37 = vld [vmem:[%s8920_s0 + $0x108] sm:$0xff]  }
 0x1a9   :  { %701 = vrot.lane.b32.xlu0 %v541_v10, %s5004_s22  ;;  %v2578_v7 = vsel %vm2540_vm15, %v2495_v40, %v1913_v20  ;;  %v8929_v20 = vrot.slane %v6463_v23, 1  ;;  %v798_v10 = vrot.slane %v6518_v27, 1  ;;  %v581_v40 = vsel %vm321_vm3, %v576_v28, %v8932_v36 }
 0x1aa   :  { %v855_v17 = vpop.permute.xlu1 %854  ;;  %4590 = vmatmul.mubr.msk.bf16.gmra.mrb[72].mxu0 %vm2643_vm6, %v2578_v7  ;;  %v1643_v12 = vrot.slane %v6571_v30, 2  ;;  %v8930_v62 = vrot.slane %v6587_v37, 1 }
 0x1ab   :  { %v688_v48 = vpop.permute.xlu0 %687  ;;  %4593 = vmatprep.mubr.msk.bf16.mxu0 %vm5008_vm7, %v8936_v50  ;;  %v6618_v56 = vsel %vm9019_vm13, %v8929_v20, %v798_v10 }
 0x1ac   :  { %1231 = vrot.lane.b32.xlu1 %v1116_v13, %s5003_s21  ;;  %v1998_v55 = vsel %vm1958_vm8, %v4932_v49, %v688_v48  ;;  %v6643_v20 = vor.u32 %v1644_v0, %v1643_v12 }
 0x1ad   :  { %v6598_v13 = vpop.f32.mrb[20].mxu0  ;;  %967 = vrot.lane.b32.xlu0 %v6579_v21, %s4999_s15  ;;  %v2082_v26 = vsel %vm2042_vm9, %v1998_v55, %v855_v17  ;;  %v8935_v17 = vrot.slane %v6434_v9, 1 }
 0x1ae   :  { %v1218_v7 = vpop.permute.xlu1 %1217  ;;  %v4256_v18 = vpack.c.bf16 %v6598_v13, %v6598_v13  ;;  %v4539_v48 = vpop.f32.mrb[21].mxu0  ;;  %v6609_v49 = vmul.f32 %v6598_v13, %v6598_v13 }
 0x1af   :  { %v6611_v28 = vpop.f32.mrb[22].mxu0  ;;  %v954_v60 = vpop.permute.xlu0 %953 }
 0x1b0   :  { %9020 = vst [vmem:[#allocation18_spill] sm:$0xff] %v6609_v49  ;;  %711 = vrot.lane.b32.xlu1 %v581_v40, %s5004_s22  ;;  %3426 = vst.msk [vmem:[%s8923_s3 + $0x28] sm:$0xf] %vm3415_vm0, %v4256_v18  ;;  %v4257_v48 = vpack.c.bf16 %v6611_v28, %v6611_v28  ;;  %v6631_v55 = vmul.f32 %v6611_v28, %v6611_v28  ;;  %v2165_v40 = vsel %vm2125_vm10, %v2082_v26, %v954_v60  ;;  %v4540_v8 = vpop.f32.mrb[23].mxu0 }
 0x1b1   :  { %1398 = vrot.lane.b32.xlu0 %v6474_v16, %s5002_s20  ;;  %v6641_v18 = vsel %vm1264_vm1, %v1318_v58, %v8931_v35  ;;  %v6652_v60 = vshrl.u32 %v6518_v27, 16  ;;  %v6655_v16 = vshll.u32 %v6587_v37, 16  ;;  %v6658_v26 = vshrl.u32 %v6587_v37, 16 }
 0x1b2   :  { %9021 = vst [vmem:[#allocation19_spill] sm:$0xff] %v6631_v55  ;;  %v1484_v14 = vpop.permute.xlu1 %1483  ;;  %3427 = vst.msk [vmem:[%s8923_s3 + $0x2c] sm:$0xf] %vm3415_vm0, %v4257_v48  ;;  %v2248_v0 = vsel %vm2208_vm11, %v2165_v40, %v1218_v7  ;;  %v6667_v48 = vsel %vm9019_vm13, %v798_v10, %v8930_v62  ;;  %v544_v8 = vor.u32 %v6337_v29, %v540_v5  ;;  %v1130_v10 = vrot.slane %v6543_v42, 2 }
 0x1b3   :  { %v1385_v12 = vpop.permute.xlu0 %1384  ;;  %v1646_v40 = vsel %vm1530_vm5, %v6486_v44, %v6643_v20  ;;  %v1133_v54 = vrot.slane %v6658_v26, 1  ;;  %v1134_v29 = vrot.slane %v6655_v16, 2  ;;  %vm9022_vm13 = vcmask 195584  }
 0x1b4   :  { %878 = vrot.lane.b32.xlu1 %v6618_v56, %s5000_s16  ;;  %v2331_v58 = vsel %vm2291_vm12, %v2248_v0, %v1385_v12  ;;  %v8934_v0 = vrot.slane %v6549_v19, 3  ;;  %v1129_v12 = vrot.slane %v6652_v60, 1  ;;  %v549_v44 = vsel %vm321_vm3, %v544_v8, %v8935_v17  ;;  %v6705_v8 = vld [vmem:[%s8920_s0 + $0x110] sm:$0xff]  }
 0x1b5   :  { %1497 = vrot.lane.b32.xlu0 %v6641_v18, %s5001_s19  ;;  %v2414_v5 = vsel %vm9022_vm13, %v2331_v58, %v1484_v14  ;;  %v9027_v49 = vrot.slane %v6423_v3, 1  ;;  %vm9028_vm13 = vcmask 1046528   ;;  %v1659_v1 = vrot.slane %v6658_v26, 2 }
 0x1b6   :  { %v1915_v7 = vpop.permute.xlu1 %1914  ;;  %v1849_v14 = vsel %vm1794_vm4, %v1846_v15, %v8934_v0  ;;  %v6698_v58 = vor.u32 %v1130_v10, %v1129_v12  ;;  %v4933_v15 = vld [vmem:[%s8920_s0 + $0xa0] sm:$0xff]  }
 0x1b7   :  { %v1748_v62 = vpop.permute.xlu0 %1747 }
 0x1b8   :  { %977 = vrot.lane.b32.xlu1 %v6667_v48, %s4999_s15  ;;  %v2497_v35 = vsel %vm2457_vm14, %v2414_v5, %v1748_v62  ;;  %v6700_v62 = vor.u32 %v1134_v29, %v1133_v54  ;;  %v1328_v5 = vrot.slane %v6587_v37, 2 }
 0x1b9   :  { %1761 = vrot.lane.b32.xlu0 %v1646_v40, %s5006_s26  ;;  %v2580_v36 = vsel %vm2540_vm15, %v2497_v35, %v1915_v7  ;;  %v1118_v7 = vrot.slane %v6568_v31, 2 }
 0x1ba   :  { %v857_v53 = vpop.permute.xlu1 %856  ;;  %4594 = vmatmul.mubr.msk.bf16.gmra.mrb[76].mxu0 %vm2643_vm6, %v2580_v36  ;;  %v1117_v36 = vrot.slane %v6571_v30, 1  ;;  %v1136_v17 = vsel %vm1000_vm2, %v6698_v58, %v6700_v62 }
 0x1bb   :  { %v690_v40 = vpop.permute.xlu0 %689  ;;  %4597 = vmatprep.mubr.msk.bf16.mxu0 %vm5008_vm7, %v8936_v50  ;;  %v6728_v50 = vshll.u32 %v6705_v8, 16 }
 0x1bc   :  { %703 = vrot.lane.b32.xlu1 %v549_v44, %s5004_s22  ;;  %v2000_v12 = vsel %vm1958_vm8, %v4933_v15, %v690_v40  ;;  %v6731_v40 = vshrl.u32 %v6705_v8, 16  ;;  %v6749_v43 = vor.u32 %v1118_v7, %v1117_v36  ;;  %v9030_v7 = vrot.slane %v6518_v27, 2 }
 0x1bd   :  { %v6717_v10 = vpop.f32.mrb[24].mxu0  ;;  %1928 = vrot.lane.b32.xlu0 %v1849_v14, %s5005_s25  ;;  %v2084_v29 = vsel %vm2042_vm9, %v2000_v12, %v857_v53 }
 0x1be   :  { %9023 = vst [vmem:[#allocation20_spill] sm:$0xff] %v6717_v10  ;;  %v1220_v54 = vpop.permute.xlu1 %1219  ;;  %v4258_v44 = vpack.c.bf16 %v6717_v10, %v6717_v10  ;;  %v4543_v0 = vpop.f32.mrb[25].mxu0  ;;  %v6735_v14 = vmul.f32 %v6717_v10, %v6717_v10 }
 0x1bf   :  { %v6737_v15 = vpop.f32.mrb[26].mxu0  ;;  %v956_v35 = vpop.permute.xlu0 %955  ;;  %v9026_v0 = vrot.slane %v6549_v19, 1 }
 0x1c0   :  { %9024 = vst [vmem:[#allocation21_spill] sm:$0xff] %v6735_v14  ;;  %9025 = vst [vmem:[#allocation22_spill] sm:$0xff] %v6737_v15  ;;  %870 = vrot.lane.b32.xlu1 %v6579_v21, %s5000_s16  ;;  %v4259_v53 = vpack.c.bf16 %v6737_v15, %v6737_v15  ;;  %v6761_v12 = vmul.f32 %v6737_v15, %v6737_v15  ;;  %v2167_v3 = vsel %vm2125_vm10, %v2084_v29, %v956_v35 }
 0x1c1   :  { %v6747_v55 = vsel %vm9028_vm13, %v9027_v49, %v9026_v0  ;;  %3428 = vst.msk [vmem:[%s8923_s3 + $0x30] sm:$0xf] %vm3415_vm0, %v4258_v44  ;;  %v4544_v49 = vpop.f32.mrb[27].mxu0  ;;  %1241 = vrot.lane.b32.xlu0 %v1136_v17, %s5003_s21  ;;  %v6768_v44 = vsel %vm1264_vm1, %v9030_v7, %v1328_v5  ;;  %v1660_v17 = vrot.slane %v6655_v16, 3  ;;  %v1663_v29 = vrot.slane %v6731_v40, 2 }
 0x1c2   :  { %9029 = vst [vmem:[#allocation23_spill] sm:$0xff] %v6761_v12  ;;  %v1486_v36 = vpop.permute.xlu1 %1485  ;;  %3429 = vst.msk [vmem:[%s8923_s3 + $0x34] sm:$0xf] %vm3415_vm0, %v4259_v53  ;;  %v1664_v49 = vrot.slane %v6728_v50, 3  ;;  %v2250_v7 = vsel %vm2208_vm11, %v2167_v3, %v1220_v54  ;;  %v1120_v53 = vsel %vm1000_vm2, %v6535_v24, %v6749_v43  ;;  %v9031_v14 = vrot.slane %v6705_v8, 2 }
 0x1c3   :  { %v1387_v21 = vpop.permute.xlu0 %1386  ;;  %v6795_v54 = vor.u32 %v1660_v17, %v1659_v1  ;;  %vm9032_vm13 = vcmask 195584   ;;  %v8949_v1 = vrot.slane %v6655_v16, 1 }
 0x1c4   :  { %969 = vrot.lane.b32.xlu1 %v6747_v55, %s4999_s15  ;;  %v2333_v0 = vsel %vm2291_vm12, %v2250_v7, %v1387_v21  ;;  %v6793_v12 = vsel %vm1264_vm1, %v1328_v5, %v9031_v14  ;;  %v6797_v3 = vor.u32 %v1664_v49, %v1663_v29  ;;  %v6802_v21 = vld [vmem:[%s8920_s0 + $0xf0] sm:$0xff]   ;;  %v584_v5 = vor.u32 %v6652_v60, %v9033_v6 }
 0x1c5   :  { %1408 = vrot.lane.b32.xlu0 %v6768_v44, %s5002_s20  ;;  %v2416_v24 = vsel %vm9032_vm13, %v2333_v0, %v1486_v36  ;;  %v8952_v36 = vrot.slane %v6705_v8, 3  ;;  %v6821_v6 = vshll.u32 %v6802_v21, 16  ;;  %v6824_v49 = vshrl.u32 %v6802_v21, 16 }
 0x1c6   :  { %v1917_v35 = vpop.permute.xlu1 %1916  ;;  %v1666_v0 = vsel %vm1530_vm5, %v6795_v54, %v6797_v3  ;;  %vm9044_vm13 = vcmask 1046528  }
 0x1c7   :  { %v1750_v7 = vpop.permute.xlu0 %1749 }
 0x1c8   :  { %1233 = vrot.lane.b32.xlu1 %v1120_v53, %s5003_s21  ;;  %v2499_v32 = vsel %vm2457_vm14, %v2416_v24, %v1750_v7  ;;  %v589_v7 = vsel %vm321_vm3, %v584_v5, %v8949_v1  ;;  %v1648_v5 = vrot.slane %v6821_v6, 3 }
 0x1c9   :  { %1507 = vrot.lane.b32.xlu0 %v6793_v12, %s5001_s19  ;;  %v2582_v14 = vsel %vm2540_vm15, %v2499_v32, %v1917_v35  ;;  %v9034_v32 = vmov 0.0   ;;  %v4934_v35 = vld [vmem:[%s8920_s0 + $0xa8] sm:$0xff]  }
 0x1ca   :  { %v859_v17 = vpop.permute.xlu1 %858  ;;  %4598 = vmatmul.mubr.msk.bf16.gmra.mrb[80].mxu0 %vm2643_vm6, %v2582_v14 }
 0x1cb   :  { %v692_v53 = vpop.permute.xlu0 %691  ;;  %4601 = vmatprep.mubr.msk.bf16.mxu0 %vm5008_vm7, %v9034_v32 }
 0x1cc   :  { %1400 = vrot.lane.b32.xlu1 %v6641_v18, %s5002_s20  ;;  %v2002_v24 = vsel %vm1958_vm8, %v4934_v35, %v692_v53  ;;  %v9036_v18 = vrot.slane %v6587_v37, 3  ;;  %v1647_v35 = vrot.slane %v6824_v49, 2 }
 0x1cd   :  { %v6837_v14 = vpop.f32.mrb[28].mxu0  ;;  %1771 = vrot.lane.b32.xlu0 %v1666_v0, %s5006_s26  ;;  %v2086_v57 = vsel %vm2042_vm9, %v2002_v24, %v859_v17 }
 0x1ce   :  { %9035 = vst [vmem:[#allocation24_spill] sm:$0xff] %v6837_v14  ;;  %v1222_v29 = vpop.permute.xlu1 %1221  ;;  %v1859_v34 = vsel %vm1794_vm4, %v9036_v18, %v8952_v36  ;;  %v4260_v45 = vpack.c.bf16 %v6837_v14, %v6837_v14  ;;  %v4547_v52 = vpop.f32.mrb[29].mxu0  ;;  %v6852_v0 = vmul.f32 %v6837_v14, %v6837_v14  ;;  %v9040_v36 = vrot.slane %v6802_v21, 2 }
 0x1cf   :  { %v6854_v1 = vpop.f32.mrb[30].mxu0  ;;  %v958_v47 = vpop.permute.xlu0 %957  ;;  %v9041_v18 = vrot.slane %v6549_v19, 2 }
 0x1d0   :  { %9037 = vst [vmem:[#allocation25_spill] sm:$0xff] %v6852_v0  ;;  %9038 = vst [vmem:[#allocation26_spill] sm:$0xff] %v6854_v1  ;;  %713 = vrot.lane.b32.xlu1 %v589_v7, %s5004_s22  ;;  %v4261_v52 = vpack.c.bf16 %v6854_v1, %v6854_v1  ;;  %v6869_v53 = vmul.f32 %v6854_v1, %v6854_v1  ;;  %v2169_v17 = vsel %vm2125_vm10, %v2086_v57, %v958_v47  ;;  %v4548_v24 = vpop.f32.mrb[31].mxu0 }
 0x1d1   :  { %3430 = vst.msk [vmem:[%s8923_s3 + $0x38] sm:$0xf] %vm3415_vm0, %v4260_v45  ;;  %1938 = vrot.lane.b32.xlu0 %v1859_v34, %s5005_s25  ;;  %v6884_v25 = vsel %vm1264_vm1, %v9041_v18, %v9040_v36  ;;  %v6886_v47 = vor.u32 %v1648_v5, %v1647_v35  ;;  %v2252_v57 = vsel %vm2208_vm11, %v2169_v17, %v1222_v29  ;;  %v9042_v24 = vrot.slane %v6705_v8, 1 }
 0x1d2   :  { %9039 = vst [vmem:[#allocation27_spill] sm:$0xff] %v6869_v53  ;;  %v1488_v7 = vpop.permute.xlu1 %1487  ;;  %3431 = vst.msk [vmem:[%s8923_s3 + $0x3c] sm:$0xf] %vm3415_vm0, %v4261_v52  ;;  %v9043_v45 = vrot.slane %v6587_v37, 1  ;;  %v9045_v36 = vrot.slane %v6434_v9, 1  ;;  %v8956_v5 = vrot.slane %v6568_v31, 1 }
 0x1d3   :  { %v1389_v34 = vpop.permute.xlu0 %1388  ;;  %v8955_v18 = vrot.slane %v6802_v21, 3  ;;  %v1137_v17 = vrot.slane %v6731_v40, 1 }
 0x1d4   :  { %880 = vrot.lane.b32.xlu1 %v6667_v48, %s5000_s16  ;;  %v2335_v52 = vsel %vm2291_vm12, %v2252_v57, %v1389_v34  ;;  %v6897_v0 = vsel %vm9044_vm13, %v9043_v45, %v9042_v24  ;;  %v552_v35 = vor.u32 %v6437_v59, %v9045_v36  ;;  %v1650_v48 = vsel %vm1530_vm5, %v6643_v20, %v6886_v47 }
 0x1d5   :  { %1499 = vrot.lane.b32.xlu0 %v6884_v25, %s5001_s19  ;;  %v1138_v45 = vrot.slane %v6728_v50, 2  ;;  %vm9046_vm13 = vcmask 195584  }
 0x1d6   :  { %v1919_v29 = vpop.permute.xlu1 %1918  ;;  %v2418_v9 = vsel %vm9046_vm13, %v2335_v52, %v1488_v7  ;;  %v557_v34 = vsel %vm321_vm3, %v552_v35, %v8956_v5  ;;  %v9047_v7 = vrot.slane %v6549_v19, 3  ;;  %vm9050_vm13 = vcmask 1046528  }
 0x1d7   :  { %v1752_v57 = vpop.permute.xlu0 %1751  ;;  %v6926_v36 = vor.u32 %v1138_v45, %v1137_v17  ;;  %v4935_v17 = vld [vmem:[%s8920_s0 + $0xb0] sm:$0xff]  }
 0x1d8   :  { %979 = vrot.lane.b32.xlu1 %v6897_v0, %s4999_s15  ;;  %v2501_v59 = vsel %vm2457_vm14, %v2418_v9, %v1752_v57  ;;  %v1851_v52 = vsel %vm1794_vm4, %v9047_v7, %v8955_v18  ;;  %v6931_v9 = vld [vmem:[%s8920_s0 + $0x118] sm:$0xff]   ;;  %v1122_v57 = vrot.slane %v6821_v6, 2 }
 0x1d9   :  { %1763 = vrot.lane.b32.xlu0 %v1650_v48, %s5006_s26  ;;  %v2584_v20 = vsel %vm2540_vm15, %v2501_v59, %v1919_v29  ;;  %v1121_v48 = vrot.slane %v6824_v49, 1  ;;  %v1140_v18 = vsel %vm1000_vm2, %v6700_v62, %v6926_v36  ;;  %v6948_v5 = vshll.u32 %v6931_v9, 16 }
 0x1da   :  { %v861_v24 = vpop.permute.xlu1 %860  ;;  %4602 = vmatmul.mubr.msk.bf16.gmra.mrb[84].mxu0 %vm2643_vm6, %v2584_v20  ;;  %v6951_v29 = vshrl.u32 %v6931_v9, 16 }
 0x1db   :  { %v694_v35 = vpop.permute.xlu0 %693  ;;  %4605 = vmatprep.mubr.msk.bf16.mxu0 %vm5008_vm7, %v9034_v32  ;;  %v6965_v1 = vor.u32 %v1122_v57, %v1121_v48  ;;  %v8968_v48 = vrot.slane %v6931_v9, 2 }
 0x1dc   :  { %705 = vrot.lane.b32.xlu1 %v557_v34, %s5004_s22  ;;  %v2004_v45 = vsel %vm1958_vm8, %v4935_v17, %v694_v35  ;;  %v1667_v57 = vrot.slane %v6951_v29, 2 }
 0x1dd   :  { %v2828_v59 = vpop.f32.mrb[32].mxu0  ;;  %1930 = vrot.lane.b32.xlu0 %v1851_v52, %s5005_s25  ;;  %v2088_v35 = vsel %vm2042_vm9, %v2004_v45, %v861_v24  ;;  %v9048_v52 = vrot.slane %v6802_v21, 1 }
 0x1de   :  { %v1224_v20 = vpop.permute.xlu1 %1223  ;;  %v4262_v34 = vpack.c.bf16 %v2828_v59, %v2828_v59  ;;  %v4551_v7 = vpop.f32.mrb[33].mxu0  ;;  %v6953_v53 = vmul.f32 %v2828_v59, %v2828_v59 }
 0x1df   :  { %v2831_v14 = vpop.f32.mrb[34].mxu0  ;;  %v960_v17 = vpop.permute.xlu0 %959  ;;  %v9049_v7 = vrot.slane %v6549_v19, 1 }
 0x1e0   :  { %872 = vrot.lane.b32.xlu1 %v6747_v55, %s5000_s16  ;;  %3432 = vst.msk [vmem:[%s8923_s3 + $0x40] sm:$0xf] %vm3415_vm0, %v4262_v34  ;;  %v4263_v10 = vpack.c.bf16 %v2831_v14, %v2831_v14  ;;  %v4681_v24 = vpack.c.bf16 %v2831_v14, %v2828_v59  ;;  %v6971_v45 = vmul.f32 %v2831_v14, %v2831_v14  ;;  %v4552_v15 = vpop.f32.mrb[35].mxu0  ;;  %v1668_v59 = vrot.slane %v6948_v5, 3 }
 0x1e1   :  { %v6963_v62 = vsel %vm9050_vm13, %v9049_v7, %v9048_v52  ;;  %v2171_v55 = vsel %vm2125_vm10, %v2088_v35, %v960_v17  ;;  %1243 = vrot.lane.b32.xlu0 %v1140_v18, %s5003_s21  ;;  %v9051_v17 = vrot.slane %v6705_v8, 2  ;;  %vm9052_vm13 = vcmask 195584  }
 0x1e2   :  { %v1490_v19 = vpop.permute.xlu1 %1489  ;;  %3433 = vst.msk [vmem:[%s8923_s3 + $0x44] sm:$0xf] %vm3415_vm0, %v4263_v10  ;;  %4682 = vmatprep.subr.bf16.mxu1 %v4681_v24  ;;  %v2254_v15 = vsel %vm2208_vm11, %v2171_v55, %v1224_v20  ;;  %v1124_v10 = vsel %vm1000_vm2, %v6749_v43, %v6965_v1  ;;  %v7000_v52 = vor.u32 %v1668_v59, %v1667_v57  ;;  %v9053_v55 = vrot.slane %v6655_v16, 1  ;;  %v4936_v16 = vld [vmem:[%s8920_s0 + $0xb8] sm:$0xff]  }
 0x1e3   :  { %v1391_v34 = vpop.permute.xlu0 %1390  ;;  %v6998_v20 = vsel %vm1264_vm1, %v9051_v17, %v8968_v48  ;;  %v8962_v59 = vrot.slane %v6931_v9, 3 }
 0x1e4   :  { %971 = vrot.lane.b32.xlu1 %v6963_v62, %s4999_s15  ;;  %v2337_v18 = vsel %vm2291_vm12, %v2254_v15, %v1391_v34  ;;  %v8963_v15 = vrot.slane %v6728_v50, 1 }
 0x1e5   :  { %1410 = vrot.lane.b32.xlu0 %v6793_v12, %s5002_s20  ;;  %v2420_v7 = vsel %vm9052_vm13, %v2337_v18, %v1490_v19  ;;  %v592_v12 = vor.u32 %v6658_v26, %v9053_v55  ;;  %v1670_v19 = vsel %vm1530_vm5, %v6797_v3, %v7000_v52  ;;  %v1651_v55 = vrot.slane %v6540_v61, 2 }
 0x1e6   :  { %v1921_v35 = vpop.permute.xlu1 %1920  ;;  %vm9057_vm13 = vcmask 1046528  }
 0x1e7   :  { %v1754_v24 = vpop.permute.xlu0 %1753 }
 0x1e8   :  { %1235 = vrot.lane.b32.xlu1 %v1124_v10, %s5003_s21  ;;  %v2503_v43 = vsel %vm2457_vm14, %v2420_v7, %v1754_v24  ;;  %v597_v10 = vsel %vm321_vm3, %v592_v12, %v8963_v15  ;;  %v1652_v12 = vrot.slane %v6500_v2, 3 }
 0x1e9   :  { %1509 = vrot.lane.b32.xlu0 %v6998_v20, %s5001_s19  ;;  %v2586_v34 = vsel %vm2540_vm15, %v2503_v43, %v1921_v35  ;;  %v8967_v43 = vrot.slane %v6463_v23, 2 }
 0x1ea   :  { %v863_v57 = vpop.permute.xlu1 %862  ;;  %4606 = vmatmul.mubr.msk.bf16.gmra.mrb[88].mxu0 %vm2643_vm6, %v2586_v34  ;;  %v7075_v15 = vor.u32 %v1652_v12, %v1651_v55  ;;  %v9058_v55 = vrot.slane %v6568_v31, 1 }
 0x1eb   :  { %v696_v18 = vpop.permute.xlu0 %695  ;;  %4609 = vmatprep.mubr.msk.bf16.mxu0 %vm5008_vm7, %v9034_v32 }
 0x1ec   :  { %1402 = vrot.lane.b32.xlu1 %v6884_v25, %s5002_s20  ;;  %v2006_v26 = vsel %vm1958_vm8, %v4936_v16, %v696_v18  ;;  %v9054_v25 = vrot.slane %v6705_v8, 3  ;;  %v560_v12 = vor.u32 %v6571_v30, %v9058_v55 }
 0x1ed   :  { %v7028_v35 = vpop.f32.mrb[36].mxu0  ;;  %1773 = vrot.lane.b32.xlu0 %v1670_v19, %s5006_s26  ;;  %v2090_v18 = vsel %vm2042_vm9, %v2006_v26, %v863_v57 }
 0x1ee   :  { %v1226_v3 = vpop.permute.xlu1 %1225  ;;  %v1861_v17 = vsel %vm1794_vm4, %v9054_v25, %v8962_v59  ;;  %v4264_v7 = vpack.c.bf16 %v7028_v35, %v7028_v35  ;;  %v4555_v24 = vpop.f32.mrb[37].mxu0  ;;  %v7043_v34 = vmul.f32 %v7028_v35, %v7028_v35  ;;  %v8964_v25 = vrot.slane %v6931_v9, 1 }
 0x1ef   :  { %v7045_v19 = vpop.f32.mrb[38].mxu0  ;;  %v962_v16 = vpop.permute.xlu0 %961 }
 0x1f0   :  { %715 = vrot.lane.b32.xlu1 %v597_v10, %s5004_s22  ;;  %3434 = vst.msk [vmem:[%s8923_s3 + $0x48] sm:$0xf] %vm3415_vm0, %v4264_v7  ;;  %v4265_v24 = vpack.c.bf16 %v7045_v19, %v7045_v19  ;;  %v7060_v59 = vmul.f32 %v7045_v19, %v7045_v19  ;;  %v2173_v57 = vsel %vm2125_vm10, %v2090_v18, %v962_v16  ;;  %v4556_v26 = vpop.f32.mrb[39].mxu0  ;;  %v9055_v7 = vrot.slane %v6802_v21, 2 }
 0x1f1   :  { %1940 = vrot.lane.b32.xlu0 %v1861_v17, %s5005_s25  ;;  %v2256_v17 = vsel %vm2208_vm11, %v2173_v57, %v1226_v3  ;;  %v9056_v26 = vrot.slane %v6705_v8, 1  ;;  %v8966_v18 = vrot.slane %v6821_v6, 1  ;;  %v8965_v57 = vrot.slane %v6463_v23, 3 }
 0x1f2   :  { %v1492_v10 = vpop.permute.xlu1 %1491  ;;  %3435 = vst.msk [vmem:[%s8923_s3 + $0x4c] sm:$0xf] %vm3415_vm0, %v4265_v24  ;;  %v7073_v14 = vsel %vm1264_vm1, %v9055_v7, %v8967_v43  ;;  %v1141_v8 = vrot.slane %v6951_v29, 1 }
 0x1f3   :  { %v1393_v16 = vpop.permute.xlu0 %1392  ;;  %v7088_v7 = vsel %vm9057_vm13, %v9056_v26, %v8964_v25  ;;  %vm9059_vm13 = vcmask 195584   ;;  %v565_v26 = vsel %vm321_vm3, %v560_v12, %v8966_v18 }
 0x1f4   :  { %882 = vrot.lane.b32.xlu1 %v6897_v0, %s5000_s16  ;;  %v2339_v24 = vsel %vm2291_vm12, %v2256_v17, %v1393_v16  ;;  %v1654_v0 = vsel %vm1530_vm5, %v6886_v47, %v7075_v15  ;;  %v1142_v17 = vrot.slane %v6948_v5, 2 }
 0x1f5   :  { %1501 = vrot.lane.b32.xlu0 %v7073_v14, %s5001_s19  ;;  %v2422_v31 = vsel %vm9059_vm13, %v2339_v24, %v1492_v10  ;;  %v9060_v10 = vrot.slane %v6802_v21, 3  ;;  %vm9064_vm13 = vcmask 1046528  }
 0x1f6   :  { %v1923_v3 = vpop.permute.xlu1 %1922  ;;  %v7117_v25 = vor.u32 %v1142_v17, %v1141_v8  ;;  %v4937_v8 = vld [vmem:[%s8920_s0 + $0xc0] sm:$0xff]  }
 0x1f7   :  { %v1756_v16 = vpop.permute.xlu0 %1755  ;;  %v1853_v24 = vsel %vm1794_vm4, %v9060_v10, %v8965_v57 }
 0x1f8   :  { %981 = vrot.lane.b32.xlu1 %v7088_v7, %s4999_s15  ;;  %v2505_v30 = vsel %vm2457_vm14, %v2422_v31, %v1756_v16  ;;  %v7122_v31 = vld [vmem:[%s8920_s0 + $0x120] sm:$0xff]  }
 0x1f9   :  { %1765 = vrot.lane.b32.xlu0 %v1654_v0, %s5006_s26  ;;  %v2588_v47 = vsel %vm2540_vm15, %v2505_v30, %v1923_v3  ;;  %v1125_v3 = vrot.slane %v6540_v61, 1  ;;  %v1126_v0 = vrot.slane %v6500_v2, 2  ;;  %v7142_v10 = vshll.u32 %v7122_v31, 16 }
 0x1fa   :  { %v865_v55 = vpop.permute.xlu1 %864  ;;  %4610 = vmatmul.mubr.msk.bf16.gmra.mrb[92].mxu0 %vm2643_vm6, %v2588_v47  ;;  %v1144_v47 = vsel %vm1000_vm2, %v6926_v36, %v7117_v25  ;;  %v7145_v57 = vshrl.u32 %v7122_v31, 16  ;;  %v9062_v36 = vrot.slane %v6463_v23, 1 }
 0x1fb   :  { %v698_v12 = vpop.permute.xlu0 %697  ;;  %4613 = vmatprep.mubr.msk.bf16.mxu0 %vm5008_vm7, %v9034_v32  ;;  %v7163_v48 = vor.u32 %v1126_v0, %v1125_v3  ;;  %v8975_v0 = vrot.slane %v7122_v31, 2 }
 0x1fc   :  { %707 = vrot.lane.b32.xlu1 %v565_v26, %s5004_s22  ;;  %v2008_v17 = vsel %vm1958_vm8, %v4937_v8, %v698_v12 }
 0x1fd   :  { %v7133_v16 = vpop.f32.mrb[40].mxu0  ;;  %1932 = vrot.lane.b32.xlu0 %v1853_v24, %s5005_s25  ;;  %v2092_v8 = vsel %vm2042_vm9, %v2008_v17, %v865_v55 }
 0x1fe   :  { %v1228_v30 = vpop.permute.xlu1 %1227  ;;  %v4266_v26 = vpack.c.bf16 %v7133_v16, %v7133_v16  ;;  %v4559_v61 = vpop.f32.mrb[41].mxu0  ;;  %v7149_v12 = vmul.f32 %v7133_v16, %v7133_v16 }
 0x1ff   :  { %v7151_v24 = vpop.f32.mrb[42].mxu0  ;;  %v964_v18 = vpop.permute.xlu0 %963  ;;  %v9063_v61 = vrot.slane %v6802_v21, 1 }
 0x200   :  { %9061 = vst [vmem:[#allocation28_spill] sm:$0xff] %v7149_v12  ;;  %874 = vrot.lane.b32.xlu1 %v6963_v62, %s5000_s16  ;;  %3436 = vst.msk [vmem:[%s8923_s3 + $0x50] sm:$0xf] %vm3415_vm0, %v4266_v26  ;;  %v4267_v55 = vpack.c.bf16 %v7151_v24, %v7151_v24  ;;  %v7175_v17 = vmul.f32 %v7151_v24, %v7151_v24  ;;  %v2175_v21 = vsel %vm2125_vm10, %v2092_v8, %v964_v18 }
 0x201   :  { %v7161_v43 = vsel %vm9064_vm13, %v9063_v61, %v9062_v36  ;;  %v4560_v36 = vpop.f32.mrb[43].mxu0  ;;  %1245 = vrot.lane.b32.xlu0 %v1144_v47, %s5003_s21  ;;  %v1671_v26 = vrot.slane %v7145_v57, 2  ;;  %v1672_v61 = vrot.slane %v7142_v10, 3  ;;  %v2258_v18 = vsel %vm2208_vm11, %v2175_v21, %v1228_v30 }
 0x202   :  { %9065 = vst [vmem:[#allocation29_spill] sm:$0xff] %v7175_v17  ;;  %v1494_v3 = vpop.permute.xlu1 %1493  ;;  %3437 = vst.msk [vmem:[%s8923_s3 + $0x54] sm:$0xf] %vm3415_vm0, %v4267_v55  ;;  %v1128_v55 = vsel %vm1000_vm2, %v6965_v1, %v7163_v48  ;;  %v9066_v62 = vrot.slane %v6931_v9, 2  ;;  %vm9067_vm13 = vcmask 195584   ;;  %v8972_v17 = vrot.slane %v6948_v5, 1 }
 0x203   :  { %v1395_v8 = vpop.permute.xlu0 %1394  ;;  %v7204_v21 = vor.u32 %v1672_v61, %v1671_v26 }
 0x204   :  { %973 = vrot.lane.b32.xlu1 %v7161_v43, %s4999_s15  ;;  %v2341_v47 = vsel %vm2291_vm12, %v2258_v18, %v1395_v8  ;;  %v7202_v30 = vsel %vm1264_vm1, %v9066_v62, %v8975_v0  ;;  %v9068_v8 = vrot.slane %v6728_v50, 1  ;;  %v4938_v50 = vld [vmem:[%s8920_s0 + $0xc8] sm:$0xff]  }
 0x205   :  { %1412 = vrot.lane.b32.xlu0 %v6998_v20, %s5002_s20  ;;  %v2424_v12 = vsel %vm9067_vm13, %v2341_v47, %v1494_v3  ;;  %v1674_v3 = vsel %vm1530_vm5, %v7000_v52, %v7204_v21  ;;  %vm9075_vm13 = vcmask 1046528  }
 0x206   :  { %v1925_v36 = vpop.permute.xlu1 %1924  ;;  %v600_v20 = vor.u32 %v6731_v40, %v9068_v8  ;;  %v1655_v8 = vrot.slane %v6652_v60, 2 }
 0x207   :  { %v1758_v18 = vpop.permute.xlu0 %1757 }
 0x208   :  { %1237 = vrot.lane.b32.xlu1 %v1128_v55, %s5003_s21  ;;  %v2507_v1 = vsel %vm2457_vm14, %v2424_v12, %v1758_v18  ;;  %v8971_v12 = vrot.slane %v7122_v31, 3  ;;  %v605_v47 = vsel %vm321_vm3, %v600_v20, %v8972_v17  ;;  %v9069_v18 = vrot.slane %v6931_v9, 3 }
 0x209   :  { %1511 = vrot.lane.b32.xlu0 %v7202_v30, %s5001_s19  ;;  %v2590_v62 = vsel %vm2540_vm15, %v2507_v1, %v1925_v36 }
 0x20a   :  { %v867_v26 = vpop.permute.xlu1 %866  ;;  %4614 = vmatmul.mubr.msk.bf16.gmra.mrb[96].mxu0 %vm2643_vm6, %v2590_v62  ;;  %v1863_v1 = vsel %vm1794_vm4, %v9069_v18, %v8971_v12  ;;  %v1656_v62 = vrot.slane %v6543_v42, 3  ;;  %v9073_v12 = vrot.slane %v6463_v23, 2 }
 0x20b   :  { %v700_v61 = vpop.permute.xlu0 %699  ;;  %4617 = vmatprep.mubr.msk.bf16.mxu0 %vm5008_vm7, %v9034_v32 }
 0x20c   :  { %1404 = vrot.lane.b32.xlu1 %v7073_v14, %s5002_s20  ;;  %v2010_v40 = vsel %vm1958_vm8, %v4938_v50, %v700_v61  ;;  %v7278_v17 = vor.u32 %v1656_v62, %v1655_v8  ;;  %v9076_v8 = vrot.slane %v6821_v6, 1 }
 0x20d   :  { %v7232_v52 = vpop.f32.mrb[44].mxu0  ;;  %1775 = vrot.lane.b32.xlu0 %v1674_v3, %s5006_s26  ;;  %v2094_v61 = vsel %vm2042_vm9, %v2010_v40, %v867_v26 }
 0x20e   :  { %v1230_v55 = vpop.permute.xlu1 %1229  ;;  %v4268_v14 = vpack.c.bf16 %v7232_v52, %v7232_v52  ;;  %v4563_v36 = vpop.f32.mrb[45].mxu0  ;;  %v7246_v20 = vmul.f32 %v7232_v52, %v7232_v52  ;;  %v568_v62 = vor.u32 %v6824_v49, %v9076_v8  ;;  %v9078_v49 = vrot.slane %v6500_v2, 1  ;;  %v7324_v2 = vld [vmem:[%s8920_s0 + $0x128] sm:$0xff]  }
 0x20f   :  { %v7248_v3 = vpop.f32.mrb[46].mxu0  ;;  %v966_v50 = vpop.permute.xlu0 %965  ;;  %v8974_v36 = vrot.slane %v7122_v31, 1 }
 0x210   :  { %9070 = vst [vmem:[#allocation30_spill] sm:$0xff] %v7246_v20  ;;  %717 = vrot.lane.b32.xlu1 %v605_v47, %s5004_s22  ;;  %3438 = vst.msk [vmem:[%s8923_s3 + $0x58] sm:$0xf] %vm3415_vm0, %v4268_v14  ;;  %v4269_v42 = vpack.c.bf16 %v7248_v3, %v7248_v3  ;;  %v7263_v18 = vmul.f32 %v7248_v3, %v7248_v3  ;;  %v2177_v26 = vsel %vm2125_vm10, %v2094_v61, %v966_v50  ;;  %v4564_v40 = vpop.f32.mrb[47].mxu0 }
 0x211   :  { %1942 = vrot.lane.b32.xlu0 %v1863_v1, %s5005_s25  ;;  %v9072_v14 = vrot.slane %v6518_v27, 2  ;;  %v2260_v1 = vsel %vm2208_vm11, %v2177_v26, %v1230_v55  ;;  %v9074_v40 = vrot.slane %v6931_v9, 1  ;;  %v8973_v26 = vrot.slane %v6518_v27, 3 }
 0x212   :  { %9071 = vst [vmem:[#allocation31_spill] sm:$0xff] %v7263_v18  ;;  %v1496_v47 = vpop.permute.xlu1 %1495  ;;  %3439 = vst.msk [vmem:[%s8923_s3 + $0x5c] sm:$0xf] %vm3415_vm0, %v4269_v42  ;;  %v1146_v9 = vrot.slane %v7142_v10, 2 }
 0x213   :  { %v7276_v60 = vsel %vm1264_vm1, %v9073_v12, %v9072_v14  ;;  %v1397_v50 = vpop.permute.xlu0 %1396  ;;  %v7291_v12 = vsel %vm9075_vm13, %v9074_v40, %v8974_v36  ;;  %v1145_v14 = vrot.slane %v7145_v57, 1  ;;  %vm9077_vm13 = vcmask 195584  }
 0x214   :  { %884 = vrot.lane.b32.xlu1 %v7088_v7, %s5000_s16  ;;  %v2343_v42 = vsel %vm2291_vm12, %v2260_v1, %v1397_v50  ;;  %v1658_v7 = vsel %vm1530_vm5, %v7075_v15, %v7278_v17  ;;  %v573_v40 = vsel %vm321_vm3, %v568_v62, %v9078_v49 }
 0x215   :  { %1503 = vrot.lane.b32.xlu0 %v7276_v60, %s5001_s19  ;;  %v2426_v1 = vsel %vm9077_vm13, %v2343_v42, %v1496_v47  ;;  %v9079_v47 = vrot.slane %v6463_v23, 3  ;;  %v7319_v61 = vor.u32 %v1146_v9, %v1145_v14 }
 0x216   :  { %v1927_v55 = vpop.permute.xlu1 %1926 }
 0x217   :  { %v1760_v50 = vpop.permute.xlu0 %1759  ;;  %v1855_v42 = vsel %vm1794_vm4, %v9079_v47, %v8973_v26  ;;  %v1148_v9 = vsel %vm1000_vm2, %v7117_v25, %v7319_v61  ;;  %v9082_v26 = vrot.slane %v7122_v31, 2 }
 0x218   :  { %983 = vrot.lane.b32.xlu1 %v7291_v12, %s4999_s15  ;;  %v2509_v6 = vsel %vm2457_vm14, %v2426_v1, %v1760_v50  ;;  %v7338_v1 = vshll.u32 %v7324_v2, 16  ;;  %v7341_v50 = vshrl.u32 %v7324_v2, 16 }
 0x219   :  { %1767 = vrot.lane.b32.xlu0 %v1658_v7, %s5006_s26  ;;  %v2592_v15 = vsel %vm2540_vm15, %v2509_v6, %v1927_v55 }
 0x21a   :  { %v869_v8 = vpop.permute.xlu1 %868  ;;  %4618 = vmatmul.mubr.msk.bf16.gmra.mrb[100].mxu0 %vm2643_vm6, %v2592_v15  ;;  %v1676_v15 = vrot.slane %v7338_v1, 3 }
 0x21b   :  { %v702_v62 = vpop.permute.xlu0 %701  ;;  %4621 = vmatprep.mubr.msk.bf16.mxu0 %vm5008_vm7, %v9034_v32 }
 0x21c   :  { %709 = vrot.lane.b32.xlu1 %v573_v40, %s5004_s22 }
 0x21d   :  { %v7329_v55 = vpop.f32.mrb[48].mxu0  ;;  %1934 = vrot.lane.b32.xlu0 %v1855_v42, %s5005_s25 }
 0x21e   :  { %v1232_v23 = vpop.permute.xlu1 %1231  ;;  %v4270_v7 = vpack.c.bf16 %v7329_v55, %v7329_v55  ;;  %v4567_v14 = vpop.f32.mrb[49].mxu0  ;;  %v7353_v25 = vmul.f32 %v7329_v55, %v7329_v55 }
 0x21f   :  { %v7343_v6 = vpop.f32.mrb[50].mxu0  ;;  %v968_v49 = vpop.permute.xlu0 %967  ;;  %v1675_v14 = vrot.slane %v7341_v50, 2 }
 0x220   :  { %876 = vrot.lane.b32.xlu1 %v7161_v43, %s5000_s16  ;;  %3440 = vst.msk [vmem:[%s8923_s3 + $0x60] sm:$0xf] %vm3415_vm0, %v4270_v7  ;;  %9080 = vst [vmem:[#allocation32_spill] sm:$0xff] %v7353_v25  ;;  %v4271_v40 = vpack.c.bf16 %v7343_v6, %v7343_v6  ;;  %v7361_v47 = vmul.f32 %v7343_v6, %v7343_v6  ;;  %v4568_v43 = vpop.f32.mrb[51].mxu0  ;;  %v8981_v7 = vrot.slane %v7324_v2, 2 }
 0x221   :  { %1247 = vrot.lane.b32.xlu0 %v1148_v9, %s5003_s21  ;;  %v1132_v9 = vsel %vm1000_vm2, %v7163_v48, %v6698_v58  ;;  %v7395_v25 = vor.u32 %v1676_v15, %v1675_v14  ;;  %v8980_v14 = vrot.slane %v7324_v2, 3 }
 0x222   :  { %9081 = vst [vmem:[#allocation33_spill] sm:$0xff] %v7361_v47  ;;  %v7364_v42 = vpop.permute.xlu1 %711  ;;  %3441 = vst.msk [vmem:[%s8923_s3 + $0x64] sm:$0xf] %vm3415_vm0, %v4271_v40  ;;  %v4939_v40 = vld [vmem:[%s8920_s0 + $0xd0] sm:$0xff]  }
 0x223   :  { %v1399_v36 = vpop.permute.xlu0 %1398  ;;  %v2012_v43 = vsel %vm1958_vm8, %v4939_v40, %v702_v62  ;;  %v9083_v62 = vrot.slane %v6948_v5, 1  ;;  %v8978_v40 = vrot.slane %v7142_v10, 1  ;;  %v1678_v15 = vsel %vm1530_vm5, %v7204_v21, %v7395_v25 }
 0x224   :  { %975 = vrot.lane.b32.xlu1 %v6618_v56, %s4999_s15  ;;  %v7393_v56 = vsel %vm1264_vm1, %v9082_v26, %v8981_v7  ;;  %v2096_v48 = vsel %vm2042_vm9, %v2012_v43, %v869_v8 }
 0x225   :  { %1414 = vrot.lane.b32.xlu0 %v7202_v30, %s5002_s20  ;;  %v608_v30 = vor.u32 %v6951_v29, %v9083_v62  ;;  %v2179_v47 = vsel %vm2125_vm10, %v2096_v48, %v968_v49 }
 0x226   :  { %v7386_v0 = vpop.permute.xlu1 %878  ;;  %v2262_v5 = vsel %vm2208_vm11, %v2179_v47, %v1232_v23  ;;  %v9084_v23 = vrot.slane %v7122_v31, 3 }
 0x227   :  { %v1498_v58 = vpop.permute.xlu0 %1497  ;;  %v613_v29 = vsel %vm321_vm3, %v608_v30, %v8978_v40  ;;  %v2345_v49 = vsel %vm2291_vm12, %v2262_v5, %v1399_v36  ;;  %v8979_v36 = vrot.slane %v7324_v2, 1  ;;  %v1149_v5 = vrot.slane %v7341_v50, 1 }
 0x228   :  { %1239 = vrot.lane.b32.xlu1 %v1132_v9, %s5003_s21  ;;  %v2428_v21 = vsel %vm9077_vm13, %v2345_v49, %v1498_v58  ;;  %v1865_v47 = vsel %vm1794_vm4, %v9084_v23, %v8980_v14  ;;  %v1150_v49 = vrot.slane %v7338_v1, 2  ;;  %vm9088_vm13 = vcmask 1046528  }
 0x229   :  { %1513 = vrot.lane.b32.xlu0 %v7393_v56, %s5001_s19 }
 0x22a   :  { %v7406_v26 = vpop.permute.xlu1 %977 }
 0x22b   :  { %v1762_v8 = vpop.permute.xlu0 %1761 }
 0x22c   :  { %1406 = vrot.lane.b32.xlu1 %v7276_v60, %s5002_s20  ;;  %v2511_v62 = vsel %vm2457_vm14, %v2428_v21, %v1762_v8 }
 0x22d   :  { %v7419_v9 = vpop.f32.mrb[52].mxu0  ;;  %1777 = vrot.lane.b32.xlu0 %v1678_v15, %s5006_s26 }
 0x22e   :  { %v7422_v43 = vpop.permute.xlu1 %703  ;;  %v4272_v48 = vpack.c.bf16 %v7419_v9, %v7419_v9  ;;  %v4571_v60 = vpop.f32.mrb[53].mxu0  ;;  %v7436_v30 = vmul.f32 %v7419_v9, %v7419_v9 }
 0x22f   :  { %v7438_v15 = vpop.f32.mrb[54].mxu0  ;;  %v1929_v58 = vpop.permute.xlu0 %1928 }
 0x230   :  { %9085 = vst [vmem:[#allocation34_spill] sm:$0xff] %v7436_v30  ;;  %719 = vrot.lane.b32.xlu1 %v613_v29, %s5004_s22  ;;  %3442 = vst.msk [vmem:[%s8923_s3 + $0x68] sm:$0xf] %vm3415_vm0, %v4272_v48  ;;  %v4273_v8 = vpack.c.bf16 %v7438_v15, %v7438_v15  ;;  %v7453_v60 = vmul.f32 %v7438_v15, %v7438_v15  ;;  %v2594_v29 = vsel %vm2540_vm15, %v2511_v62, %v1929_v58  ;;  %v4572_v23 = vpop.f32.mrb[55].mxu0  ;;  %v7463_v48 = vld [vmem:[%s8920_s0 + $0x130] sm:$0xff]  }
 0x231   :  { %1944 = vrot.lane.b32.xlu0 %v1865_v47, %s5005_s25  ;;  %4622 = vmatmul.mubr.msk.bf16.gmra.mrb[104].mxu0 %vm2643_vm6, %v2594_v29  ;;  %v9087_v58 = vrot.slane %v7122_v31, 1  ;;  %v7482_v23 = vor.u32 %v1150_v49, %v1149_v5  ;;  %v7489_v47 = vshll.u32 %v7463_v48, 16  ;;  %v7492_v21 = vshrl.u32 %v7463_v48, 16 }
 0x232   :  { %9086 = vst [vmem:[#allocation35_spill] sm:$0xff] %v7453_v60  ;;  %v7458_v40 = vpop.permute.xlu1 %870  ;;  %3443 = vst.msk [vmem:[%s8923_s3 + $0x6c] sm:$0xf] %vm3415_vm0, %v4273_v8  ;;  %4625 = vmatprep.mubr.msk.bf16.mxu0 %vm5008_vm7, %v9034_v32  ;;  %v1662_v31 = vsel %vm1530_vm5, %v7278_v17, %v6795_v54  ;;  %v9089_v54 = vrot.slane %v6587_v37, 3  ;;  %v9090_v17 = vrot.slane %v6518_v27, 3  ;;  %v9091_v30 = vrot.slane %v7463_v48, 2 }
 0x233   :  { %v1242_v62 = vpop.permute.xlu0 %1241  ;;  %v7480_v29 = vsel %vm9088_vm13, %v9087_v58, %v8979_v36  ;;  %v1679_v58 = vrot.slane %v7492_v21, 2  ;;  %v1680_v36 = vrot.slane %v7489_v47, 3  ;;  %v9092_v37 = vrot.slane %v7324_v2, 2 }
 0x234   :  { %886 = vrot.lane.b32.xlu1 %v7291_v12, %s5000_s16  ;;  %v1857_v14 = vsel %vm1794_vm4, %v9090_v17, %v9089_v54  ;;  %vm9095_vm13 = vcmask 195584  }
 0x235   :  { %1505 = vrot.lane.b32.xlu0 %v6768_v44, %s5001_s19  ;;  %v1152_v44 = vsel %vm1000_vm2, %v7319_v61, %v7482_v23  ;;  %v7525_v27 = vsel %vm1264_vm1, %v9092_v37, %v9091_v30  ;;  %v7534_v61 = vor.u32 %v1680_v36, %v1679_v58  ;;  %v9094_v36 = vrot.slane %v7324_v2, 3 }
 0x236   :  { %v7486_v8 = vpop.permute.xlu1 %969  ;;  %v1154_v58 = vrot.slane %v7489_v47, 2 }
 0x237   :  { %v1409_v12 = vpop.permute.xlu0 %1408  ;;  %v1682_v20 = vsel %vm1530_vm5, %v7395_v25, %v7534_v61  ;;  %v9097_v25 = vpack.c.bf16 %v6089_v4, %v6076_v63 }
 0x238   :  { %985 = vrot.lane.b32.xlu1 %v7480_v29, %s4999_s15 }
 0x239   :  { %1769 = vrot.lane.b32.xlu0 %v1662_v31, %s5006_s26  ;;  %v4940_v31 = vld [vmem:[%s8920_s0 + $0xf8] sm:$0xff]  }
 0x23a   :  { %v7504_v49 = vpop.permute.xlu1 %1233  ;;  %v2022_v5 = vsel %vm1958_vm8, %v4940_v31, %v7364_v42 }
 0x23b   :  { %v1508_v7 = vpop.permute.xlu0 %1507  ;;  %v2106_v54 = vsel %vm2042_vm9, %v2022_v5, %v7386_v0 }
 0x23c   :  { %1249 = vrot.lane.b32.xlu1 %v1152_v44, %s5003_s21  ;;  %v2189_v42 = vsel %vm2125_vm10, %v2106_v54, %v7406_v26  ;;  %v1153_v26 = vrot.slane %v7492_v21, 1 }
 0x23d   :  { %v7529_v44 = vpop.f32.mrb[56].mxu0  ;;  %1936 = vrot.lane.b32.xlu0 %v1857_v14, %s5005_s25  ;;  %v2272_v30 = vsel %vm2208_vm11, %v2189_v42, %v1242_v62  ;;  %v9093_v14 = vrot.slane %v7463_v48, 3 }
 0x23e   :  { %v7532_v17 = vpop.permute.xlu1 %1400  ;;  %v4274_v31 = vpack.c.bf16 %v7529_v44, %v7529_v44  ;;  %v4575_v60 = vpop.f32.mrb[57].mxu0 }
 0x23f   :  { %v7541_v37 = vpop.f32.mrb[58].mxu0  ;;  %v1772_v0 = vpop.permute.xlu0 %1771  ;;  %v1867_v5 = vsel %vm1794_vm4, %v9094_v36, %v9093_v14  ;;  %v7558_v60 = vmul.f32 %v7529_v44, %v7529_v44  ;;  %v2355_v36 = vsel %vm2291_vm12, %v2272_v30, %v1409_v12  ;;  %v620_v30 = vrot.slane %v7338_v1, 1 }
 0x240   :  { %1515 = vrot.lane.b32.xlu1 %v7525_v27, %s5001_s19  ;;  %3444 = vst.msk [vmem:[%s8923_s3 + $0x70] sm:$0xf] %vm3415_vm0, %v4274_v31  ;;  %v4275_v62 = vpack.c.bf16 %v7541_v37, %v7541_v37  ;;  %v4705_v54 = vpack.c.bf16 %v7541_v37, %v7529_v44  ;;  %v7566_v42 = vmul.f32 %v7541_v37, %v7541_v37  ;;  %v4576_v14 = vpop.f32.mrb[59].mxu0 }
 0x241   :  { %1416 = vrot.lane.b32.xlu0 %v7393_v56, %s5002_s20  ;;  %v2438_v18 = vsel %vm9095_vm13, %v2355_v36, %v1508_v7  ;;  %v9096_v14 = vrot.slane %v7142_v10, 1  ;;  %v7588_v56 = vld [vmem:[%s8920_s0 + $0x138] sm:$0xff]   ;;  %v7595_v10 = vor.u32 %v1154_v58, %v1153_v26  ;;  %vm9100_vm13 = vcmask 1046528  }
 0x242   :  { %v7571_v31 = vpop.permute.xlu1 %713  ;;  %3445 = vst.msk [vmem:[%s8923_s3 + $0x74] sm:$0xf] %vm3415_vm0, %v4275_v62  ;;  %v2521_v7 = vsel %vm2457_vm14, %v2438_v18, %v1772_v0  ;;  %v7609_v0 = vshll.u32 %v7588_v56, 16  ;;  %v1340_v4 = vrot.slane %v7588_v56, 2  ;;  %v4941_v58 = vld [vmem:[%s8920_s0 + $0xd8] sm:$0xff]  }
 0x243   :  { %v616_v12 = vor.u32 %v7145_v57, %v9096_v14  ;;  %v1939_v36 = vpop.permute.xlu0 %1938  ;;  %v810_v14 = vrot.slane %v7463_v48, 1  ;;  %v1156_v63 = vsel %vm1000_vm2, %v7482_v23, %v7595_v10 }
 0x244   :  { %1946 = vrot.lane.b32.xlu1 %v1867_v5, %s5005_s25  ;;  %v2604_v62 = vsel %vm2540_vm15, %v2521_v7, %v1939_v36  ;;  %v7612_v5 = vshrl.u32 %v7588_v56, 16  ;;  %v1868_v36 = vrot.slane %v7588_v56, 3 }
 0x245   :  { %1779 = vrot.lane.b32.xlu0 %v1682_v20, %s5006_s26  ;;  %4642 = vmatmul.mubr.msk.bf16.vlgmr.msra.gmra.mrb[0].mxu1 %vm2643_vm6, %v2604_v62  ;;  %v621_v18 = vsel %vm321_vm3, %v616_v12, %v620_v30  ;;  %v9098_v20 = vpack.c.bf16 %v7045_v19, %v7028_v35  ;;  %v2014_v12 = vsel %vm1958_vm8, %v4941_v58, %v7422_v43  ;;  %v9099_v19 = vrot.slane %v7324_v2, 1 }
 0x246   :  { %v7599_v57 = vpop.permute.xlu1 %880  ;;  %4684 = vmatpush3.bf16.msra.mxu1 %v9097_v25  ;;  %4645 = vmatprep.mubr.msk.bf16.mxu1 %vm5008_vm7, %v9034_v32  ;;  %v2098_v23 = vsel %vm2042_vm9, %v2014_v12, %v7458_v40  ;;  %v9101_v25 = vpack.c.bf16 %v6185_v33, %v6169_v11  ;;  %v1683_v7 = vrot.slane %v7612_v5, 2  ;;  %v1684_v43 = vrot.slane %v7609_v0, 3 }
 0x247   :  { %4686 = vmatprep.subr.bf16.mxu1 %v9098_v20  ;;  %v1500_v26 = vpop.permute.xlu0 %1499  ;;  %v2181_v62 = vsel %vm2125_vm10, %v2098_v23, %v7486_v8  ;;  %v9102_v2 = vpack.c.bf16 %v7151_v24, %v7133_v16  ;;  %v9103_v33 = vrot.slane %v7463_v48, 2  ;;  %v104_v23 = vld [vmem:[%s8920_s0 + $0x144] sm:$0xf] }
 0x248   :  { %888 = vrot.lane.b32.xlu1 %v7480_v29, %s5000_s16  ;;  %v811_v29 = vsel %vm9100_vm13, %v9099_v19, %v810_v14  ;;  %v2264_v11 = vsel %vm2208_vm11, %v2181_v62, %v7504_v49  ;;  %vm9104_vm13 = vcmask 195584   ;;  %v7674_v12 = vor.u32 %v1684_v43, %v1683_v7 }
 0x249   :  { %721 = vrot.lane.b32.xlu0 %v621_v18, %s5004_s22  ;;  %v7659_v40 = vsel %vm1264_vm1, %v9103_v33, %v1340_v4  ;;  %v2347_v8 = vsel %vm2291_vm12, %v2264_v11, %v7532_v17  ;;  %v9106_v17 = vrot.slane %v7463_v48, 3  ;;  %v1157_v62 = vrot.slane %v7612_v5, 1 }
 0x24a   :  { %v7631_v35 = vpop.permute.xlu1 %979  ;;  %4688 = vmatpush3.bf16.msra.mxu1 %v9101_v25  ;;  %v2430_v24 = vsel %vm9104_vm13, %v2347_v8, %v1500_v26  ;;  %v7684_v26 = vld [vmem:[%s8920_s0 + $0x140] sm:$0xf]  ;;  %v9107_v25 = vpack.c.bf16 %v7248_v3, %v7232_v52  ;;  %vm9113_vm13 = vcmask 1046528  }
 0x24b   :  { %4690 = vmatprep.subr.bf16.mxu1 %v9102_v2  ;;  %v1764_v18 = vpop.permute.xlu0 %1763  ;;  %v1869_v19 = vsel %vm1794_vm4, %v9106_v17, %v1868_v36  ;;  %v1158_v2 = vrot.slane %v7609_v0, 2  ;;  %v9110_v17 = vpack.c.bf16 %v6493_v22, %v6476_v51 }
 0x24c   :  { %1251 = vrot.lane.b32.xlu1 %v1156_v63, %s5003_s21  ;;  %v9105_v63 = vpack.c.bf16 %v6287_v39, %v6271_v38  ;;  %v2513_v38 = vsel %vm2457_vm14, %v2430_v24, %v1764_v18  ;;  %v7722_v24 = vcombine.low %v7684_v26, %v104_v23 }
 0x24d   :  { %v7663_v20 = vpop.f32.mrb[60].mxu0  ;;  %987 = vrot.lane.b32.xlu0 %v811_v29, %s4999_s15 }
 0x24e   :  { %v7666_v16 = vpop.permute.xlu1 %705  ;;  %v4276_v49 = vpack.c.bf16 %v7663_v20, %v7663_v20  ;;  %4692 = vmatpush3.bf16.msra.mxu1 %v9105_v63  ;;  %v4579_v58 = vpop.f32.mrb[61].mxu0  ;;  %v7692_v39 = vmul.f32 %v7663_v20, %v7663_v20  ;;  %v628_v63 = vrot.slane %v7489_v47, 1  ;;  %v7770_v51 = vrot.slane %v7722_v24, 2 }
 0x24f   :  { %4694 = vmatprep.subr.bf16.mxu1 %v9107_v25  ;;  %v7697_v7 = vpop.f32.mrb[62].mxu0  ;;  %v1931_v43 = vpop.permute.xlu0 %1930 }
 0x250   :  { %1517 = vrot.lane.b32.xlu1 %v7659_v40, %s5001_s19  ;;  %3446 = vst.msk [vmem:[%s8923_s3 + $0x78] sm:$0xf] %vm3415_vm0, %v4276_v49  ;;  %v4277_v18 = vpack.c.bf16 %v7697_v7, %v7697_v7  ;;  %v4709_v52 = vpack.c.bf16 %v7697_v7, %v7663_v20  ;;  %v7713_v3 = vmul.f32 %v7697_v7, %v7697_v7  ;;  %v4580_v33 = vpop.f32.mrb[63].mxu0 }
 0x251   :  { %v2596_v11 = vsel %vm2540_vm15, %v2513_v38, %v1931_v43  ;;  %1418 = vrot.lane.b32.xlu0 %v7525_v27, %s5002_s20  ;;  %v9108_v20 = vpack.c.bf16 %v6387_v41, %v6371_v46  ;;  %v1686_v27 = vsel %vm1530_vm5, %v7534_v61, %v7674_v12  ;;  %v624_v49 = vor.u32 %v7341_v50, %v620_v30  ;;  %v4942_v43 = vld [vmem:[%s8920_s0 + $0x100] sm:$0xff]   ;;  %v110_v33 = vld [vmem:[%s8920_s0 + $0x14c] sm:$0xf] }
 0x252   :  { %4626 = vmatmul.mubr.msk.bf16.gmra.mrb[108].mxu0 %vm2643_vm6, %v2596_v11  ;;  %v7719_v8 = vpop.permute.xlu1 %872  ;;  %3447 = vst.msk [vmem:[%s8923_s3 + $0x7c] sm:$0xf] %vm3415_vm0, %v4277_v18  ;;  %v9109_v46 = vpack.c.bf16 %v7343_v6, %v7329_v55  ;;  %v7746_v61 = vor.u32 %v1158_v2, %v1157_v62  ;;  %v1162_v50 = vshrl.u32 %v7722_v24, 16  ;;  %v1165_v30 = vshll.u32 %v7722_v24, 16  ;;  %v9114_v2 = vld [vmem:[#allocation22_spill] sm:$0xff] }
 0x253   :  { %4696 = vmatpush3.bf16.msra.mxu1 %v9108_v20  ;;  %4629 = vmatprep.mubr.msk.bf16.mxu0 %vm5008_vm7, %v9034_v32  ;;  %v1244_v41 = vpop.permute.xlu0 %1243  ;;  %v629_v55 = vsel %vm321_vm3, %v624_v49, %v628_v63  ;;  %v7760_v6 = vrot.slane %v7588_v56, 1 }
 0x254   :  { %4698 = vmatprep.subr.bf16.mxu1 %v9109_v46  ;;  %1948 = vrot.lane.b32.xlu1 %v1869_v19, %s5005_s25  ;;  %v9111_v19 = vpack.c.bf16 %v7438_v15, %v7419_v9  ;;  %v1160_v38 = vsel %vm1000_vm2, %v7595_v10, %v7746_v61  ;;  %v1687_v25 = vrot.slane %v1162_v50, 2  ;;  %v1688_v7 = vrot.slane %v1165_v30, 3 }
 0x255   :  { %1781 = vrot.lane.b32.xlu0 %v1686_v27, %s5006_s26  ;;  %v9112_v9 = vpack.c.bf16 %v6611_v28, %v6598_v13  ;;  %v813_v15 = vsel %vm9113_vm13, %v810_v14, %v7760_v6  ;;  %v2024_v13 = vsel %vm1958_vm8, %v4942_v43, %v7571_v31  ;;  %v7796_v28 = vsel %vm1264_vm1, %v1340_v4, %v7770_v51  ;;  %v9115_v4 = vld [vmem:[#allocation20_spill] sm:$0xff] }
 0x256   :  { %v7749_v1 = vpop.permute.xlu1 %971  ;;  %v2108_v44 = vsel %vm2042_vm9, %v2024_v13, %v7599_v57  ;;  %v7805_v14 = vor.u32 %v1688_v7, %v1687_v25  ;;  %v9116_v18 = vpack.c.bf16 %v9114_v2, %v9115_v4  ;;  %v7817_v57 = vld [vmem:[%s8920_s0 + $0x148] sm:$0xf]  ;;  %v1164_v46 = vrot.slane %v1162_v50, 1 }
 0x257   :  { %4700 = vmatpush3.bf16.msra.mxu1 %v9110_v17  ;;  %v1411_v23 = vpop.permute.xlu0 %1410  ;;  %v2191_v31 = vsel %vm2125_vm10, %v2108_v44, %v7631_v35  ;;  %v1167_v17 = vrot.slane %v1165_v30, 2  ;;  %v7857_v25 = vcombine.low %v7817_v57, %v110_v33  ;;  %vm9117_vm13 = vcmask 195584  }
 0x258   :  { %4702 = vmatprep.subr.bf16.mxu1 %v9111_v19  ;;  %890 = vrot.lane.b32.xlu1 %v811_v29, %s5000_s16  ;;  %v1870_v29 = vrot.slane %v7722_v24, 3  ;;  %v2274_v20 = vsel %vm2208_vm11, %v2191_v31, %v1244_v41  ;;  %v636_v13 = vrot.slane %v7609_v0, 1  ;;  %v107_v31 = vld [vmem:[%s8920_s0 + $0x14c] sm:$0x3] }
 0x259   :  { %723 = vrot.lane.b32.xlu0 %v629_v55, %s5004_s22  ;;  %v2357_v30 = vsel %vm2291_vm12, %v2274_v20, %v1411_v23  ;;  %v7879_v2 = vor.u32 %v1167_v17, %v1164_v46  ;;  %v1692_v47 = vshrl.u32 %v7857_v25, 16  ;;  %v7895_v33 = vcombine.low %v7817_v57, %v107_v31  ;;  %v4943_v46 = vld [vmem:[%s8920_s0 + $0xe0] sm:$0xff]  }
 0x25a   :  { %v7773_v22 = vpop.permute.xlu1 %1235  ;;  %v1871_v49 = vsel %vm1794_vm4, %v1868_v36, %v1870_v29  ;;  %v2016_v17 = vsel %vm1958_vm8, %v4943_v46, %v7666_v16 }
 0x25b   :  { %4704 = vmatpush3.bf16.msra.mxu1 %v9112_v9  ;;  %v1510_v10 = vpop.permute.xlu0 %1509  ;;  %v9119_v9 = vld [vmem:[#allocation24_spill] sm:$0xff] }
 0x25c   :  { %4706 = vmatprep.subr.bf16.mxu1 %v4705_v54  ;;  %1253 = vrot.lane.b32.xlu1 %v1160_v38, %s5003_s21  ;;  %v1690_v38 = vsel %vm1530_vm5, %v7674_v12, %v7805_v14  ;;  %v2440_v7 = vsel %vm9117_vm13, %v2357_v30, %v1510_v10  ;;  %v632_v12 = vor.u32 %v7492_v21, %v628_v63  ;;  %v1695_v63 = vshll.u32 %v7857_v25, 16 }
 0x25d   :  { %v7800_v37 = vpop.f32.mrb[64].mxu0  ;;  %989 = vrot.lane.b32.xlu0 %v813_v15, %s4999_s15  ;;  %vm9121_vm13 = vcmask 1046528  }
 0x25e   :  { %v7803_v54 = vpop.permute.xlu1 %1402  ;;  %v4278_v62 = vpack.c.bf16 %v7800_v37, %v7800_v37  ;;  %v4583_v11 = vpop.f32.mrb[65].mxu0  ;;  %v637_v4 = vsel %vm321_vm3, %v632_v12, %v636_v13  ;;  %v1697_v30 = vrot.slane %v1695_v63, 3 }
 0x25f   :  { %4708 = vmatpush3.bf16.msra.mxu1 %v9116_v18  ;;  %v7823_v35 = vpop.f32.mrb[66].mxu0  ;;  %v1774_v27 = vpop.permute.xlu0 %1773  ;;  %v911_v18 = vrot.slane %v7722_v24, 1  ;;  %v101_v11 = vld [vmem:[%s8920_s0 + $0x144] sm:$0x1] }
 0x260   :  { %4710 = vmatprep.subr.bf16.mxu1 %v4709_v52  ;;  %1519 = vrot.lane.b32.xlu1 %v7796_v28, %s5001_s19  ;;  %3448 = vst.msk [vmem:[%s8923_s3 + $0x80] sm:$0xf] %vm3415_vm0, %v4278_v62  ;;  %v7838_v52 = vmul.f32 %v7800_v37, %v7800_v37  ;;  %v4279_v41 = vpack.c.bf16 %v7823_v35, %v7823_v35  ;;  %v4584_v50 = vpop.f32.mrb[67].mxu0 }
 0x261   :  { %v4715_v55 = vpack.c.bf16 %v7823_v35, %v7800_v37  ;;  %v7846_v36 = vmul.f32 %v7823_v35, %v7823_v35  ;;  %1420 = vrot.lane.b32.xlu0 %v7659_v40, %s5002_s20  ;;  %v9118_v40 = vld [vmem:[#allocation26_spill] sm:$0xff]  ;;  %v2523_v10 = vsel %vm2457_vm14, %v2440_v7, %v1774_v27  ;;  %v1169_v27 = vsel %vm1000_vm2, %v7746_v61, %v7879_v2 }
 0x262   :  { %v7851_v19 = vpop.permute.xlu1 %715  ;;  %3449 = vst.msk [vmem:[%s8923_s3 + $0x84] sm:$0xf] %vm3415_vm0, %v4279_v41  ;;  %v9120_v43 = vpack.c.bf16 %v9118_v40, %v9119_v9  ;;  %v1694_v50 = vrot.slane %v1692_v47, 2  ;;  %v2100_v61 = vsel %vm2042_vm9, %v2016_v17, %v7719_v8  ;;  %v1171_v7 = vshrl.u32 %v7895_v33, 16 }
 0x263   :  { %v1941_v44 = vpop.permute.xlu0 %1940  ;;  %v2183_v16 = vsel %vm2125_vm10, %v2100_v61, %v7749_v1  ;;  %v1872_v9 = vrot.slane %v7857_v25, 3  ;;  %v111_v61 = vld [vmem:[%s8920_s0 + $0x150] sm:$0xf] }
 0x264   :  { %4712 = vmatpush3.bf16.msra.mxu1 %v9120_v43  ;;  %1950 = vrot.lane.b32.xlu1 %v1871_v49, %s5005_s25  ;;  %v2606_v62 = vsel %vm2540_vm15, %v2523_v10, %v1941_v44  ;;  %v1441_v49 = vrot.slane %v7857_v25, 2  ;;  %v1174_v43 = vshll.u32 %v7895_v33, 16  ;;  %v2266_v8 = vsel %vm2208_vm11, %v2183_v16, %v7773_v22 }
 0x265   :  { %1783 = vrot.lane.b32.xlu0 %v1690_v38, %s5006_s26  ;;  %4646 = vmatmul.mubr.msk.bf16.gmra.mrb[4].mxu1 %vm2643_vm6, %v2606_v62  ;;  %v912_v38 = vsel %vm9121_vm13, %v7760_v6, %v911_v18  ;;  %v2349_v10 = vsel %vm2291_vm12, %v2266_v8, %v7803_v54  ;;  %v7940_v31 = vor.u32 %v1697_v30, %v1694_v50  ;;  %vm9122_vm13 = vcmask 195584   ;;  %v106_v54 = vld [vmem:[%s8920_s0 + $0x14c] sm:$0x1] }
 0x266   :  { %v7883_v21 = vpop.permute.xlu1 %882  ;;  %4649 = vmatprep.mubr.msk.bf16.mxu1 %vm5008_vm7, %v9034_v32  ;;  %v1442_v12 = vsel %vm1264_vm1, %v7770_v51, %v1441_v49  ;;  %v1873_v50 = vsel %vm1794_vm4, %v1870_v29, %v1872_v9  ;;  %v1176_v30 = vrot.slane %v1174_v43, 2 }
 0x267   :  { %v1502_v20 = vpop.permute.xlu0 %1501 }
 0x268   :  { %892 = vrot.lane.b32.xlu1 %v813_v15, %s5000_s16  ;;  %v7913_v15 = vcombine.low %v7684_v26, %v101_v11  ;;  %v2432_v22 = vsel %vm9122_vm13, %v2349_v10, %v1502_v20  ;;  %v1173_v11 = vrot.slane %v1171_v7, 1  ;;  %v640_v10 = vor.u32 %v7612_v5, %v636_v13 }
 0x269   :  { %725 = vrot.lane.b32.xlu0 %v637_v4, %s5004_s22  ;;  %vm9123_vm13 = vcmask 1046528  }
 0x26a   :  { %v7910_v41 = vpop.permute.xlu1 %981  ;;  %v642_v62 = vshll.u32 %v7913_v15, 16  ;;  %v814_v4 = vrot.slane %v7913_v15, 1  ;;  %v8014_v13 = vor.u32 %v1176_v30, %v1173_v11 }
 0x26b   :  { %v1766_v40 = vpop.permute.xlu0 %1765 }
 0x26c   :  { %1255 = vrot.lane.b32.xlu1 %v1169_v27, %s5003_s21  ;;  %v2515_v27 = vsel %vm2457_vm14, %v2432_v22, %v1766_v40  ;;  %v112_v22 = vld [vmem:[%s8920_s0 + $0x154] sm:$0x3]  ;;  %v815_v5 = vsel %vm9123_vm13, %v7760_v6, %v814_v4  ;;  %v1178_v6 = vsel %vm1000_vm2, %v7879_v2, %v8014_v13  ;;  %v4944_v2 = vld [vmem:[%s8920_s0 + $0x108] sm:$0xff]  }
 0x26d   :  { %v7935_v44 = vpop.f32.mrb[68].mxu0  ;;  %991 = vrot.lane.b32.xlu0 %v912_v38, %s4999_s15  ;;  %v113_v38 = vld [vmem:[%s8920_s0 + $0x154] sm:$0x7] }
 0x26e   :  { %v7938_v1 = vpop.permute.xlu1 %707  ;;  %v4280_v47 = vpack.c.bf16 %v7935_v44, %v7935_v44  ;;  %v4587_v63 = vpop.f32.mrb[69].mxu0  ;;  %v7953_v46 = vmul.f32 %v7935_v44, %v7935_v44 }
 0x26f   :  { %v7955_v17 = vpop.f32.mrb[70].mxu0  ;;  %v1933_v20 = vpop.permute.xlu0 %1932  ;;  %v8005_v63 = vcombine.low %v111_v61, %v113_v38 }
 0x270   :  { %1521 = vrot.lane.b32.xlu1 %v1442_v12, %s5001_s19  ;;  %3450 = vst.msk [vmem:[%s8923_s3 + $0x88] sm:$0xf] %vm3415_vm0, %v4280_v47  ;;  %v4281_v7 = vpack.c.bf16 %v7955_v17, %v7955_v17  ;;  %v7979_v16 = vmul.f32 %v7955_v17, %v7955_v17  ;;  %v2598_v40 = vsel %vm2540_vm15, %v2515_v27, %v1933_v20  ;;  %v4588_v43 = vpop.f32.mrb[71].mxu0  ;;  %v8002_v47 = vrot.slane %v642_v62, 1 }
 0x271   :  { %1422 = vrot.lane.b32.xlu0 %v7796_v28, %s5002_s20  ;;  %4630 = vmatmul.mubr.msk.bf16.gmra.mrb[112].mxu0 %vm2643_vm6, %v2598_v40  ;;  %v1699_v12 = vsel %vm1530_vm5, %v7805_v14, %v7940_v31  ;;  %v4111_v14 = vcombine.low %v7817_v57, %v106_v54  ;;  %v4116_v27 = vcombine.low %v111_v61, %v112_v22  ;;  %v1701_v20 = vshrl.u32 %v8005_v63, 16 }
 0x272   :  { %v7985_v8 = vpop.permute.xlu1 %874  ;;  %3451 = vst.msk [vmem:[%s8923_s3 + $0x8c] sm:$0xf] %vm3415_vm0, %v4281_v7  ;;  %4633 = vmatprep.mubr.msk.bf16.mxu0 %vm5008_vm7, %v9034_v32  ;;  %v645_v57 = vsel %vm321_vm3, %v640_v10, %v8002_v47  ;;  %vm9124_vm3 = vmmov %vm9123_vm13  ;;  %v1344_v7 = vrot.slane %v7895_v33, 2  ;;  %v1874_v10 = vrot.slane %v8005_v63, 3  ;;  %v2026_v22 = vsel %vm1958_vm8, %v4944_v2, %v7851_v19 }
 0x273   :  { %v1246_v0 = vpop.permute.xlu0 %1245  ;;  %v8021_v54 = vrot.slane %v4111_v14, 1  ;;  %v8029_v11 = vrot.slane %v4116_v27, 2  ;;  %v1703_v40 = vrot.slane %v1701_v20, 2  ;;  %v646_v2 = vshrl.u32 %v7913_v15, 16 }
 0x274   :  { %1952 = vrot.lane.b32.xlu1 %v1873_v50, %s5005_s25  ;;  %v1704_v50 = vshll.u32 %v8005_v63, 16 }
 0x275   :  { %1785 = vrot.lane.b32.xlu0 %v1699_v12, %s5006_s26  ;;  %v914_v61 = vsel %vm9124_vm3, %v911_v18, %v8021_v54  ;;  %v1444_v24 = vsel %vm1264_vm1, %v1441_v49, %v8029_v11  ;;  %v2110_v18 = vsel %vm2042_vm9, %v2026_v22, %v7883_v21  ;;  %v1345_v49 = vsel %vm1264_vm1, %v7770_v51, %v1344_v7 }
 0x276   :  { %v8017_v62 = vpop.permute.xlu1 %973  ;;  %v1706_v43 = vrot.slane %v1704_v50, 3  ;;  %v2193_v27 = vsel %vm2125_vm10, %v2110_v18, %v7910_v41  ;;  %v1875_v41 = vsel %vm1794_vm4, %v1872_v9, %v1874_v10  ;;  %vm9125_vm1 = vcmask 195584  }
 0x277   :  { %v1413_v38 = vpop.permute.xlu0 %1412  ;;  %v2276_v21 = vsel %vm2208_vm11, %v2193_v27, %v1246_v0  ;;  %vm9126_vm2 = vmmov %vm9125_vm1 }
 0x278   :  { %894 = vrot.lane.b32.xlu1 %v815_v5, %s5000_s16  ;;  %v8061_v20 = vor.u32 %v1706_v43, %v1703_v40  ;;  %v2359_v40 = vsel %vm2291_vm12, %v2276_v21, %v1413_v38  ;;  %vm9127_vm4 = vmmov %vm9125_vm1 }
 0x279   :  { %727 = vrot.lane.b32.xlu0 %v645_v57, %s5004_s22  ;;  %vm9129_vm13 = vmmov %vm9125_vm1 }
 0x27a   :  { %v1238_v30 = vpop.permute.xlu1 %1237  ;;  %v1708_v18 = vsel %vm1530_vm5, %v7940_v31, %v8061_v20  ;;  %v4945_v31 = vld [vmem:[%s8920_s0 + $0xe8] sm:$0xff]   ;;  %vm9128_vm5 = vmmov %vm9125_vm1 }
 0x27b   :  { %v1512_v12 = vpop.permute.xlu0 %1511  ;;  %v2018_v21 = vsel %vm1958_vm8, %v4945_v31, %v7938_v1  ;;  %vm9130_vm3 = vmmov %vm9125_vm1 }
 0x27c   :  { %1257 = vrot.lane.b32.xlu1 %v1178_v6, %s5003_s21  ;;  %v2442_v22 = vsel %vm9125_vm1, %v2359_v40, %v1512_v12 }
 0x27d   :  { %v8050_v14 = vpop.f32.mrb[72].mxu0  ;;  %993 = vrot.lane.b32.xlu0 %v914_v61, %s4999_s15 }
 0x27e   :  { %v1405_v5 = vpop.permute.xlu1 %1404  ;;  %v4282_v57 = vpack.c.bf16 %v8050_v14, %v8050_v14  ;;  %v4591_v19 = vpop.f32.mrb[73].mxu0  ;;  %v8078_v51 = vmul.f32 %v8050_v14, %v8050_v14 }
 0x27f   :  { %v8064_v50 = vpop.f32.mrb[74].mxu0  ;;  %v1776_v6 = vpop.permute.xlu0 %1775  ;;  %v648_v19 = vor.u32 %v646_v2, %v8002_v47  ;;  %v2102_v47 = vsel %vm2042_vm9, %v2018_v21, %v7985_v8  ;;  %v4946_v21 = vld [vmem:[%s8920_s0 + $0x110] sm:$0xff]  }
 0x280   :  { %1523 = vrot.lane.b32.xlu1 %v1444_v24, %s5001_s19  ;;  %3452 = vst.msk [vmem:[%s8923_s3 + $0x90] sm:$0xf] %vm3415_vm0, %v4282_v57  ;;  %v4283_v0 = vpack.c.bf16 %v8064_v50, %v8064_v50  ;;  %v8086_v25 = vmul.f32 %v8064_v50, %v8064_v50  ;;  %v4592_v9 = vpop.f32.mrb[75].mxu0  ;;  %v2525_v38 = vsel %vm2457_vm14, %v2442_v22, %v1776_v6 }
 0x281   :  { %1424 = vrot.lane.b32.xlu0 %v1345_v49, %s5002_s20 }
 0x282   :  { %v718_v43 = vpop.permute.xlu1 %717  ;;  %3453 = vst.msk [vmem:[%s8923_s3 + $0x94] sm:$0xf] %vm3415_vm0, %v4283_v0 }
 0x283   :  { %v1943_v27 = vpop.permute.xlu0 %1942 }
 0x284   :  { %1954 = vrot.lane.b32.xlu1 %v1875_v41, %s5005_s25  ;;  %v2608_v57 = vsel %vm2540_vm15, %v2525_v38, %v1943_v27  ;;  %v2185_v41 = vsel %vm2125_vm10, %v2102_v47, %v8017_v62  ;;  %v2028_v47 = vsel %vm1958_vm8, %v4946_v21, %v718_v43 }
 0x285   :  { %1787 = vrot.lane.b32.xlu0 %v1708_v18, %s5006_s26  ;;  %4650 = vmatmul.mubr.msk.bf16.gmra.mrb[8].mxu1 %vm2643_vm6, %v2608_v57  ;;  %v2268_v15 = vsel %vm2208_vm11, %v2185_v41, %v1238_v30 }
 0x286   :  { %v885_v12 = vpop.permute.xlu1 %884  ;;  %4653 = vmatprep.mubr.msk.bf16.mxu1 %vm5008_vm7, %v9034_v32 }
 0x287   :  { %v1504_v49 = vpop.permute.xlu0 %1503  ;;  %v2112_v41 = vsel %vm2042_vm9, %v2028_v47, %v885_v12 }
 0x288   :  { %896 = vrot.lane.b32.xlu1 %v814_v4, %s5000_s16  ;;  %v2351_v4 = vsel %vm2291_vm12, %v2268_v15, %v1405_v5 }
 0x289   :  { %729 = vrot.lane.b32.xlu0 %v648_v19, %s5004_s22  ;;  %v2434_v40 = vsel %vm9126_vm2, %v2351_v4, %v1504_v49  ;;  %vm9133_vm2 = vmmov %vm9125_vm1 }
 0x28a   :  { %v984_v6 = vpop.permute.xlu1 %983 }
 0x28b   :  { %v1768_v0 = vpop.permute.xlu0 %1767  ;;  %v2195_v63 = vsel %vm2125_vm10, %v2112_v41, %v984_v6 }
 0x28c   :  { %1259 = vrot.lane.b32.xlu1 %v8014_v13, %s5003_s21  ;;  %v2517_v2 = vsel %vm2457_vm14, %v2434_v40, %v1768_v0 }
 0x28d   :  { %v8126_v9 = vpop.f32.mrb[76].mxu0  ;;  %995 = vrot.lane.b32.xlu0 %v8021_v54, %s4999_s15 }
 0x28e   :  { %v710_v1 = vpop.permute.xlu1 %709  ;;  %v4284_v8 = vpack.c.bf16 %v8126_v9, %v8126_v9  ;;  %v4595_v62 = vpop.f32.mrb[77].mxu0  ;;  %v8136_v13 = vmul.f32 %v8126_v9, %v8126_v9 }
 0x28f   :  { %v8138_v30 = vpop.f32.mrb[78].mxu0  ;;  %v1935_v5 = vpop.permute.xlu0 %1934 }
 0x290   :  { %1525 = vrot.lane.b32.xlu1 %v8029_v11, %s5001_s19  ;;  %3454 = vst.msk [vmem:[%s8923_s3 + $0x98] sm:$0xf] %vm3415_vm0, %v4284_v8  ;;  %v4285_v54 = vpack.c.bf16 %v8138_v30, %v8138_v30  ;;  %v8152_v18 = vmul.f32 %v8138_v30, %v8138_v30  ;;  %v2600_v38 = vsel %vm2540_vm15, %v2517_v2, %v1935_v5  ;;  %v4596_v27 = vpop.f32.mrb[79].mxu0 }
 0x291   :  { %1426 = vrot.lane.b32.xlu0 %v1344_v7, %s5002_s20  ;;  %4634 = vmatmul.mubr.msk.bf16.gmra.mrb[116].mxu0 %vm2643_vm6, %v2600_v38 }
 0x292   :  { %v877_v11 = vpop.permute.xlu1 %876  ;;  %3455 = vst.msk [vmem:[%s8923_s3 + $0x9c] sm:$0xf] %vm3415_vm0, %v4285_v54  ;;  %4637 = vmatprep.mubr.msk.bf16.mxu0 %vm5008_vm7, %v9034_v32 }
 0x293   :  { %v1248_v19 = vpop.permute.xlu0 %1247 }
 0x294   :  { %1956 = vrot.lane.b32.xlu1 %v1874_v10, %s5005_s25  ;;  %v2278_v4 = vsel %vm2208_vm11, %v2195_v63, %v1248_v19 }
 0x295   :  { %1789 = vrot.lane.b32.xlu0 %v8061_v20, %s5006_s26 }
 0x296   :  { %v976_v33 = vpop.permute.xlu1 %975 }
 0x297   :  { %v1415_v7 = vpop.permute.xlu0 %1414 }
 0x298   :  { %v2361_v5 = vsel %vm2291_vm12, %v2278_v4, %v1415_v7 }
 0x29a   :  { %v1240_v49 = vpop.permute.xlu1 %1239 }
 0x29b   :  { %v1514_v31 = vpop.permute.xlu0 %1513 }
 0x29c   :  { %v2444_v38 = vsel %vm9127_vm4, %v2361_v5, %v1514_v31  ;;  %v4947_v31 = vld [vmem:[%s8920_s0 + $0xf0] sm:$0xff]   ;;  %vm9134_vm4 = vmmov %vm9125_vm1 }
 0x29d   :  { %v8177_v0 = vpop.f32.mrb[80].mxu0  ;;  %v2020_v63 = vsel %vm1958_vm8, %v4947_v31, %v710_v1  ;;  %v4948_v1 = vld [vmem:[%s8920_s0 + $0x118] sm:$0xff]  }
 0x29e   :  { %v1407_v15 = vpop.permute.xlu1 %1406  ;;  %v4286_v10 = vpack.c.bf16 %v8177_v0, %v8177_v0  ;;  %v4599_v20 = vpop.f32.mrb[81].mxu0  ;;  %v8191_v43 = vmul.f32 %v8177_v0, %v8177_v0 }
 0x29f   :  { %v8183_v40 = vpop.f32.mrb[82].mxu0  ;;  %v1778_v8 = vpop.permute.xlu0 %1777  ;;  %v2104_v20 = vsel %vm2042_vm9, %v2020_v63, %v877_v11 }
 0x2a0   :  { %3456 = vst.msk [vmem:[%s8923_s3 + $0xa0] sm:$0xf] %vm3415_vm0, %v4286_v10  ;;  %v4287_v12 = vpack.c.bf16 %v8183_v40, %v8183_v40  ;;  %v8199_v62 = vmul.f32 %v8183_v40, %v8183_v40  ;;  %v4600_v2 = vpop.f32.mrb[83].mxu0  ;;  %v2527_v19 = vsel %vm2457_vm14, %v2444_v38, %v1778_v8  ;;  %v2187_v4 = vsel %vm2125_vm10, %v2104_v20, %v976_v33 }
 0x2a2   :  { %v720_v54 = vpop.permute.xlu1 %719  ;;  %3457 = vst.msk [vmem:[%s8923_s3 + $0xa4] sm:$0xf] %vm3415_vm0, %v4287_v12  ;;  %v2270_v12 = vsel %vm2208_vm11, %v2187_v4, %v1240_v49 }
 0x2a3   :  { %v1945_v21 = vpop.permute.xlu0 %1944  ;;  %v2353_v2 = vsel %vm2291_vm12, %v2270_v12, %v1407_v15  ;;  %v2030_v11 = vsel %vm1958_vm8, %v4948_v1, %v720_v54 }
 0x2a4   :  { %v2610_v47 = vsel %vm2540_vm15, %v2527_v19, %v1945_v21 }
 0x2a5   :  { %4654 = vmatmul.mubr.msk.bf16.gmra.mrb[12].mxu1 %vm2643_vm6, %v2610_v47 }
 0x2a6   :  { %v887_v41 = vpop.permute.xlu1 %886  ;;  %4657 = vmatprep.mubr.msk.bf16.mxu1 %vm5008_vm7, %v9034_v32 }
 0x2a7   :  { %v1506_v7 = vpop.permute.xlu0 %1505 }
 0x2a8   :  { %v2436_v19 = vsel %vm9128_vm5, %v2353_v2, %v1506_v7 }
 0x2aa   :  { %v986_v10 = vpop.permute.xlu1 %985 }
 0x2ab   :  { %v1770_v8 = vpop.permute.xlu0 %1769 }
 0x2ac   :  { %v2519_v33 = vsel %vm2457_vm14, %v2436_v19, %v1770_v8  ;;  %v2114_v8 = vsel %vm2042_vm9, %v2030_v11, %v887_v41 }
 0x2ad   :  { %v8222_v5 = vpop.f32.mrb[84].mxu0  ;;  %v2197_v2 = vsel %vm2125_vm10, %v2114_v8, %v986_v10 }
 0x2ae   :  { %v1250_v38 = vpop.permute.xlu1 %1249  ;;  %v4288_v21 = vpack.c.bf16 %v8222_v5, %v8222_v5  ;;  %v4603_v47 = vpop.f32.mrb[85].mxu0  ;;  %v8234_v49 = vmul.f32 %v8222_v5, %v8222_v5 }
 0x2af   :  { %v8236_v15 = vpop.f32.mrb[86].mxu0  ;;  %v1937_v31 = vpop.permute.xlu0 %1936 }
 0x2b0   :  { %3458 = vst.msk [vmem:[%s8923_s3 + $0xa8] sm:$0xf] %vm3415_vm0, %v4288_v21  ;;  %v4289_v7 = vpack.c.bf16 %v8236_v15, %v8236_v15  ;;  %v8248_v63 = vmul.f32 %v8236_v15, %v8236_v15  ;;  %v2602_v20 = vsel %vm2540_vm15, %v2519_v33, %v1937_v31  ;;  %v4604_v4 = vpop.f32.mrb[87].mxu0  ;;  %v2280_v21 = vsel %vm2208_vm11, %v2197_v2, %v1250_v38  ;;  %v4949_v38 = vld [vmem:[%s8920_s0 + $0x120] sm:$0xff]  }
 0x2b1   :  { %4638 = vmatmul.mubr.msk.bf16.gmra.mrb[120].mxu0 %vm2643_vm6, %v2602_v20 }
 0x2b2   :  { %v1516_v12 = vpop.permute.xlu1 %1515  ;;  %3459 = vst.msk [vmem:[%s8923_s3 + $0xac] sm:$0xf] %vm3415_vm0, %v4289_v7 }
 0x2b3   :  { %v1417_v47 = vpop.permute.xlu0 %1416 }
 0x2b4   :  { %v2363_v1 = vsel %vm2291_vm12, %v2280_v21, %v1417_v47 }
 0x2b5   :  { %v2446_v41 = vsel %vm9129_vm13, %v2363_v1, %v1516_v12 }
 0x2b6   :  { %v1947_v33 = vpop.permute.xlu1 %1946 }
 0x2b7   :  { %v1780_v11 = vpop.permute.xlu0 %1779 }
 0x2b8   :  { %v2529_v31 = vsel %vm2457_vm14, %v2446_v41, %v1780_v11 }
 0x2b9   :  { %v2612_v10 = vsel %vm2540_vm15, %v2529_v31, %v1947_v33 }
 0x2ba   :  { %v889_v20 = vpop.permute.xlu1 %888  ;;  %4658 = vmatmul.mubr.msk.bf16.gmra.mrb[16].mxu1 %vm2643_vm6, %v2612_v10 }
 0x2bb   :  { %v722_v7 = vpop.permute.xlu0 %721  ;;  %4661 = vmatprep.mubr.msk.bf16.mxu1 %vm5008_vm7, %v9034_v32 }
 0x2bc   :  { %v2032_v4 = vsel %vm1958_vm8, %v4949_v38, %v722_v7 }
 0x2bd   :  { %v8272_v8 = vpop.f32.mrb[88].mxu0  ;;  %v2116_v47 = vsel %vm2042_vm9, %v2032_v4, %v889_v20 }
 0x2be   :  { %v1252_v12 = vpop.permute.xlu1 %1251  ;;  %v4290_v2 = vpack.c.bf16 %v8272_v8, %v8272_v8  ;;  %v4607_v21 = vpop.f32.mrb[89].mxu0  ;;  %v8279_v1 = vmul.f32 %v8272_v8, %v8272_v8 }
 0x2bf   :  { %v8281_v33 = vpop.f32.mrb[90].mxu0  ;;  %v988_v41 = vpop.permute.xlu0 %987 }
 0x2c0   :  { %3460 = vst.msk [vmem:[%s8923_s3 + $0xb0] sm:$0xf] %vm3415_vm0, %v4290_v2  ;;  %v4291_v11 = vpack.c.bf16 %v8281_v33, %v8281_v33  ;;  %v8293_v10 = vmul.f32 %v8281_v33, %v8281_v33  ;;  %v2199_v20 = vsel %vm2125_vm10, %v2116_v47, %v988_v41  ;;  %v4608_v7 = vpop.f32.mrb[91].mxu0 }
 0x2c1   :  { %v2282_v2 = vsel %vm2208_vm11, %v2199_v20, %v1252_v12  ;;  %v4950_v12 = vld [vmem:[%s8920_s0 + $0x128] sm:$0xff]  }
 0x2c2   :  { %v1518_v38 = vpop.permute.xlu1 %1517  ;;  %3461 = vst.msk [vmem:[%s8923_s3 + $0xb4] sm:$0xf] %vm3415_vm0, %v4291_v11 }
 0x2c3   :  { %v1419_v21 = vpop.permute.xlu0 %1418 }
 0x2c4   :  { %v2365_v19 = vsel %vm2291_vm12, %v2282_v2, %v1419_v21 }
 0x2c5   :  { %v2448_v57 = vsel %vm9130_vm3, %v2365_v19, %v1518_v38 }
 0x2c6   :  { %v1949_v27 = vpop.permute.xlu1 %1948 }
 0x2c7   :  { %v1782_v24 = vpop.permute.xlu0 %1781 }
 0x2c8   :  { %v2531_v47 = vsel %vm2457_vm14, %v2448_v57, %v1782_v24 }
 0x2c9   :  { %v2614_v41 = vsel %vm2540_vm15, %v2531_v47, %v1949_v27 }
 0x2ca   :  { %v891_v7 = vpop.permute.xlu1 %890  ;;  %4662 = vmatmul.mubr.msk.bf16.gmra.mrb[20].mxu1 %vm2643_vm6, %v2614_v41 }
 0x2cb   :  { %v724_v11 = vpop.permute.xlu0 %723  ;;  %4665 = vmatprep.mubr.msk.bf16.mxu1 %vm5008_vm7, %v9034_v32 }
 0x2cc   :  { %v2034_v20 = vsel %vm1958_vm8, %v4950_v12, %v724_v11 }
 0x2cd   :  { %v8314_v2 = vpop.f32.mrb[92].mxu0  ;;  %v2118_v27 = vsel %vm2042_vm9, %v2034_v20, %v891_v7 }
 0x2ce   :  { %v1254_v19 = vpop.permute.xlu1 %1253  ;;  %v4292_v24 = vpack.c.bf16 %v8314_v2, %v8314_v2  ;;  %v4611_v57 = vpop.f32.mrb[93].mxu0  ;;  %v8321_v38 = vmul.f32 %v8314_v2, %v8314_v2 }
 0x2cf   :  { %v8323_v21 = vpop.f32.mrb[94].mxu0  ;;  %v990_v47 = vpop.permute.xlu0 %989 }
 0x2d0   :  { %9131 = vst [vmem:[#allocation22_spill] sm:$0xff] %v8321_v38  ;;  %3462 = vst.msk [vmem:[%s8923_s3 + $0xb8] sm:$0xf] %vm3415_vm0, %v4292_v24  ;;  %v4293_v41 = vpack.c.bf16 %v8323_v21, %v8323_v21  ;;  %v8335_v7 = vmul.f32 %v8323_v21, %v8323_v21  ;;  %v2201_v12 = vsel %vm2125_vm10, %v2118_v27, %v990_v47  ;;  %v4612_v20 = vpop.f32.mrb[95].mxu0 }
 0x2d1   :  { %v2284_v4 = vsel %vm2208_vm11, %v2201_v12, %v1254_v19 }
 0x2d2   :  { %9132 = vst [vmem:[#allocation20_spill] sm:$0xff] %v8335_v7  ;;  %v1520_v57 = vpop.permute.xlu1 %1519  ;;  %3463 = vst.msk [vmem:[%s8923_s3 + $0xbc] sm:$0xf] %vm3415_vm0, %v4293_v41 }
 0x2d3   :  { %v1421_v28 = vpop.permute.xlu0 %1420 }
 0x2d4   :  { %v2367_v23 = vsel %vm2291_vm12, %v2284_v4, %v1421_v28 }
 0x2d5   :  { %v2450_v11 = vsel %vm9125_vm1, %v2367_v23, %v1520_v57 }
 0x2d6   :  { %v1951_v58 = vpop.permute.xlu1 %1950 }
 0x2d7   :  { %v1784_v31 = vpop.permute.xlu0 %1783 }
 0x2d8   :  { %v2533_v27 = vsel %vm2457_vm14, %v2450_v11, %v1784_v31 }
 0x2d9   :  { %v2616_v47 = vsel %vm2540_vm15, %v2533_v27, %v1951_v58 }
 0x2da   :  { %v893_v20 = vpop.permute.xlu1 %892  ;;  %4666 = vmatmul.mubr.msk.bf16.gmra.mrb[24].mxu1 %vm2643_vm6, %v2616_v47 }
 0x2db   :  { %v726_v41 = vpop.permute.xlu0 %725  ;;  %4669 = vmatprep.mubr.msk.bf16.mxu1 %vm5008_vm7, %v9034_v32 }
 0x2dc   :  { %v2036_v19 = vsel %vm1958_vm8, %v7463_v48, %v726_v41 }
 0x2dd   :  { %v2956_v12 = vpop.f32.mrb[96].mxu0  ;;  %v2120_v23 = vsel %vm2042_vm9, %v2036_v19, %v893_v20 }
 0x2de   :  { %v1256_v28 = vpop.permute.xlu1 %1255  ;;  %v4294_v4 = vpack.c.bf16 %v2956_v12, %v2956_v12  ;;  %v4615_v24 = vpop.f32.mrb[97].mxu0  ;;  %v8355_v57 = vmul.f32 %v2956_v12, %v2956_v12 }
 0x2df   :  { %v2959_v31 = vpop.f32.mrb[98].mxu0  ;;  %v992_v58 = vpop.permute.xlu0 %991 }
 0x2e0   :  { %3464 = vst.msk [vmem:[%s8923_s3 + $0xc0] sm:$0xf] %vm3415_vm0, %v4294_v4  ;;  %v4295_v11 = vpack.c.bf16 %v2959_v31, %v2959_v31  ;;  %v4713_v27 = vpack.c.bf16 %v2959_v31, %v2956_v12  ;;  %v8361_v47 = vmul.f32 %v2959_v31, %v2959_v31  ;;  %v2203_v48 = vsel %vm2125_vm10, %v2120_v23, %v992_v58  ;;  %v4616_v41 = vpop.f32.mrb[99].mxu0 }
 0x2e1   :  { %v2286_v20 = vsel %vm2208_vm11, %v2203_v48, %v1256_v28 }
 0x2e2   :  { %v1522_v54 = vpop.permute.xlu1 %1521  ;;  %3465 = vst.msk [vmem:[%s8923_s3 + $0xc4] sm:$0xf] %vm3415_vm0, %v4295_v11  ;;  %4714 = vmatprep.subr.bf16.mxu1 %v4713_v27 }
 0x2e3   :  { %v1423_v19 = vpop.permute.xlu0 %1422 }
 0x2e4   :  { %v2369_v12 = vsel %vm2291_vm12, %v2286_v20, %v1423_v19 }
 0x2e5   :  { %v2452_v31 = vsel %vm9133_vm2, %v2369_v12, %v1522_v54 }
 0x2e6   :  { %v1953_v4 = vpop.permute.xlu1 %1952 }
 0x2e7   :  { %v1786_v23 = vpop.permute.xlu0 %1785 }
 0x2e8   :  { %v2535_v58 = vsel %vm2457_vm14, %v2452_v31, %v1786_v23 }
 0x2e9   :  { %v2618_v41 = vsel %vm2540_vm15, %v2535_v58, %v1953_v4 }
 0x2ea   :  { %v895_v6 = vpop.permute.xlu1 %894  ;;  %4670 = vmatmul.mubr.msk.bf16.gmra.mrb[28].mxu1 %vm2643_vm6, %v2618_v41 }
 0x2eb   :  { %v728_v11 = vpop.permute.xlu0 %727  ;;  %4673 = vmatprep.mubr.msk.bf16.mxu1 %vm5008_vm7, %v9034_v32 }
 0x2ec   :  { %v2038_v28 = vsel %vm1958_vm8, %v7588_v56, %v728_v11 }
 0x2ed   :  { %v8380_v27 = vpop.f32.mrb[100].mxu0  ;;  %v2122_v19 = vsel %vm2042_vm9, %v2038_v28, %v895_v6  ;;  %v3499_v28 = vlaneseq }
 0x2ee   :  { %v1258_v48 = vpop.permute.xlu1 %1257  ;;  %v4296_v54 = vpack.c.bf16 %v8380_v27, %v8380_v27  ;;  %v4619_v20 = vpop.f32.mrb[101].mxu0  ;;  %v8387_v12 = vmul.f32 %v8380_v27, %v8380_v27 }
 0x2ef   :  { %v8389_v4 = vpop.f32.mrb[102].mxu0  ;;  %v994_v31 = vpop.permute.xlu0 %993 }
 0x2f0   :  { %3466 = vst.msk [vmem:[%s8923_s3 + $0xc8] sm:$0xf] %vm3415_vm0, %v4296_v54  ;;  %v4297_v56 = vpack.c.bf16 %v8389_v4, %v8389_v4  ;;  %v4717_v23 = vpack.c.bf16 %v8389_v4, %v8380_v27  ;;  %v8401_v6 = vmul.f32 %v8389_v4, %v8389_v4  ;;  %v2205_v58 = vsel %vm2125_vm10, %v2122_v19, %v994_v31  ;;  %v4620_v41 = vpop.f32.mrb[103].mxu0 }
 0x2f1   :  { %v2288_v54 = vsel %vm2208_vm11, %v2205_v58, %v1258_v48  ;;  %v4106_v31 = vcombine.low %v7684_v26, %v7684_v26 }
 0x2f2   :  { %v1524_v11 = vpop.permute.xlu1 %1523  ;;  %3467 = vst.msk [vmem:[%s8923_s3 + $0xcc] sm:$0xf] %vm3415_vm0, %v4297_v56 }
 0x2f3   :  { %v1425_v20 = vpop.permute.xlu0 %1424 }
 0x2f4   :  { %v2371_v27 = vsel %vm2291_vm12, %v2288_v54, %v1425_v20 }
 0x2f5   :  { %v2454_v4 = vsel %vm9134_vm4, %v2371_v27, %v1524_v11  ;;  %v8421_v11 = vshrl.u32 %v3499_v28, 7 }
 0x2f6   :  { %v1955_v24 = vpop.permute.xlu1 %1954 }
 0x2f7   :  { %v1788_v22 = vpop.permute.xlu0 %1787 }
 0x2f8   :  { %v2537_v19 = vsel %vm2457_vm14, %v2454_v4, %v1788_v22 }
 0x2f9   :  { %v2620_v41 = vsel %vm2540_vm15, %v2537_v19, %v1955_v24  ;;  %v3505_v24 = vsub.s32 1, %v8421_v11  ;;  %v8430_v19 = vld [vmem:[%s8922_s2] sm:$0x3f] }
 0x2fa   :  { %v897_v56 = vpop.permute.xlu1 %896  ;;  %4674 = vmatmul.mubr.msk.bf16.gmra.mrb[32].mxu1 %vm2643_vm6, %v2620_v41 }
 0x2fb   :  { %v730_v61 = vpop.permute.xlu0 %729  ;;  %4677 = vmatprep.mubr.msk.bf16.mxu1 %vm5008_vm7, %v9034_v32  ;;  %vm9135_vm7 = vmmov %vm9125_vm1 }
 0x2fc   :  { %v2041_v48 = vsel %vm1958_vm8, %v4106_v31, %v730_v61 }
 0x2fd   :  { %v2124_v22 = vsel %vm2042_vm9, %v2041_v48, %v897_v56 }
 0x2fe   :  { %v1260_v58 = vpop.permute.xlu1 %1259 }
 0x2ff   :  { %v996_v54 = vpop.permute.xlu0 %995 }
 0x300   :  { %v2207_v26 = vsel %vm2125_vm10, %v2124_v22, %v996_v54  ;;  %v8435_v54 = vrot.slane %v8430_v19, %v3505_v24 }
 0x301   :  { %v2290_v27 = vsel %vm2208_vm11, %v2207_v26, %v1260_v58 }
 0x302   :  { %v1526_v20 = vpop.permute.xlu1 %1525 }
 0x303   :  { %v1427_v4 = vpop.permute.xlu0 %1426 }
 0x304   :  { %v2373_v61 = vsel %vm2291_vm12, %v2290_v27, %v1427_v4  ;;  %v2972_v28 = vpop.f32.mrb[104].mxu0 }
 0x305   :  { %v4298_v31 = vpack.c.bf16 %v2972_v28, %v2972_v28  ;;  %v4623_v41 = vpop.f32.mrb[105].mxu0  ;;  %v2456_v56 = vsel %vm9135_vm7, %v2373_v61, %v1526_v20  ;;  %v8441_v58 = vmul.f32 %v2972_v28, %v2972_v28 }
 0x306   :  { %v2975_v48 = vpop.f32.mrb[106].mxu0  ;;  %v1957_v22 = vpop.permute.xlu1 %1956 }
 0x307   :  { %3468 = vst.msk [vmem:[%s8923_s3 + $0xd0] sm:$0xf] %vm3415_vm0, %v4298_v31  ;;  %v4299_v26 = vpack.c.bf16 %v2975_v48, %v2975_v48  ;;  %v4721_v29 = vpack.c.bf16 %v2975_v48, %v2972_v28  ;;  %v8443_v27 = vmul.f32 %v2975_v48, %v2975_v48  ;;  %v4624_v4 = vpop.f32.mrb[107].mxu0  ;;  %v1790_v41 = vpop.permute.xlu0 %1789  ;;  %v3501_v28 = vsub.s32 0, %v8421_v11 }
 0x308   :  { %v2539_v20 = vsel %vm2457_vm14, %v2456_v56, %v1790_v41  ;;  %v3513_v56 = vsub.s32 3, %v8421_v11 }
 0x309   :  { %3469 = vst.msk [vmem:[%s8923_s3 + $0xd4] sm:$0xf] %vm3415_vm0, %v4299_v26  ;;  %v2622_v24 = vsel %vm2540_vm15, %v2539_v20, %v1957_v22  ;;  %v8457_v31 = vrot.slane %v8430_v19, %v3501_v28  ;;  %v9136_v22 = vpack.c.bf16 %v7955_v17, %v7935_v44  ;;  %v9139_v17 = vpack.c.bf16 %v8064_v50, %v8050_v14 }
 0x30a   :  { %4678 = vmatmul.mubr.msk.bf16.gmra.mrb[36].mxu1 %vm2643_vm6, %v2622_v24  ;;  %v8461_v48 = vrot.slane %v8430_v19, %v3513_v56 }
 0x30b   :  { %3594 = vmatprep.mubr.f32.mxu1 %v8435_v54 }
 0x312   :  { %3595 = vmatmul.mubr.f32.vlgmr.msra.gmra.mrb[40].mxu1 %v8457_v31 }
 0x313   :  { %4716 = vmatpush3.bf16.msra.mxu1 %v4715_v55  ;;  %3664 = vmatprep.mubr.f32.mxu1 %v8461_v48 }
 0x314   :  { %4718 = vmatprep.subr.bf16.mxu1 %v4717_v23 }
 0x317   :  { %4720 = vmatpush3.bf16.msra.mxu1 %v9136_v22 }
 0x318   :  { %4722 = vmatprep.subr.bf16.mxu1 %v4721_v29  ;;  %v8471_v26 = vpop.f32.mrb[0].mxu1 }
 0x319   :  { %v4308_v4 = vpack.c.bf16 %v8471_v26, %v8471_v26  ;;  %v4643_v41 = vpop.f32.mrb[1].mxu1  ;;  %v8483_v37 = vmul.f32 %v8471_v26, %v8471_v26 }
 0x31a   :  { %v8475_v20 = vpop.f32.mrb[2].mxu1 }
 0x31b   :  { %3478 = vst.msk [vmem:[%s8923_s3 + $0xf8] sm:$0xf] %vm3415_vm0, %v4308_v4  ;;  %9137 = vst [vmem:[#allocation26_spill] sm:$0xff] %v8483_v37  ;;  %v4309_v35 = vpack.c.bf16 %v8475_v20, %v8475_v20  ;;  %v8491_v44 = vmul.f32 %v8475_v20, %v8475_v20  ;;  %4724 = vmatpush3.bf16.msra.mxu1 %v9139_v17  ;;  %v4644_v29 = vpop.f32.mrb[3].mxu1 }
 0x31c   :  { %v9140_v29 = vpack.c.bf16 %v8138_v30, %v8126_v9 }
 0x31d   :  { %9138 = vst [vmem:[#allocation24_spill] sm:$0xff] %v8491_v44  ;;  %3479 = vst.msk [vmem:[%s8923_s3 + $0xfc] sm:$0xf] %vm3415_vm0, %v4309_v35 }
 0x325   :  { %v2980_v24 = vpop.f32.mrb[108].mxu0 }
 0x326   :  { %v4300_v28 = vpack.c.bf16 %v2980_v24, %v2980_v24  ;;  %v4627_v56 = vpop.f32.mrb[109].mxu0  ;;  %v8506_v14 = vmul.f32 %v2980_v24, %v2980_v24 }
 0x327   :  { %v2983_v22 = vpop.f32.mrb[110].mxu0 }
 0x328   :  { %3470 = vst.msk [vmem:[%s8923_s3 + $0xd8] sm:$0xf] %vm3415_vm0, %v4300_v28  ;;  %v4301_v50 = vpack.c.bf16 %v2983_v22, %v2983_v22  ;;  %v4725_v4 = vpack.c.bf16 %v2983_v22, %v2980_v24  ;;  %v8508_v41 = vmul.f32 %v2983_v22, %v2983_v22  ;;  %v4628_v17 = vpop.f32.mrb[111].mxu0 }
 0x32a   :  { %3471 = vst.msk [vmem:[%s8923_s3 + $0xdc] sm:$0xf] %vm3415_vm0, %v4301_v50  ;;  %4726 = vmatprep.subr.bf16.mxu1 %v4725_v4 }
 0x32b   :  { %4728 = vmatpush3.bf16.msra.mxu1 %v9140_v29 }
 0x338   :  { %v8519_v28 = vpop.f32.mrb[4].mxu1 }
 0x339   :  { %v4310_v24 = vpack.c.bf16 %v8519_v28, %v8519_v28  ;;  %v4647_v56 = vpop.f32.mrb[5].mxu1  ;;  %v8531_v50 = vmul.f32 %v8519_v28, %v8519_v28 }
 0x33a   :  { %v8523_v22 = vpop.f32.mrb[6].mxu1 }
 0x33b   :  { %3480 = vst.msk [vmem:[%s8923_s3 + $0x100] sm:$0xf] %vm3415_vm0, %v4310_v24  ;;  %9141 = vst [vmem:[#allocation36_spill] sm:$0xff] %v8531_v50  ;;  %v4311_v9 = vpack.c.bf16 %v8523_v22, %v8523_v22  ;;  %v8539_v4 = vmul.f32 %v8523_v22, %v8523_v22  ;;  %v4648_v17 = vpop.f32.mrb[7].mxu1 }
 0x33d   :  { %9142 = vst [vmem:[#allocation37_spill] sm:$0xff] %v8539_v4  ;;  %3481 = vst.msk [vmem:[%s8923_s3 + $0x104] sm:$0xf] %vm3415_vm0, %v4311_v9  ;;  %v9143_v9 = vpack.c.bf16 %v8183_v40, %v8177_v0 }
 0x344   :  { %v2988_v24 = vpop.f32.mrb[112].mxu0 }
 0x345   :  { %v4302_v56 = vpack.c.bf16 %v2988_v24, %v2988_v24  ;;  %v4631_v23 = vpop.f32.mrb[113].mxu0  ;;  %v8551_v61 = vmul.f32 %v2988_v24, %v2988_v24 }
 0x346   :  { %v2991_v35 = vpop.f32.mrb[114].mxu0 }
 0x347   :  { %3472 = vst.msk [vmem:[%s8923_s3 + $0xe0] sm:$0xf] %vm3415_vm0, %v4302_v56  ;;  %v4303_v17 = vpack.c.bf16 %v2991_v35, %v2991_v35  ;;  %v4729_v30 = vpack.c.bf16 %v2991_v35, %v2988_v24  ;;  %v8553_v55 = vmul.f32 %v2991_v35, %v2991_v35  ;;  %v4632_v38 = vpop.f32.mrb[115].mxu0 }
 0x349   :  { %3473 = vst.msk [vmem:[%s8923_s3 + $0xe4] sm:$0xf] %vm3415_vm0, %v4303_v17  ;;  %4730 = vmatprep.subr.bf16.mxu1 %v4729_v30 }
 0x34a   :  { %4732 = vmatpush3.bf16.msra.mxu1 %v9143_v9 }
 0x358   :  { %v8564_v56 = vpop.f32.mrb[8].mxu1 }
 0x359   :  { %v4312_v35 = vpack.c.bf16 %v8564_v56, %v8564_v56  ;;  %v4651_v24 = vpop.f32.mrb[9].mxu1  ;;  %v8576_v30 = vmul.f32 %v8564_v56, %v8564_v56 }
 0x35a   :  { %v8568_v38 = vpop.f32.mrb[10].mxu1 }
 0x35b   :  { %3482 = vst.msk [vmem:[%s8923_s3 + $0x108] sm:$0xf] %vm3415_vm0, %v4312_v35  ;;  %9144 = vst [vmem:[#allocation38_spill] sm:$0xff] %v8576_v30  ;;  %v4313_v0 = vpack.c.bf16 %v8568_v38, %v8568_v38  ;;  %v8584_v17 = vmul.f32 %v8568_v38, %v8568_v38  ;;  %v4652_v9 = vpop.f32.mrb[11].mxu1 }
 0x35d   :  { %9145 = vst [vmem:[#allocation39_spill] sm:$0xff] %v8584_v17  ;;  %3483 = vst.msk [vmem:[%s8923_s3 + $0x10c] sm:$0xf] %vm3415_vm0, %v4313_v0  ;;  %v9146_v0 = vpack.c.bf16 %v8236_v15, %v8222_v5 }
 0x364   :  { %v2996_v24 = vpop.f32.mrb[116].mxu0 }
 0x365   :  { %v4304_v29 = vpack.c.bf16 %v2996_v24, %v2996_v24  ;;  %v4635_v23 = vpop.f32.mrb[117].mxu0  ;;  %v8596_v40 = vmul.f32 %v2996_v24, %v2996_v24 }
 0x366   :  { %v2999_v50 = vpop.f32.mrb[118].mxu0 }
 0x367   :  { %3474 = vst.msk [vmem:[%s8923_s3 + $0xe8] sm:$0xf] %vm3415_vm0, %v4304_v29  ;;  %v4305_v9 = vpack.c.bf16 %v2999_v50, %v2999_v50  ;;  %v4733_v4 = vpack.c.bf16 %v2999_v50, %v2996_v24  ;;  %v8598_v7 = vmul.f32 %v2999_v50, %v2999_v50  ;;  %v4636_v37 = vpop.f32.mrb[119].mxu0 }
 0x369   :  { %3475 = vst.msk [vmem:[%s8923_s3 + $0xec] sm:$0xf] %vm3415_vm0, %v4305_v9  ;;  %4734 = vmatprep.subr.bf16.mxu1 %v4733_v4 }
 0x36a   :  { %4736 = vmatpush3.bf16.msra.mxu1 %v9146_v0 }
 0x378   :  { %v3036_v29 = vpop.f32.mrb[12].mxu1 }
 0x379   :  { %v4314_v35 = vpack.c.bf16 %v3036_v29, %v3036_v29  ;;  %v4655_v30 = vpop.f32.mrb[13].mxu1  ;;  %v8613_v37 = vmul.f32 %v3036_v29, %v3036_v29 }
 0x37a   :  { %v3039_v24 = vpop.f32.mrb[14].mxu1 }
 0x37b   :  { %3484 = vst.msk [vmem:[%s8923_s3 + $0x110] sm:$0xf] %vm3415_vm0, %v4314_v35  ;;  %9147 = vst [vmem:[#allocation40_spill] sm:$0xff] %v8613_v37  ;;  %v4315_v50 = vpack.c.bf16 %v3039_v24, %v3039_v24  ;;  %v4752_v4 = vpack.c.bf16 %v3039_v24, %v3036_v29  ;;  %v8615_v9 = vmul.f32 %v3039_v24, %v3039_v24  ;;  %v4656_v23 = vpop.f32.mrb[15].mxu1 }
 0x37c   :  { %v9150_v37 = vpack.c.bf16 %v8323_v21, %v8314_v2 }
 0x37d   :  { %3485 = vst.msk [vmem:[%s8923_s3 + $0x114] sm:$0xf] %vm3415_vm0, %v4315_v50  ;;  %v3509_v50 = vsub.s32 2, %v8421_v11 }
 0x37f   :  { %v8646_v5 = vrot.slane %v8430_v19, %v3509_v50 }
 0x384   :  { %v3004_v15 = vpop.f32.mrb[120].mxu0 }
 0x385   :  { %v4306_v30 = vpack.c.bf16 %v3004_v15, %v3004_v15  ;;  %v4639_v0 = vpop.f32.mrb[121].mxu0  ;;  %v8627_v35 = vmul.f32 %v3004_v15, %v3004_v15 }
 0x386   :  { %v3007_v17 = vpop.f32.mrb[122].mxu0 }
 0x387   :  { %3476 = vst.msk [vmem:[%s8923_s3 + $0xf0] sm:$0xf] %vm3415_vm0, %v4306_v30  ;;  %v4307_v23 = vpack.c.bf16 %v3007_v17, %v3007_v17  ;;  %v4737_v29 = vpack.c.bf16 %v3007_v17, %v3004_v15  ;;  %v8629_v24 = vmul.f32 %v3007_v17, %v3007_v17  ;;  %v4640_v44 = vpop.f32.mrb[123].mxu0  ;;  %v9148_v30 = vpack.c.bf16 %v8281_v33, %v8272_v8 }
 0x388   :  { %v3521_v15 = vsub.s32 5, %v8421_v11  ;;  %v9149_v44 = vpack.c.bf16 %v8475_v20, %v8471_v26  ;;  %v8996_v33 = vmov 0.0|0.0  }
 0x389   :  { %3477 = vst.msk [vmem:[%s8923_s3 + $0xf4] sm:$0xf] %vm3415_vm0, %v4307_v23  ;;  %4738 = vmatprep.subr.bf16.mxu1 %v4737_v29 }
 0x38a   :  { %4740 = vmatpush3.bf16.msra.mxu1 %v9148_v30  ;;  %v8652_v0 = vrot.slane %v8430_v19, %v3521_v15  ;;  %v9152_v15 = vpack.c.bf16 %v8568_v38, %v8564_v56 }
 0x38b   :  { %4742 = vmatprep.subr.bf16.mxu1 %v9149_v44 }
 0x38d   :  { %v3044_v17 = vpop.f32.mrb[16].mxu1 }
 0x38e   :  { %v4316_v23 = vpack.c.bf16 %v3044_v17, %v3044_v17  ;;  %v4659_v29 = vpop.f32.mrb[17].mxu1  ;;  %4744 = vmatpush3.bf16.msra.mxu1 %v9150_v37  ;;  %v8659_v26 = vmul.f32 %v3044_v17, %v3044_v17  ;;  %v9151_v37 = vpack.c.bf16 %v8523_v22, %v8519_v28 }
 0x38f   :  { %v3047_v8 = vpop.f32.mrb[18].mxu1  ;;  %4745 = vmatprep.subr.bf16.mxu1 %v8996_v33 }
 0x390   :  { %3486 = vst.msk [vmem:[%s8923_s3 + $0x118] sm:$0xf] %vm3415_vm0, %v4316_v23  ;;  %v4317_v20 = vpack.c.bf16 %v3047_v8, %v3047_v8  ;;  %v4755_v50 = vpack.c.bf16 %v3047_v8, %v3044_v17  ;;  %v8661_v30 = vmul.f32 %v3047_v8, %v3047_v8  ;;  %v4660_v2 = vpop.f32.mrb[19].mxu1 }
 0x391   :  { %3665 = vmatmul.mubr.f32.vlgmr.msra.gmra.mrb[42].mxu1 %v8646_v5 }
 0x392   :  { %3487 = vst.msk [vmem:[%s8923_s3 + $0x11c] sm:$0xf] %vm3415_vm0, %v4317_v20  ;;  %4747 = vmatpush1.bf16.msra.mxu1 %v9151_v37  ;;  %4244 = vmatprep.mubr.msk.f32.mxu1 %vm2042_vm9, %v8652_v0 }
 0x393   :  { %4748 = vmatprep.subr.bf16.mxu1 %v8996_v33 }
 0x396   :  { %4750 = vmatpush1.bf16.msra.mxu1 %v9152_v15 }
 0x397   :  { %4751 = vmatprep.subr.bf16.mxu1 %v8996_v33 }
 0x39a   :  { %4753 = vmatpush1.bf16.msra.mxu1 %v4752_v4 }
 0x39b   :  { %4754 = vmatprep.subr.bf16.mxu1 %v8996_v33 }
 0x39d   :  { %v3052_v44 = vpop.f32.mrb[20].mxu1 }
 0x39e   :  { %v4318_v17 = vpack.c.bf16 %v3052_v44, %v3052_v44  ;;  %v4663_v23 = vpop.f32.mrb[21].mxu1  ;;  %4756 = vmatpush1.bf16.msra.mxu1 %v4755_v50  ;;  %v8686_v22 = vmul.f32 %v3052_v44, %v3052_v44 }
 0x39f   :  { %v3055_v28 = vpop.f32.mrb[22].mxu1  ;;  %4757 = vmatprep.subr.bf16.mxu1 %v8996_v33 }
 0x3a0   :  { %3488 = vst.msk [vmem:[%s8923_s3 + $0x120] sm:$0xf] %vm3415_vm0, %v4318_v17  ;;  %v4319_v56 = vpack.c.bf16 %v3055_v28, %v3055_v28  ;;  %v4758_v38 = vpack.c.bf16 %v3055_v28, %v3052_v44  ;;  %v8688_v29 = vmul.f32 %v3055_v28, %v3055_v28  ;;  %v4664_v4 = vpop.f32.mrb[23].mxu1 }
 0x3a2   :  { %3489 = vst.msk [vmem:[%s8923_s3 + $0x124] sm:$0xf] %vm3415_vm0, %v4319_v56  ;;  %4759 = vmatpush1.bf16.msra.mxu1 %v4758_v38 }
 0x3a3   :  { %4760 = vmatprep.subr.bf16.mxu1 %v8996_v33 }
 0x3ad   :  { %v3060_v20 = vpop.f32.mrb[24].mxu1 }
 0x3ae   :  { %v4320_v50 = vpack.c.bf16 %v3060_v20, %v3060_v20  ;;  %v4667_v2 = vpop.f32.mrb[25].mxu1  ;;  %v8701_v15 = vmul.f32 %v3060_v20, %v3060_v20 }
 0x3af   :  { %v3063_v37 = vpop.f32.mrb[26].mxu1 }
 0x3b0   :  { %3490 = vst.msk [vmem:[%s8923_s3 + $0x128] sm:$0xf] %vm3415_vm0, %v4320_v50  ;;  %9153 = vst [vmem:[#allocation41_spill] sm:$0xff] %v8701_v15  ;;  %v4321_v44 = vpack.c.bf16 %v3063_v37, %v3063_v37  ;;  %v4761_v17 = vpack.c.bf16 %v3063_v37, %v3060_v20  ;;  %v8703_v23 = vmul.f32 %v3063_v37, %v3063_v37  ;;  %v4668_v28 = vpop.f32.mrb[27].mxu1 }
 0x3b2   :  { %3491 = vst.msk [vmem:[%s8923_s3 + $0x12c] sm:$0xf] %vm3415_vm0, %v4321_v44  ;;  %4762 = vmatpush1.bf16.msra.mxu1 %v4761_v17  ;;  %v9162_v17 = vld [vmem:[#allocation10_spill] sm:$0xff] }
 0x3b3   :  { %4763 = vmatprep.subr.bf16.mxu1 %v8996_v33 }
 0x3bd   :  { %v3068_v38 = vpop.f32.mrb[28].mxu1 }
 0x3be   :  { %v4322_v4 = vpack.c.bf16 %v3068_v38, %v3068_v38  ;;  %v4671_v50 = vpop.f32.mrb[29].mxu1  ;;  %v8716_v20 = vmul.f32 %v3068_v38, %v3068_v38 }
 0x3bf   :  { %v3071_v2 = vpop.f32.mrb[30].mxu1 }
 0x3c0   :  { %3492 = vst.msk [vmem:[%s8923_s3 + $0x130] sm:$0xf] %vm3415_vm0, %v4322_v4  ;;  %v4323_v37 = vpack.c.bf16 %v3071_v2, %v3071_v2  ;;  %v4764_v28 = vpack.c.bf16 %v3071_v2, %v3068_v38  ;;  %v8718_v44 = vmul.f32 %v3071_v2, %v3071_v2  ;;  %v4672_v8 = vpop.f32.mrb[31].mxu1 }
 0x3c2   :  { %3493 = vst.msk [vmem:[%s8923_s3 + $0x134] sm:$0xf] %vm3415_vm0, %v4323_v37  ;;  %4765 = vmatpush1.bf16.msra.mxu1 %v4764_v28  ;;  %v3517_v28 = vsub.s32 4, %v8421_v11 }
 0x3c3   :  { %4766 = vmatprep.subr.bf16.mxu1 %v8996_v33 }
 0x3cd   :  { %v3076_v50 = vpop.f32.mrb[32].mxu1 }
 0x3ce   :  { %v4324_v4 = vpack.c.bf16 %v3076_v50, %v3076_v50  ;;  %v4675_v56 = vpop.f32.mrb[33].mxu1  ;;  %v8731_v8 = vmul.f32 %v3076_v50, %v3076_v50 }
 0x3cf   :  { %v3079_v21 = vpop.f32.mrb[34].mxu1 }
 0x3d0   :  { %3494 = vst.msk [vmem:[%s8923_s3 + $0x138] sm:$0xf] %vm3415_vm0, %v4324_v4  ;;  %v4325_v38 = vpack.c.bf16 %v3079_v21, %v3079_v21  ;;  %v4767_v2 = vpack.c.bf16 %v3079_v21, %v3076_v50  ;;  %v8733_v37 = vmul.f32 %v3079_v21, %v3079_v21  ;;  %v4676_v15 = vpop.f32.mrb[35].mxu1  ;;  %v8744_v4 = vrot.slane %v8430_v19, %v3517_v28  ;;  %v9157_v19 = vld [vmem:[#allocation9_spill] sm:$0xff]  ;;  %v9158_v28 = vld [vmem:[#allocation8_spill] sm:$0xff] }
 0x3d1   :  { %v9159_v56 = vpack.c.bf16 %v9157_v19, %v9158_v28  ;;  %v9168_v19 = vld [vmem:[#allocation12_spill] sm:$0xff]  ;;  %v9171_v28 = vld [vmem:[#allocation30_spill] sm:$0xff] }
 0x3d2   :  { %3495 = vst.msk [vmem:[%s8923_s3 + $0x13c] sm:$0xf] %vm3415_vm0, %v4325_v38  ;;  %4768 = vmatpush1.bf16.msra.mxu1 %v4767_v2  ;;  %9154 = vst [vmem:[#allocation42_spill] sm:$0xff] %v8744_v4  ;;  %v9156_v2 = vpack.c.bf16 %v6971_v45, %v6953_v53  ;;  %v9164_v45 = vld [vmem:[#allocation29_spill] sm:$0xff] }
 0x3d3   :  { %3702 = vmatprep.subr.mxu1 %v9034_v32 }
 0x3dd   :  { %v8746_v50 = vpop.f32.mrb[36].mxu1 }
 0x3de   :  { %9155 = vst [vmem:[#allocation43_spill] sm:$0xff] %v8746_v50  ;;  %v4326_v21 = vpack.c.bf16 %v8746_v50, %v8746_v50  ;;  %v4679_v15 = vpop.f32.mrb[37].mxu1  ;;  %3703 = vmatpush1.msra.mxu1 %v8746_v50  ;;  %v9167_v50 = vld [vmem:[#allocation13_spill] sm:$0xff] }
 0x3df   :  { %v3087_v38 = vpop.f32.mrb[38].mxu1  ;;  %3735 = vmatmul.mubr.f32.vlgmr.msra.gmra.mrb[44].mxu1 %v8744_v4  ;;  %4770 = vmatprep.subr.bf16.mxu1 %v9156_v2  ;;  %v9160_v15 = vpack.c.bf16 %v7060_v59, %v7043_v34  ;;  %v9165_v2 = vld [vmem:[#allocation28_spill] sm:$0xff]  ;;  %v9173_v59 = vld [vmem:[#allocation15_spill] sm:$0xff]  ;;  %v9174_v34 = vld [vmem:[#allocation14_spill] sm:$0xff] }
 0x3e0   :  { %3496 = vst.msk [vmem:[%s8923_s3 + $0x140] sm:$0xf] %vm3415_vm0, %v4326_v21  ;;  %v4680_v11 = vpop.f32.mrb[39].mxu1  ;;  %4772 = vmatpush3.bf16.msra.mxu1 %v9159_v56  ;;  %3887 = vmatprep.mubr.f32.mxu1 %v8435_v54  ;;  %v9161_v38 = vld [vmem:[#allocation11_spill] sm:$0xff]  ;;  %v9166_v33 = vpack.c.bf16 %v9164_v45, %v9165_v2  ;;  %v9169_v56 = vpack.c.bf16 %v9167_v50, %v9168_v19  ;;  %v9180_v45 = vld [vmem:[#allocation16_spill] sm:$0xff]  ;;  %s5010_s3 = smov [#allocation2]  }
 0x3e1   :  { %4774 = vmatprep.subr.bf16.mxu1 %v9160_v15  ;;  %v9163_v53 = vpack.c.bf16 %v9161_v38, %v9162_v17  ;;  %v9170_v54 = vld [vmem:[#allocation31_spill] sm:$0xff]  ;;  %v9175_v15 = vpack.c.bf16 %v9173_v59, %v9174_v34  ;;  %v9176_v17 = vld [vmem:[#allocation33_spill] sm:$0xff]  ;;  %v9177_v38 = vld [vmem:[#allocation32_spill] sm:$0xff]  ;;  %s4042_s2 = sshll.u32 %s5010_s3, 4  ;;  %vm3740_vm0 = vcmask 253952   ;;  %s4043_s2 = int_to_ptr.vmem [resolvable:$true] %s4042_s2 }
 0x3e2   :  { %v9172_v32 = vpack.c.bf16 %v9170_v54, %v9171_v28  ;;  %v9185_v19 = vld [vmem:[#allocation19_spill] sm:$0xff]  ;;  %v9190_v59 = vld [vmem:[#allocation21_spill] sm:$0xff]  ;;  %s4951_s24 = scalar_lea.vmem %s4043_s2, 16  ;;  %s4955_s27 = scalar_lea.vmem %s4043_s2, 32 }
 0x3e3   :  { %v9189_v28 = vld [vmem:[#allocation23_spill] sm:$0xff]  ;;  %p4952_p0 = scmp.ne.s32.totalorder %s4043_s2, %s4951_s24  ;;  %p4956_p1 = scmp.lt.s32.totalorder %s4043_s2, %s4043_s2 }
 0x3e4   :  { %4776 = vmatpush3.bf16.msra.mxu1 %v9163_v53  ;;  %v9178_v53 = vpack.c.bf16 %v9176_v17, %v9177_v38  ;;  %v9191_v34 = vpack.c.bf16 %v9189_v28, %v9190_v59  ;;  %v9193_v17 = vld [vmem:[#allocation27_spill] sm:$0xff]  ;;  %v9194_v38 = vld [vmem:[#allocation25_spill] sm:$0xff]  ;;  %p4957_p2 = scmp.lt.s32.totalorder %s4955_s27, %s4951_s24 }
 0x3e5   :  { %4778 = vmatprep.subr.bf16.mxu1 %v9166_v33  ;;  %v4403_v21 = vpop.f32.mrb[40].mxu1  ;;  %v9179_v33 = vld [vmem:[#allocation17_spill] sm:$0xff] }
 0x3e6   :  { %v4404_v11 = vpop.f32.mrb[41].mxu1  ;;  %v9181_v2 = vpack.c.bf16 %v9179_v33, %v9180_v45  ;;  %v9196_v33 = vpack.c.bf16 %v8361_v47, %v8355_v57  ;;  %v9201_v57 = vpack.c.bf16 %v8086_v25, %v8078_v51  ;;  %v9206_v51 = vpack.c.bf16 %v8598_v7, %v8596_v40  ;;  %v9210_v47 = vld [vmem:[#allocation24_spill] sm:$0xff]  ;;  %p4958_p3 = por %p4957_p2, %p4956_p1 }
 0x3e7   :  { %v4405_v4 = vadd.f32 %v4404_v11, %v4403_v21  ;;  %v9182_v21 = vld [vmem:[#allocation35_spill] sm:$0xff]  ;;  %v9183_v11 = vld [vmem:[#allocation34_spill] sm:$0xff]  ;;  %v9207_v25 = vpack.c.bf16 %v8248_v63, %v8234_v49  ;;  %v9217_v49 = vld [vmem:[#allocation37_spill] sm:$0xff] }
 0x3e8   :  { %4780 = vmatpush3.bf16.msra.mxu1 %v9169_v56  ;;  %v9184_v50 = vpack.c.bf16 %v9182_v21, %v9183_v11  ;;  %v9186_v56 = vld [vmem:[#allocation18_spill] sm:$0xff]  ;;  %v9218_v63 = vld [vmem:[#allocation36_spill] sm:$0xff]  ;;  %p4959_p4 = pnand %p4958_p3, %p4952_p0 }
 0x3e9   :  { %4782 = vmatprep.subr.bf16.mxu1 %v9172_v32  ;;  %v9187_v54 = vpack.c.bf16 %v9185_v19, %v9186_v56  ;;  %v9188_v32 = vpack.c.bf16 %v7566_v42, %v7558_v60  ;;  %v9197_v60 = vpack.c.bf16 %v7846_v36, %v7838_v52  ;;  %v9198_v42 = vpack.c.bf16 %v8401_v6, %v8387_v12  ;;  %v9211_v12 = vld [vmem:[#allocation26_spill] sm:$0xff] }
 0x3ea   :  { %v9202_v52 = vpack.c.bf16 %v8508_v41, %v8506_v14  ;;  %v9203_v36 = vpack.c.bf16 %v8152_v18, %v8136_v13  ;;  %v9208_v13 = vpack.c.bf16 %v8629_v24, %v8627_v35  ;;  %v9209_v18 = vpack.c.bf16 %v8293_v10, %v8279_v1  ;;  %v9214_v6 = vld [vmem:[#allocation22_spill] sm:$0xff]  ;;  %v9220_v1 = vld [vmem:[#allocation39_spill] sm:$0xff]  ;;  %v9227_v41 = vld [vmem:[#allocation41_spill] sm:$0xff] }
 0x3eb   :  { %v9221_v10 = vld [vmem:[#allocation38_spill] sm:$0xff]  ;;  %v9226_v14 = vpack.c.bf16 %v8688_v29, %v8686_v22  ;;  %v9228_v40 = vpack.c.bf16 %v8703_v23, %v9227_v41  ;;  %v9231_v35 = vmov 0.0   ;;  %v9232_v24 = vld [vmem:[#allocation43_spill] sm:$0xff] }
 0x3ec   :  { %4784 = vmatpush3.bf16.msra.mxu1 %v9175_v15  ;;  %v9192_v15 = vpack.c.bf16 %v7713_v3, %v7692_v39  ;;  %v9199_v39 = vpack.c.bf16 %v7979_v16, %v7953_v46  ;;  %v9200_v3 = vpack.c.bf16 %v8443_v27, %v8441_v58  ;;  %v9204_v46 = vpack.c.bf16 %v8553_v55, %v8551_v61 }
 0x3ed   :  { %4786 = vmatprep.subr.bf16.mxu1 %v9178_v53  ;;  %v9195_v53 = vpack.c.bf16 %v9193_v17, %v9194_v38  ;;  %v9205_v16 = vpack.c.bf16 %v8199_v62, %v8191_v43  ;;  %v9212_v43 = vpack.c.bf16 %v9210_v47, %v9211_v12  ;;  %v9213_v62 = vld [vmem:[#allocation20_spill] sm:$0xff]  ;;  %v9216_v58 = vmov 0.0|0.0  }
 0x3ee   :  { %v9215_v7 = vpack.c.bf16 %v9213_v62, %v9214_v6  ;;  %v9219_v27 = vpack.c.bf16 %v9217_v49, %v9218_v63  ;;  %v9222_v61 = vpack.c.bf16 %v9220_v1, %v9221_v10  ;;  %v9225_v55 = vpack.c.bf16 %v8661_v30, %v8659_v26  ;;  %v9233_v26 = vld [vmem:[#allocation42_spill] sm:$0xff] }
 0x3f0   :  { %4788 = vmatpush3.bf16.msra.mxu1 %v9181_v2 }
 0x3f1   :  { %4790 = vmatprep.subr.bf16.mxu1 %v9184_v50 }
 0x3f4   :  { %4792 = vmatpush3.bf16.msra.mxu1 %v9187_v54 }
 0x3f5   :  { %4794 = vmatprep.subr.bf16.mxu1 %v9188_v32 }
 0x3f8   :  { %4796 = vmatpush3.bf16.msra.mxu1 %v9191_v34 }
 0x3f9   :  { %4798 = vmatprep.subr.bf16.mxu1 %v9192_v15 }
 0x3fc   :  { %4800 = vmatpush3.bf16.msra.mxu1 %v9195_v53 }
 0x3fd   :  { %4802 = vmatprep.subr.bf16.mxu1 %v9196_v33 }
 0x3ff   :  { %3888 = vmatmul.mubr.f32.vlgmr.msra.gmra.mrb[46].mxu1 %v8457_v31  ;;  %v9223_v31 = vld [vmem:[#allocation40_spill] sm:$0xff] }
 0x400   :  { %4804 = vmatpush3.bf16.msra.mxu1 %v9197_v60  ;;  %3957 = vmatprep.mubr.f32.mxu1 %v8461_v48  ;;  %v9224_v48 = vpack.c.bf16 %v8615_v9, %v9223_v31  ;;  %v9229_v9 = vpack.c.bf16 %v8718_v44, %v8716_v20 }
 0x401   :  { %4806 = vmatprep.subr.bf16.mxu1 %v9198_v42 }
 0x404   :  { %4808 = vmatpush3.bf16.msra.mxu1 %v9199_v39 }
 0x405   :  { %4810 = vmatprep.subr.bf16.mxu1 %v9200_v3 }
 0x408   :  { %4812 = vmatpush3.bf16.msra.mxu1 %v9201_v57 }
 0x409   :  { %4814 = vmatprep.subr.bf16.mxu1 %v9202_v52 }
 0x40c   :  { %4816 = vmatpush3.bf16.msra.mxu1 %v9203_v36 }
 0x40d   :  { %4818 = vmatprep.subr.bf16.mxu1 %v9204_v46 }
 0x410   :  { %4820 = vmatpush3.bf16.msra.mxu1 %v9205_v16 }
 0x411   :  { %4822 = vmatprep.subr.bf16.mxu1 %v9206_v51 }
 0x414   :  { %4824 = vmatpush3.bf16.msra.mxu1 %v9207_v25 }
 0x415   :  { %4826 = vmatprep.subr.bf16.mxu1 %v9208_v13 }
 0x418   :  { %4828 = vmatpush3.bf16.msra.mxu1 %v9209_v18 }
 0x419   :  { %4830 = vmatprep.subr.bf16.mxu1 %v9212_v43 }
 0x41c   :  { %4832 = vmatpush3.bf16.msra.mxu1 %v9215_v7 }
 0x41d   :  { %4833 = vmatprep.subr.bf16.mxu1 %v9216_v58 }
 0x41f   :  { %3958 = vmatmul.mubr.f32.vlgmr.msra.gmra.mrb[48].mxu1 %v8646_v5  ;;  %v9230_v5 = vpack.c.bf16 %v8733_v37, %v8731_v8 }
 0x420   :  { %4835 = vmatpush1.bf16.msra.mxu1 %v9219_v27  ;;  %4245 = vmatprep.mubr.msk.f32.mxu1 %vm2042_vm9, %v8652_v0  ;;  %v3822_v0 = vmul.f32 %v9232_v24, %v9232_v24 }
 0x421   :  { %4836 = vmatprep.subr.bf16.mxu1 %v9216_v58 }
 0x424   :  { %4838 = vmatpush1.bf16.msra.mxu1 %v9222_v61 }
 0x425   :  { %4839 = vmatprep.subr.bf16.mxu1 %v9216_v58 }
 0x428   :  { %4841 = vmatpush1.bf16.msra.mxu1 %v9224_v48 }
 0x429   :  { %4842 = vmatprep.subr.bf16.mxu1 %v9216_v58 }
 0x42c   :  { %4844 = vmatpush1.bf16.msra.mxu1 %v9225_v55 }
 0x42d   :  { %4845 = vmatprep.subr.bf16.mxu1 %v9216_v58 }
 0x430   :  { %4847 = vmatpush1.bf16.msra.mxu1 %v9226_v14 }
 0x431   :  { %4848 = vmatprep.subr.bf16.mxu1 %v9216_v58 }
 0x434   :  { %4850 = vmatpush1.bf16.msra.mxu1 %v9228_v40 }
 0x435   :  { %4851 = vmatprep.subr.bf16.mxu1 %v9216_v58 }
 0x438   :  { %4853 = vmatpush1.bf16.msra.mxu1 %v9229_v9 }
 0x439   :  { %4854 = vmatprep.subr.bf16.mxu1 %v9216_v58 }
 0x43c   :  { %4856 = vmatpush1.bf16.msra.mxu1 %v9230_v5 }
 0x43d   :  { %3995 = vmatprep.subr.mxu1 %v9231_v35 }
 0x440   :  { %3996 = vmatpush1.msra.mxu1 %v3822_v0 }
 0x441   :  { %4028 = vmatmul.mubr.f32.vlgmr.msra.gmra.mrb[50].mxu1 %v9233_v26 }
 0x464   :  { %v4438_v30 = vpop.f32.mrb[42].mxu1 }
 0x465   :  { %v4439_v22 = vpop.f32.mrb[43].mxu1 }
 0x466   :  { %v4440_v29 = vadd.f32 %v4439_v22, %v4438_v30 }
 0x468   :  { %v3667_v23 = vadd.f32 %v4440_v29, %v4405_v4 }
 0x4b2   :  { %v3736_v20 = vpop.f32.mrb[44].mxu1 }
 0x4b3   :  { %v3737_v44 = vadd.f32 %v3736_v20, %v3667_v23  ;;  %v3738_v45 = vpop.f32.mrb[45].mxu1 }
 0x4b5   :  { %3741 = vst.msk [vmem:[#allocation2] sm:$0x1] %vm3740_vm0, %v3737_v44 }
 0x4b6   :  { %4962 = shalt.err (!%p4959_p4)
}
 0x4b7   :  { %s4963_s30 = scalar_lea.hbm %s8924_s4, 16 }
 0x4b8   :  { %p4964_p5 = scmp.ne.s32.totalorder %s8924_s4, %s4963_s30  ;;  %p4967_p6 = scmp.lt.u32.totalorder %s4963_s30, %s8924_s4 }
 0x4ba   :  { %p4969_p7 = pnand %p4967_p6, %p4964_p5 }
 0x4bc   :  { %4972 = shalt.err (!%p4969_p7)
}
 0x4bd   :  { %4045 = dma.vmem_to_hbm [thread:$0]  %s4043_s2, 16, %s8924_s4, [#allocation3]  }
 0x4be   :  { %s5011_s0 = smov [#allocation4]  }
 0x4bf   :  { %s4052_s15 = sshll.u32 %s5011_s0, 4  ;;  %s4053_s15 = int_to_ptr.vmem [resolvable:$true] %s4052_s15 }
 0x4c0   :  { %s4973_s16 = scalar_lea.vmem %s4053_s15, 16  ;;  %s4977_s19 = scalar_lea.vmem %s4053_s15, 32 }
 0x4c1   :  { %p4974_p8 = scmp.ne.s32.totalorder %s4053_s15, %s4973_s16  ;;  %p4978_p9 = scmp.lt.s32.totalorder %s4053_s15, %s4053_s15 }
 0x4c2   :  { %p4979_p10 = scmp.lt.s32.totalorder %s4977_s19, %s4973_s16 }
 0x4c4   :  { %p4980_p11 = por %p4979_p10, %p4978_p9 }
 0x4c6   :  { %p4981_p12 = pnand %p4980_p11, %p4974_p8 }
 0x4d2   :  { %v4473_v8 = vpop.f32.mrb[46].mxu1 }
 0x4d3   :  { %v4474_v37 = vpop.f32.mrb[47].mxu1 }
 0x4d4   :  { %v4475_v4 = vadd.f32 %v4474_v37, %v4473_v8 }
 0x4f2   :  { %v4508_v2 = vpop.f32.mrb[48].mxu1 }
 0x4f3   :  { %v4509_v21 = vpop.f32.mrb[49].mxu1 }
 0x4f4   :  { %v4510_v11 = vadd.f32 %v4509_v21, %v4508_v2 }
 0x4f6   :  { %v3960_v50 = vadd.f32 %v4510_v11, %v4475_v4 }
 0x514   :  { %v4029_v19 = vpop.f32.mrb[50].mxu1 }
 0x515   :  { %v4030_v56 = vadd.f32 %v4029_v19, %v3960_v50  ;;  %v4031_v54 = vpop.f32.mrb[51].mxu1 }
 0x517   :  { %4033 = vst.msk [vmem:[#allocation4] sm:$0x1] %vm3740_vm0, %v4030_v56 }
 0x518   :  { %4984 = shalt.err (!%p4981_p12)
}
 0x519   :  { %s4985_s20 = scalar_lea.hbm %s8925_s5, 16 }
 0x51a   :  { %p4986_p13 = scmp.ne.s32.totalorder %s8925_s5, %s4985_s20  ;;  %p4989_p0 = scmp.lt.u32.totalorder %s4985_s20, %s8925_s5 }
 0x51c   :  { %p4991_p1 = pnand %p4989_p0, %p4986_p13 }
 0x51e   :  { %4994 = shalt.err (!%p4991_p1)
}
 0x51f   :  { %4055 = dma.vmem_to_hbm [thread:$0]  %s4053_s15, 16, %s8925_s5, [#allocation5]  }
 0x520   :  { %4995 = dma.done.wait [#allocation3], 16  }
 0x521   :  { %4996 = vsyncadd [#allocation3], 4294967280 }
 0x522   :  { %4997 = dma.done.wait [#allocation5], 16  }
 0x523   :  { %4998 = vsyncadd [#allocation5], 4294967280 }
 0x524   :  { %4064 = vsyncpa [#allocation3], 1 }
 0x525   :  { %4065 = vsyncpa [#allocation5], 1 }

</bundles_post_ra>
